<compile_context>
chip_gen: v6e
topology: v6e:2x2x1
jax: 0.10.0
libtpu: 0.0.40
codegen_flags: <defaults>
</compile_context>

<pallas_src>
import math

import jax
import jax.numpy as jnp
from jax.experimental import pallas as pl
from jax.experimental.pallas import tpu as pltpu


def _round_up(x, m):
    return ((x + m - 1) // m) * m


# ---------------------------------------------------------------------------
# Kernel 1: fused conv + bias + ReLU + 2x2 maxpool, transposed/quadrant form.
# ---------------------------------------------------------------------------
def _conv_relu_pool_kernel(x_ref, w_ref, b_ref, o_ref):
    # x_ref : (4, K, L)   bf16   quadrant-q im2col, L = bm*Mpad lanes (batch*spatial)
    # w_ref : (Cout, K)   bf16   conv weight, K = Cin*KH*KW
    # b_ref : (Cout, 1)   f32
    # o_ref : (Cout, L)   bf16   pooled output (lane-dense, unmasked stores)
    w = w_ref[...]
    z = jnp.dot(w, x_ref[0], preferred_element_type=jnp.float32)
    for q in range(1, x_ref.shape[0]):                       # 2x2 maxpool == max over
        z = jnp.maximum(z, jnp.dot(w, x_ref[q],              # the 4 quadrant matmuls
                                   preferred_element_type=jnp.float32))
    o_ref[...] = jnp.maximum(z + b_ref[...], 0.0).astype(o_ref.dtype)


def conv_relu_pool(x, w, b, *, pad=2):
    """Conv2d(stride=1, padding=pad) + ReLU + MaxPool2d(2).  NCHW in / NCHW out.

    x: (B, Cin, H, W);  w: (Cout, Cin, KH, KW) (PyTorch layout);  b: (Cout,)
    """
    B, Cin, H, W = x.shape
    Cout, Cin_w, KH, KW = w.shape
    assert Cin_w == Cin and H % 2 == 0 and W % 2 == 0
    Ho, Wo = H, W                               # stride 1, "same" padding
    Hq, Wq = Ho // 2, Wo // 2
    Mout = Hq * Wq                              # pooled positions per image
    K = Cin * KH * KW

    bm = min(32, _round_up(B, 8))               # images per grid step
    r = 128 // math.gcd(bm, 128)                # pad so bm*Mpad % 128 == 0
    Mpad = _round_up(Mout, r)
    Bp = _round_up(B, bm)
    L = bm * Mpad

    # --- wrapper-side im2col, quadrant-transposed, bf16 before slab build ---
    xp = jnp.pad(x, ((0, 0), (0, 0), (pad, pad), (pad, pad))).astype(jnp.bfloat16)
    cols = [xp[:, :, kh:kh + Ho, kw:kw + Wo] for kh in range(KH) for kw in range(KW)]
    p = jnp.stack(cols, axis=2)                 # (B, Cin, KH*KW, Ho, Wo)
    p = p.reshape(B, K, Hq, 2, Wq, 2)           # K in (cin, kh, kw) order (== weight)
    p = p.transpose(3, 5, 1, 0, 2, 4)           # (dy, dx, K, B, Hq, Wq)
    p = p.reshape(4, K, B, Mout)
    p = jnp.pad(p, ((0, 0), (0, 0), (0, Bp - B), (0, Mpad - Mout)))
    xq = p.reshape(4, K, Bp * Mpad)

    wT = w.reshape(Cout, K).astype(jnp.bfloat16)
    b2 = b.reshape(Cout, 1).astype(jnp.float32)

    out = pl.pallas_call(
        _conv_relu_pool_kernel,
        out_shape=jax.ShapeDtypeStruct((Cout, Bp * Mpad), jnp.bfloat16),
        grid=(Bp // bm,),
        in_specs=[
            pl.BlockSpec((4, K, L), lambda i: (0, 0, i)),
            pl.BlockSpec((Cout, K), lambda i: (0, 0)),
            pl.BlockSpec((Cout, 1), lambda i: (0, 0)),
        ],
        out_specs=pl.BlockSpec((Cout, L), lambda i: (0, i)),
        compiler_params=pltpu.CompilerParams(dimension_semantics=("parallel",)),
    )(xq, wT, b2)

    out = out.reshape(Cout, Bp, Mpad)[:, :B, :Mout]       # drop batch / lane padding
    return out.transpose(1, 0, 2).reshape(B, Cout, Hq, Wq)  # NCHW


# ---------------------------------------------------------------------------
# Kernel 2: final Linear, N padded to exactly 128 lanes, batch padded/blocked.
# ---------------------------------------------------------------------------
def _linear_kernel(x_ref, w_ref, b_ref, o_ref):
    o_ref[...] = (jnp.dot(x_ref[...], w_ref[...],
                          preferred_element_type=jnp.float32)
                  + b_ref[...]).astype(o_ref.dtype)


def linear(x, w, b):
    """x: (B, D);  w: (N, D) (PyTorch layout);  b: (N,)  ->  (B, N) f32."""
    B, D = x.shape
    N, Dw = w.shape
    assert Dw == D
    Np = 128 * pl.cdiv(N, 128)                  # exactly 128 lanes, no extra padding
    bl = min(128, _round_up(B, 8))              # sublane-friendly batch block
    Bp = _round_up(B, bl)

    xb = jnp.pad(x.astype(jnp.bfloat16), ((0, Bp - B), (0, 0)))
    wp = jnp.pad(w.T, ((0, 0), (0, Np - N))).astype(jnp.bfloat16)
    bp = jnp.pad(b, (0, Np - N)).reshape(1, Np).astype(jnp.float32)

    out = pl.pallas_call(
        _linear_kernel,
        out_shape=jax.ShapeDtypeStruct((Bp, Np), jnp.float32),
        grid=(Bp // bl,),
        in_specs=[
            pl.BlockSpec((bl, D), lambda i: (i, 0)),
            pl.BlockSpec((D, Np), lambda i: (0, 0)),
            pl.BlockSpec((1, Np), lambda i: (0, 0)),
        ],
        out_specs=pl.BlockSpec((bl, Np), lambda i: (i, 0)),
        compiler_params=pltpu.CompilerParams(dimension_semantics=("parallel",)),
    )(xb, wp, bp)
    return out[:B, :N]


# ---------------------------------------------------------------------------
# Model: deterministic synthetic parameters (PyTorch layouts) + forward pass
# ---------------------------------------------------------------------------
def init_params(key):
    k1, k2, k3, k4, k5, k6 = jax.random.split(key, 6)
    return dict(
        w1=jax.random.normal(k1, (16, 1, 5, 5), jnp.float32) * 0.1,    # OIHW
        b1=jax.random.normal(k2, (16,), jnp.float32) * 0.1,
        w2=jax.random.normal(k3, (32, 16, 5, 5), jnp.float32) * 0.05,  # OIHW
        b2=jax.random.normal(k4, (32,), jnp.float32) * 0.05,
        w3=jax.random.normal(k5, (10, 32 * 7 * 7), jnp.float32) * 0.02,  # (out, in)
        b3=jax.random.normal(k6, (10,), jnp.float32) * 0.02,
    )
    # TODO(synk): nn.CrossEntropyLoss / Adam optimizer are training-only and not
    # part of forward(); intentionally not implemented.


def cnn_forward(params, x_nchw):
    # x: (B, 1, 28, 28) NCHW, exactly as in the PyTorch module
    x = conv_relu_pool(x_nchw, params["w1"], params["b1"])   # (B, 16, 14, 14)
    x = conv_relu_pool(x, params["w2"], params["b2"])        # (B, 32,  7,  7)
    # TODO(synk): conv1 output still makes one small (~6 KB/image) HBM round trip
    # before conv2's im2col; fusing the two convs into one kernel was not done.
    x = x.reshape(x.shape[0], -1)                            # NCHW flatten == x.view(B,-1)
    return linear(x, params["w3"], params["b3"])             # (B, 10) f32


# ---------------------------------------------------------------------------
# Pure-JAX reference (for correctness check of the Pallas path)
# ---------------------------------------------------------------------------
def reference_forward(params, x_nchw):
    def conv_block(x, w_oihw, b):
        y = jax.lax.conv_general_dilated(
            x, w_oihw, window_strides=(1, 1), padding=((2, 2), (2, 2)),
            dimension_numbers=("NCHW", "OIHW", "NCHW"))
        y = jnp.maximum(y + b[None, :, None, None], 0.0)
        return jax.lax.reduce_window(
            y, -jnp.inf, jax.lax.max,
            window_dimensions=(1, 1, 2, 2), window_strides=(1, 1, 2, 2),
            padding="VALID")

    x = conv_block(x_nchw, params["w1"], params["b1"])
    x = conv_block(x, params["w2"], params["b2"])
    x = x.reshape(x.shape[0], -1)
    return x @ params["w3"].T + params["b3"]


if __name__ == "__main__":
    key = jax.random.PRNGKey(0)
    pkey, xkey = jax.random.split(key)
    params = init_params(pkey)
    x = jax.random.normal(xkey, (2, 1, 28, 28), jnp.float32)

    out = jax.jit(cnn_forward)(params, x)
    jax.block_until_ready(out)
    assert out.shape == (2, 10) and out.dtype == jnp.float32

    ref = reference_forward(params, x)
    # bf16 matmul inputs (f32 accumulation) -> slightly looser tolerance vs f32 ref
    assert jnp.allclose(out, ref, atol=5e-2, rtol=5e-2), "mismatch vs reference"

    print("KERNEL_OK")
</pallas_src>

<mosaic_0001>
module attributes {stable_mosaic.version = 11 : i64} {
  func.func @_conv_relu_pool_kernel(%arg0: i32, %arg1: memref<4x25x1664xbf16, #tpu.memory_space<vmem>>, %arg2: memref<16x25xbf16, #tpu.memory_space<vmem>>, %arg3: memref<16x1xf32, #tpu.memory_space<vmem>>, %arg4: memref<16x1664xbf16, #tpu.memory_space<vmem>>) attributes {dimension_semantics = [#tpu.dimension_semantics<parallel>], iteration_bounds = array<i64: 1>, scalar_prefetch = 0 : i64, scratch_operands = 0 : i64, tpu.core_type = #tpu.core_type<tc>, window_params = [{transform_indices = @transform_0, window_bounds = array<i64: 4, 25, 1664>}, {pipeline_mode = #tpu.pipeline_mode<synchronous>, transform_indices = @transform_1, window_bounds = array<i64: 16, 25>}, {pipeline_mode = #tpu.pipeline_mode<synchronous>, transform_indices = @transform_2, window_bounds = array<i64: 16, 1>}, {transform_indices = @transform_3, window_bounds = array<i64: 16, 1664>}]} {
    %c0 = arith.constant 0 : index
    %c0_0 = arith.constant 0 : index
    %0 = vector.load %arg2[%c0, %c0_0] : memref<16x25xbf16, #tpu.memory_space<vmem>>, vector<16x25xbf16>
    %c0_1 = arith.constant 0 : index
    %c0_2 = arith.constant 0 : index
    %c0_3 = arith.constant 0 : index
    %1 = vector.load %arg1[%c0_1, %c0_2, %c0_3] : memref<4x25x1664xbf16, #tpu.memory_space<vmem>>, vector<1x25x1664xbf16>
    %2 = vector.shape_cast %1 : vector<1x25x1664xbf16> to vector<25x1664xbf16>
    %cst = arith.constant dense<0.000000e+00> : vector<16x1664xf32>
    %3 = tpu.matmul %0, %2, %cst {dimension_numbers = #tpu.dot_dimension_numbers<[1], [0], [0], [1], [0, 0, 1, 1], [], []>} : vector<16x25xbf16>, vector<25x1664xbf16>, vector<16x1664xf32> -> vector<16x1664xf32>
    %c1 = arith.constant 1 : index
    %c0_4 = arith.constant 0 : index
    %c0_5 = arith.constant 0 : index
    %4 = vector.load %arg1[%c1, %c0_4, %c0_5] : memref<4x25x1664xbf16, #tpu.memory_space<vmem>>, vector<1x25x1664xbf16>
    %5 = vector.shape_cast %4 : vector<1x25x1664xbf16> to vector<25x1664xbf16>
    %cst_6 = arith.constant dense<0.000000e+00> : vector<16x1664xf32>
    %6 = tpu.matmul %0, %5, %cst_6 {dimension_numbers = #tpu.dot_dimension_numbers<[1], [0], [0], [1], [0, 0, 1, 1], [], []>} : vector<16x25xbf16>, vector<25x1664xbf16>, vector<16x1664xf32> -> vector<16x1664xf32>
    %7 = arith.maximumf %3, %6 : vector<16x1664xf32>
    %c2 = arith.constant 2 : index
    %c0_7 = arith.constant 0 : index
    %c0_8 = arith.constant 0 : index
    %8 = vector.load %arg1[%c2, %c0_7, %c0_8] : memref<4x25x1664xbf16, #tpu.memory_space<vmem>>, vector<1x25x1664xbf16>
    %9 = vector.shape_cast %8 : vector<1x25x1664xbf16> to vector<25x1664xbf16>
    %cst_9 = arith.constant dense<0.000000e+00> : vector<16x1664xf32>
    %10 = tpu.matmul %0, %9, %cst_9 {dimension_numbers = #tpu.dot_dimension_numbers<[1], [0], [0], [1], [0, 0, 1, 1], [], []>} : vector<16x25xbf16>, vector<25x1664xbf16>, vector<16x1664xf32> -> vector<16x1664xf32>
    %11 = arith.maximumf %7, %10 : vector<16x1664xf32>
    %c3 = arith.constant 3 : index
    %c0_10 = arith.constant 0 : index
    %c0_11 = arith.constant 0 : index
    %12 = vector.load %arg1[%c3, %c0_10, %c0_11] : memref<4x25x1664xbf16, #tpu.memory_space<vmem>>, vector<1x25x1664xbf16>
    %13 = vector.shape_cast %12 : vector<1x25x1664xbf16> to vector<25x1664xbf16>
    %cst_12 = arith.constant dense<0.000000e+00> : vector<16x1664xf32>
    %14 = tpu.matmul %0, %13, %cst_12 {dimension_numbers = #tpu.dot_dimension_numbers<[1], [0], [0], [1], [0, 0, 1, 1], [], []>} : vector<16x25xbf16>, vector<25x1664xbf16>, vector<16x1664xf32> -> vector<16x1664xf32>
    %15 = arith.maximumf %11, %14 : vector<16x1664xf32>
    %c0_13 = arith.constant 0 : index
    %c0_14 = arith.constant 0 : index
    %16 = vector.load %arg3[%c0_13, %c0_14] : memref<16x1xf32, #tpu.memory_space<vmem>>, vector<16x1xf32>
    %17 = vector.broadcast %16 : vector<16x1xf32> to vector<16x1664xf32>
    %18 = arith.addf %15, %17 : vector<16x1664xf32>
    %cst_15 = arith.constant 0.000000e+00 : f32
    %19 = vector.broadcast %cst_15 : f32 to vector<16x1664xf32>
    %20 = arith.maximumf %18, %19 : vector<16x1664xf32>
    %21 = arith.truncf %20 : vector<16x1664xf32> to vector<16x1664xbf16>
    %c0_16 = arith.constant 0 : index
    %c0_17 = arith.constant 0 : index
    %22 = vector.load %arg4[%c0_16, %c0_17] : memref<16x1664xbf16, #tpu.memory_space<vmem>>, vector<16x1664xbf16>
    tpu.vector_store %arg4[%c0_16, %c0_17], %21 {strides = array<i32>} : memref<16x1664xbf16, #tpu.memory_space<vmem>>, vector<16x1664xbf16>,
    return
  }
  func.func @transform_0(%arg0: i32) -> (i32, i32, i32) {
    %c0_i32 = arith.constant 0 : i32
    %c0_i32_0 = arith.constant 0 : i32
    %c0_i32_1 = arith.constant 0 : i32
    return %c0_i32, %c0_i32_0, %arg0 : i32, i32, i32
  }
  func.func @transform_1(%arg0: i32) -> (i32, i32) {
    %c0_i32 = arith.constant 0 : i32
    %c0_i32_0 = arith.constant 0 : i32
    %c0_i32_1 = arith.constant 0 : i32
    return %c0_i32, %c0_i32_0 : i32, i32
  }
  func.func @transform_2(%arg0: i32) -> (i32, i32) {
    %c0_i32 = arith.constant 0 : i32
    %c0_i32_0 = arith.constant 0 : i32
    %c0_i32_1 = arith.constant 0 : i32
    return %c0_i32, %c0_i32_0 : i32, i32
  }
  func.func @transform_3(%arg0: i32) -> (i32, i32) {
    %c0_i32 = arith.constant 0 : i32
    %c0_i32_0 = arith.constant 0 : i32
    return %c0_i32, %arg0 : i32, i32
  }
}

module attributes {stable_mosaic.version = 11 : i64} {
  func.func @_conv_relu_pool_kernel(%arg0: i32, %arg1: memref<4x400x512xbf16, #tpu.memory_space<vmem>>, %arg2: memref<32x400xbf16, #tpu.memory_space<vmem>>, %arg3: memref<32x1xf32, #tpu.memory_space<vmem>>, %arg4: memref<32x512xbf16, #tpu.memory_space<vmem>>) attributes {dimension_semantics = [#tpu.dimension_semantics<parallel>], iteration_bounds = array<i64: 1>, scalar_prefetch = 0 : i64, scratch_operands = 0 : i64, tpu.core_type = #tpu.core_type<tc>, window_params = [{transform_indices = @transform_0, window_bounds = array<i64: 4, 400, 512>}, {pipeline_mode = #tpu.pipeline_mode<synchronous>, transform_indices = @transform_1, window_bounds = array<i64: 32, 400>}, {pipeline_mode = #tpu.pipeline_mode<synchronous>, transform_indices = @transform_2, window_bounds = array<i64: 32, 1>}, {transform_indices = @transform_3, window_bounds = array<i64: 32, 512>}]} {
    %c0 = arith.constant 0 : index
    %c0_0 = arith.constant 0 : index
    %0 = vector.load %arg2[%c0, %c0_0] : memref<32x400xbf16, #tpu.memory_space<vmem>>, vector<32x400xbf16>
    %c0_1 = arith.constant 0 : index
    %c0_2 = arith.constant 0 : index
    %c0_3 = arith.constant 0 : index
    %1 = vector.load %arg1[%c0_1, %c0_2, %c0_3] : memref<4x400x512xbf16, #tpu.memory_space<vmem>>, vector<1x400x512xbf16>
    %2 = vector.shape_cast %1 : vector<1x400x512xbf16> to vector<400x512xbf16>
    %cst = arith.constant dense<0.000000e+00> : vector<32x512xf32>
    %3 = tpu.matmul %0, %2, %cst {dimension_numbers = #tpu.dot_dimension_numbers<[1], [0], [0], [1], [0, 0, 1, 1], [], []>} : vector<32x400xbf16>, vector<400x512xbf16>, vector<32x512xf32> -> vector<32x512xf32>
    %c1 = arith.constant 1 : index
    %c0_4 = arith.constant 0 : index
    %c0_5 = arith.constant 0 : index
    %4 = vector.load %arg1[%c1, %c0_4, %c0_5] : memref<4x400x512xbf16, #tpu.memory_space<vmem>>, vector<1x400x512xbf16>
    %5 = vector.shape_cast %4 : vector<1x400x512xbf16> to vector<400x512xbf16>
    %cst_6 = arith.constant dense<0.000000e+00> : vector<32x512xf32>
    %6 = tpu.matmul %0, %5, %cst_6 {dimension_numbers = #tpu.dot_dimension_numbers<[1], [0], [0], [1], [0, 0, 1, 1], [], []>} : vector<32x400xbf16>, vector<400x512xbf16>, vector<32x512xf32> -> vector<32x512xf32>
    %7 = arith.maximumf %3, %6 : vector<32x512xf32>
    %c2 = arith.constant 2 : index
    %c0_7 = arith.constant 0 : index
    %c0_8 = arith.constant 0 : index
    %8 = vector.load %arg1[%c2, %c0_7, %c0_8] : memref<4x400x512xbf16, #tpu.memory_space<vmem>>, vector<1x400x512xbf16>
    %9 = vector.shape_cast %8 : vector<1x400x512xbf16> to vector<400x512xbf16>
    %cst_9 = arith.constant dense<0.000000e+00> : vector<32x512xf32>
    %10 = tpu.matmul %0, %9, %cst_9 {dimension_numbers = #tpu.dot_dimension_numbers<[1], [0], [0], [1], [0, 0, 1, 1], [], []>} : vector<32x400xbf16>, vector<400x512xbf16>, vector<32x512xf32> -> vector<32x512xf32>
    %11 = arith.maximumf %7, %10 : vector<32x512xf32>
    %c3 = arith.constant 3 : index
    %c0_10 = arith.constant 0 : index
    %c0_11 = arith.constant 0 : index
    %12 = vector.load %arg1[%c3, %c0_10, %c0_11] : memref<4x400x512xbf16, #tpu.memory_space<vmem>>, vector<1x400x512xbf16>
    %13 = vector.shape_cast %12 : vector<1x400x512xbf16> to vector<400x512xbf16>
    %cst_12 = arith.constant dense<0.000000e+00> : vector<32x512xf32>
    %14 = tpu.matmul %0, %13, %cst_12 {dimension_numbers = #tpu.dot_dimension_numbers<[1], [0], [0], [1], [0, 0, 1, 1], [], []>} : vector<32x400xbf16>, vector<400x512xbf16>, vector<32x512xf32> -> vector<32x512xf32>
    %15 = arith.maximumf %11, %14 : vector<32x512xf32>
    %c0_13 = arith.constant 0 : index
    %c0_14 = arith.constant 0 : index
    %16 = vector.load %arg3[%c0_13, %c0_14] : memref<32x1xf32, #tpu.memory_space<vmem>>, vector<32x1xf32>
    %17 = vector.broadcast %16 : vector<32x1xf32> to vector<32x512xf32>
    %18 = arith.addf %15, %17 : vector<32x512xf32>
    %cst_15 = arith.constant 0.000000e+00 : f32
    %19 = vector.broadcast %cst_15 : f32 to vector<32x512xf32>
    %20 = arith.maximumf %18, %19 : vector<32x512xf32>
    %21 = arith.truncf %20 : vector<32x512xf32> to vector<32x512xbf16>
    %c0_16 = arith.constant 0 : index
    %c0_17 = arith.constant 0 : index
    %22 = vector.load %arg4[%c0_16, %c0_17] : memref<32x512xbf16, #tpu.memory_space<vmem>>, vector<32x512xbf16>
    tpu.vector_store %arg4[%c0_16, %c0_17], %21 {strides = array<i32>} : memref<32x512xbf16, #tpu.memory_space<vmem>>, vector<32x512xbf16>,
    return
  }
  func.func @transform_0(%arg0: i32) -> (i32, i32, i32) {
    %c0_i32 = arith.constant 0 : i32
    %c0_i32_0 = arith.constant 0 : i32
    %c0_i32_1 = arith.constant 0 : i32
    return %c0_i32, %c0_i32_0, %arg0 : i32, i32, i32
  }
  func.func @transform_1(%arg0: i32) -> (i32, i32) {
    %c0_i32 = arith.constant 0 : i32
    %c0_i32_0 = arith.constant 0 : i32
    %c0_i32_1 = arith.constant 0 : i32
    return %c0_i32, %c0_i32_0 : i32, i32
  }
  func.func @transform_2(%arg0: i32) -> (i32, i32) {
    %c0_i32 = arith.constant 0 : i32
    %c0_i32_0 = arith.constant 0 : i32
    %c0_i32_1 = arith.constant 0 : i32
    return %c0_i32, %c0_i32_0 : i32, i32
  }
  func.func @transform_3(%arg0: i32) -> (i32, i32) {
    %c0_i32 = arith.constant 0 : i32
    %c0_i32_0 = arith.constant 0 : i32
    return %c0_i32, %arg0 : i32, i32
  }
}

module attributes {stable_mosaic.version = 11 : i64} {
  func.func @_linear_kernel(%arg0: i32, %arg1: memref<8x1568xbf16, #tpu.memory_space<vmem>>, %arg2: memref<1568x128xbf16, #tpu.memory_space<vmem>>, %arg3: memref<1x128xf32, #tpu.memory_space<vmem>>, %arg4: memref<8x128xf32, #tpu.memory_space<vmem>>) attributes {dimension_semantics = [#tpu.dimension_semantics<parallel>], iteration_bounds = array<i64: 1>, scalar_prefetch = 0 : i64, scratch_operands = 0 : i64, tpu.core_type = #tpu.core_type<tc>, window_params = [{transform_indices = @transform_0, window_bounds = array<i64: 8, 1568>}, {pipeline_mode = #tpu.pipeline_mode<synchronous>, transform_indices = @transform_1, window_bounds = array<i64: 1568, 128>}, {pipeline_mode = #tpu.pipeline_mode<synchronous>, transform_indices = @transform_2, window_bounds = array<i64: 1, 128>}, {transform_indices = @transform_3, window_bounds = array<i64: 8, 128>}]} {
    %c0 = arith.constant 0 : index
    %c0_0 = arith.constant 0 : index
    %0 = vector.load %arg1[%c0, %c0_0] : memref<8x1568xbf16, #tpu.memory_space<vmem>>, vector<8x1568xbf16>
    %c0_1 = arith.constant 0 : index
    %c0_2 = arith.constant 0 : index
    %1 = vector.load %arg2[%c0_1, %c0_2] : memref<1568x128xbf16, #tpu.memory_space<vmem>>, vector<1568x128xbf16>
    %cst = arith.constant dense<0.000000e+00> : vector<8x128xf32>
    %2 = tpu.matmul %0, %1, %cst {dimension_numbers = #tpu.dot_dimension_numbers<[1], [0], [0], [1], [0, 0, 1, 1], [], []>} : vector<8x1568xbf16>, vector<1568x128xbf16>, vector<8x128xf32> -> vector<8x128xf32>
    %c0_3 = arith.constant 0 : index
    %c0_4 = arith.constant 0 : index
    %3 = vector.load %arg3[%c0_3, %c0_4] : memref<1x128xf32, #tpu.memory_space<vmem>>, vector<1x128xf32>
    %4 = vector.broadcast %3 : vector<1x128xf32> to vector<8x128xf32>
    %5 = arith.addf %2, %4 : vector<8x128xf32>
    %c0_5 = arith.constant 0 : index
    %c0_6 = arith.constant 0 : index
    %6 = vector.load %arg4[%c0_5, %c0_6] : memref<8x128xf32, #tpu.memory_space<vmem>>, vector<8x128xf32>
    tpu.vector_store %arg4[%c0_5, %c0_6], %5 {strides = array<i32>} : memref<8x128xf32, #tpu.memory_space<vmem>>, vector<8x128xf32>,
    return
  }
  func.func @transform_0(%arg0: i32) -> (i32, i32) {
    %c0_i32 = arith.constant 0 : i32
    %c0_i32_0 = arith.constant 0 : i32
    return %arg0, %c0_i32 : i32, i32
  }
  func.func @transform_1(%arg0: i32) -> (i32, i32) {
    %c0_i32 = arith.constant 0 : i32
    %c0_i32_0 = arith.constant 0 : i32
    %c0_i32_1 = arith.constant 0 : i32
    return %c0_i32, %c0_i32_0 : i32, i32
  }
  func.func @transform_2(%arg0: i32) -> (i32, i32) {
    %c0_i32 = arith.constant 0 : i32
    %c0_i32_0 = arith.constant 0 : i32
    %c0_i32_1 = arith.constant 0 : i32
    return %c0_i32, %c0_i32_0 : i32, i32
  }
  func.func @transform_3(%arg0: i32) -> (i32, i32) {
    %c0_i32 = arith.constant 0 : i32
    %c0_i32_0 = arith.constant 0 : i32
    return %arg0, %c0_i32 : i32, i32
  }
}

</mosaic_0001>

<bundles_post_ra>
// kernel: cnn_forward.3
= control target key start
LH: loop header
LB: loop body
LE: loop exit
PB: predicated region body
PF: predicated region fallthrough
CT: control target
= control target key end

     0   :  { %vm173_vm0 = vcmask 1043456   ;;  %vm174_vm1 = vcmask 1044480   ;;  %v2660_v1 = vmov 0   ;;  %v2661_v2 = vmov 65535   ;;  %s3491_s0 = inlined_call_operand.vmem [shape: bf16[4,25,1664], index: 0, kind: input, shape index: {}]   ;;  %s3492_s1 = inlined_call_operand.vmem [shape: bf16[16,25], index: 1, kind: input, shape index: {}]   ;;  %s3493_s2 = inlined_call_operand.vmem [shape: f32[16,1], index: 2, kind: input, shape index: {}]   ;;  %s3494_s3 = inlined_call_operand.vmem [shape: bf16[16,1664], index: 3, kind: output, shape index: {}]  }
   0x1   :  { %v2507_v0 = vld [vmem:[%s3491_s0 + $0x6c] ss:$52 sps:$4 sm:$0x1f]   ;;  %248 = vmatprep.mubr.bf16.mxu0 %v2660_v1  ;;  %291 = vmatprep.mubr.bf16.mxu1 %v2660_v1  ;;  %v175_v3 = vsel %vm173_vm0, 4294967295, %v2661_v2  ;;  %v2513_v10 = vld [vmem:[%s3491_s0 + $0x4] ss:$52 sps:$4 sm:$0xff]  }
   0x2   :  { %2506 = vset.pattern.permute.xlu0 %v2660_v1  ;;  %v2690_v4 = vsel %vm174_vm1, %v175_v3, 0  ;;  %v2509_v5 = vld [vmem:[%s3491_s0 + $0x74] ss:$52 sps:$4 sm:$0x1f]   ;;  %v2515_v11 = vld [vmem:[%s3491_s0 + $0xc] ss:$52 sps:$4 sm:$0xff]  }
   0x3   :  { %v181_v6 = vand.u32 %v2507_v0, %v2690_v4  ;;  %v2511_v7 = vld [vmem:[%s3491_s0 + $0x68] ss:$52 sps:$4 sm:$0x1f]   ;;  %v2512_v8 = vld [vmem:[%s3491_s0 + $0x70] ss:$52 sps:$4 sm:$0x1f]   ;;  %v187_v9 = vand.u32 %v2509_v5, %v2690_v4 }
   0x4   :  { %v178_v12 = vand.u32 %v2511_v7, %v2690_v4  ;;  %v184_v13 = vand.u32 %v2512_v8, %v2690_v4  ;;  %v2517_v14 = vld [vmem:[%s3491_s0] ss:$52 sps:$4 sm:$0xff]   ;;  %v2518_v15 = vld [vmem:[%s3491_s0 + $0x8] ss:$52 sps:$4 sm:$0xff]   ;;  %vm169_vm2 = vcmask 203776   ;;  %v2662_v49 = vmov 0.0  }
   0x5   :  { %228 = vmatprep.subr.bf16.mxu0 %v181_v6  ;;  %271 = vmatprep.subr.bf16.mxu1 %v187_v9  ;;  %v2520_v16 = vld [vmem:[%s3491_s0 + $0x78] ss:$52 sps:$4 sm:$0x1f]   ;;  %v2522_v17 = vld [vmem:[%s3491_s0 + $0x7c] ss:$52 sps:$4 sm:$0x1f]  }
   0x6   :  { %229 = vmatpush1.bf16.msra.mxu0 %v178_v12  ;;  %272 = vmatpush1.bf16.msra.mxu1 %v184_v13  ;;  %v2523_v18 = vld [vmem:[%s3491_s0 + $0x80] ss:$52 sps:$4 sm:$0x1f]   ;;  %v2525_v19 = vld [vmem:[%s3491_s0 + $0x84] ss:$52 sps:$4 sm:$0x1f]   ;;  %v193_v21 = vand.u32 %v2522_v17, %v2690_v4  ;;  %v190_v23 = vand.u32 %v2520_v16, %v2690_v4 }
   0x7   :  { %230 = vmatprep.subr.bf16.mxu0 %v2513_v10  ;;  %273 = vmatprep.subr.bf16.mxu1 %v2515_v11  ;;  %v2732_v20 = vld [vmem:[%s3492_s1] sm:$0xff]   ;;  %v199_v22 = vand.u32 %v2525_v19, %v2690_v4  ;;  %v196_v24 = vand.u32 %v2523_v18, %v2690_v4  ;;  %v2528_v25 = vld [vmem:[%s3491_s0 + $0x14] ss:$52 sps:$4 sm:$0xff]   ;;  %v2531_v26 = vld [vmem:[%s3491_s0 + $0x1c] ss:$52 sps:$4 sm:$0xff]   ;;  %vm2663_vm3 = vmmov 0  }
   0x8   :  { %v2526_v27 = vld [vmem:[%s3491_s0 + $0x10] ss:$52 sps:$4 sm:$0xff]   ;;  %v2529_v28 = vld [vmem:[%s3491_s0 + $0x18] ss:$52 sps:$4 sm:$0xff]   ;;  %v2538_v40 = vld [vmem:[%s3491_s0 + $0x20] ss:$52 sps:$4 sm:$0xff]  }
   0x9   :  { %v2532_v29 = vld [vmem:[%s3491_s0 + $0x88] ss:$52 sps:$4 sm:$0x1f]   ;;  %v2534_v30 = vld [vmem:[%s3491_s0 + $0x8c] ss:$52 sps:$4 sm:$0x1f]  }
   0xa   :  { %231 = vmatpush1.bf16.msra.mxu0 %v2517_v14  ;;  %274 = vmatpush1.bf16.msra.mxu1 %v2518_v15  ;;  %v2535_v31 = vld [vmem:[%s3491_s0 + $0x90] ss:$52 sps:$4 sm:$0x1f]   ;;  %v2537_v32 = vld [vmem:[%s3491_s0 + $0x94] ss:$52 sps:$4 sm:$0x1f]   ;;  %v205_v33 = vand.u32 %v2534_v30, %v2690_v4  ;;  %v202_v36 = vand.u32 %v2532_v29, %v2690_v4 }
   0xb   :  { %314 = vmatprep.subr.bf16.mxu0 %v193_v21  ;;  %357 = vmatprep.subr.bf16.mxu1 %v199_v22  ;;  %v211_v34 = vand.u32 %v2537_v32, %v2690_v4  ;;  %v2540_v35 = vld [vmem:[%s3491_s0 + $0x24] ss:$52 sps:$4 sm:$0xff]   ;;  %v208_v37 = vand.u32 %v2535_v31, %v2690_v4  ;;  %v2543_v38 = vld [vmem:[%s3491_s0 + $0x2c] ss:$52 sps:$4 sm:$0xff]   ;;  %v2541_v41 = vld [vmem:[%s3491_s0 + $0x28] ss:$52 sps:$4 sm:$0xff]  }
   0xc   :  { %v2546_v39 = vld [vmem:[%s3491_s0 + $0x13c] ss:$52 sps:$4 sm:$0x1f]   ;;  %v2544_v42 = vld [vmem:[%s3491_s0 + $0x138] ss:$52 sps:$4 sm:$0x1f]  }
   0xd   :  { %2240 = vmatmul.mubr.msk.bf16.vlgmr.msra.gmra.mxu0 %vm169_vm2, %v2732_v20  ;;  %2241 = vmatmul.mubr.msk.bf16.vlgmr.msra.gmra.mxu1 %vm169_vm2, %v2732_v20  ;;  %v2547_v43 = vld [vmem:[%s3491_s0 + $0x98] ss:$52 sps:$4 sm:$0x1f]   ;;  %v667_v44 = vand.u32 %v2546_v39, %v2690_v4  ;;  %v2550_v45 = vld [vmem:[%s3491_s0 + $0xd4] ss:$52 sps:$4 sm:$0xff]   ;;  %v664_v47 = vand.u32 %v2544_v42, %v2690_v4 }
   0xe   :  { %315 = vmatpush1.bf16.msra.mxu0 %v190_v23  ;;  %358 = vmatpush1.bf16.msra.mxu1 %v196_v24  ;;  %v214_v46 = vand.u32 %v2547_v43, %v2690_v4  ;;  %v2554_v48 = vld [vmem:[%s3491_s0 + $0x144] ss:$52 sps:$4 sm:$0x1f]   ;;  %v2557_v50 = vld [vmem:[%s3491_s0 + $0x14c] ss:$52 sps:$4 sm:$0x1f]  }
   0xf   :  { %316 = vmatprep.subr.bf16.mxu0 %v2528_v25  ;;  %359 = vmatprep.subr.bf16.mxu1 %v2531_v26  ;;  %v2548_v51 = vld [vmem:[%s3491_s0 + $0xd0] ss:$52 sps:$4 sm:$0xff]   ;;  %v2552_v53 = vld [vmem:[%s3491_s0 + $0x140] ss:$52 sps:$4 sm:$0x1f]   ;;  %v673_v55 = vand.u32 %v2554_v48, %v2690_v4  ;;  %v679_v56 = vand.u32 %v2557_v50, %v2690_v4 }
  0x10   :  { %334 = vmatprep.mubr.bf16.mxu0 %v2660_v1  ;;  %377 = vmatprep.mubr.bf16.mxu1 %v2660_v1  ;;  %v2551_v52 = vld [vmem:[%s3491_s0 + $0x30] ss:$52 sps:$4 sm:$0xff]   ;;  %v2555_v54 = vld [vmem:[%s3491_s0 + $0x148] ss:$52 sps:$4 sm:$0x1f]   ;;  %v670_v59 = vand.u32 %v2552_v53, %v2690_v4 }
  0x11   :  { %v2560_v57 = vld [vmem:[%s3491_s0 + $0xdc] ss:$52 sps:$4 sm:$0xff]   ;;  %v2563_v58 = vld [vmem:[%s3491_s0 + $0xe4] ss:$52 sps:$4 sm:$0xff]   ;;  %v676_v60 = vand.u32 %v2555_v54, %v2690_v4  ;;  %v2561_v0 = vld [vmem:[%s3491_s0 + $0xe0] ss:$52 sps:$4 sm:$0xff]  }
  0x12   :  { %317 = vmatpush1.bf16.msra.mxu0 %v2526_v27  ;;  %360 = vmatpush1.bf16.msra.mxu1 %v2529_v28  ;;  %v2566_v61 = vld [vmem:[%s3491_s0 + $0x154] ss:$52 sps:$4 sm:$0x1f]   ;;  %v2569_v62 = vld [vmem:[%s3491_s0 + $0x15c] ss:$52 sps:$4 sm:$0x1f]  }
  0x13   :  { %400 = vmatprep.subr.bf16.mxu0 %v205_v33  ;;  %443 = vmatprep.subr.bf16.mxu1 %v211_v34  ;;  %v2558_v63 = vld [vmem:[%s3491_s0 + $0xd8] ss:$52 sps:$4 sm:$0xff]   ;;  %v2564_v2 = vld [vmem:[%s3491_s0 + $0x150] ss:$52 sps:$4 sm:$0x1f]   ;;  %v685_v5 = vand.u32 %v2566_v61, %v2690_v4  ;;  %v691_v6 = vand.u32 %v2569_v62, %v2690_v4 }
  0x14   :  { %v2567_v3 = vld [vmem:[%s3491_s0 + $0x158] ss:$52 sps:$4 sm:$0x1f]   ;;  %v682_v8 = vand.u32 %v2564_v2, %v2690_v4  ;;  %v2575_v10 = vld [vmem:[%s3491_s0 + $0xf4] ss:$52 sps:$4 sm:$0xff]   ;;  %v2051_v54 = vld [vmem:[%s3493_s2] sm:$0xff] }
  0x15   :  { %2242 = vmatmul.mubr.msk.bf16.vlgmr.msra.gmra.mxu0 %vm169_vm2, %v2732_v20  ;;  %2243 = vmatmul.mubr.msk.bf16.vlgmr.msra.gmra.mxu1 %vm169_vm2, %v2732_v20  ;;  %v2572_v7 = vld [vmem:[%s3491_s0 + $0xec] ss:$52 sps:$4 sm:$0xff]   ;;  %v688_v9 = vand.u32 %v2567_v3, %v2690_v4  ;;  %v2578_v11 = vld [vmem:[%s3491_s0 + $0x164] ss:$52 sps:$4 sm:$0x1f]  }
  0x16   :  { %401 = vmatpush1.bf16.msra.mxu0 %v202_v36  ;;  %444 = vmatpush1.bf16.msra.mxu1 %v208_v37  ;;  %v2570_v12 = vld [vmem:[%s3491_s0 + $0xe8] ss:$52 sps:$4 sm:$0xff]   ;;  %v2573_v13 = vld [vmem:[%s3491_s0 + $0xf0] ss:$52 sps:$4 sm:$0xff]   ;;  %v697_v16 = vand.u32 %v2578_v11, %v2690_v4  ;;  %v2580_v23 = vld [vmem:[%s3491_s0 + $0xf8] ss:$52 sps:$4 sm:$0xff]  }
  0x17   :  { %402 = vmatprep.subr.bf16.mxu0 %v2540_v35  ;;  %445 = vmatprep.subr.bf16.mxu1 %v2543_v38  ;;  %v2576_v14 = vld [vmem:[%s3491_s0 + $0x160] ss:$52 sps:$4 sm:$0x1f]   ;;  %v2579_v15 = vld [vmem:[%s3491_s0 + $0x168] ss:$52 sps:$4 sm:$0x1f]  }
  0x18   :  { %420 = vmatprep.mubr.bf16.mxu0 %v2660_v1  ;;  %463 = vmatprep.mubr.bf16.mxu1 %v2660_v1  ;;  %v694_v17 = vand.u32 %v2576_v14, %v2690_v4  ;;  %v700_v18 = vand.u32 %v2579_v15, %v2690_v4  ;;  %v2582_v19 = vld [vmem:[%s3491_s0 + $0xfc] ss:$52 sps:$4 sm:$0xff]   ;;  %v2586_v21 = vld [vmem:[%s3491_s0 + $0x20c] ss:$52 sps:$4 sm:$0x1f]  }
  0x19   :  { %v2589_v22 = vld [vmem:[%s3491_s0 + $0x214] ss:$52 sps:$4 sm:$0x1f]   ;;  %v2587_v26 = vld [vmem:[%s3491_s0 + $0x210] ss:$52 sps:$4 sm:$0x1f]   ;;  %v1179_v27 = vand.u32 %v2586_v21, %v2690_v4  ;;  %2055 = vperm.xlu0 %2506, %v2051_v54  }
  0x1a   :  { %403 = vmatpush1.bf16.msra.mxu0 %v2538_v40  ;;  %446 = vmatpush1.bf16.msra.mxu1 %v2541_v41  ;;  %v2584_v24 = vld [vmem:[%s3491_s0 + $0x208] ss:$52 sps:$4 sm:$0x1f]   ;;  %v2583_v25 = vld [vmem:[%s3491_s0 + $0x100] ss:$52 sps:$4 sm:$0xff]   ;;  %v1185_v28 = vand.u32 %v2589_v22, %v2690_v4  ;;  %v1182_v32 = vand.u32 %v2587_v26, %v2690_v4 }
  0x1b   :  { %2470 = vmatprep.subr.bf16.mxu0 %v2662_v49  ;;  %714 = vmatprep.subr.bf16.mxu1 %v667_v44  ;;  %v2592_v29 = vld [vmem:[%s3491_s0 + $0x1a4] ss:$52 sps:$4 sm:$0xff]   ;;  %v2598_v30 = vld [vmem:[%s3491_s0 + $0x21c] ss:$52 sps:$4 sm:$0x1f]   ;;  %v1176_v31 = vand.u32 %v2584_v24, %v2690_v4 }
  0x1c   :  { %v2601_v33 = vld [vmem:[%s3491_s0 + $0x224] ss:$52 sps:$4 sm:$0x1f]   ;;  %v2595_v34 = vld [vmem:[%s3491_s0 + $0x1ac] ss:$52 sps:$4 sm:$0xff]   ;;  %v1191_v39 = vand.u32 %v2598_v30, %v2690_v4 }
  0x1d   :  { %2244 = vmatmul.mubr.msk.bf16.vlgmr.msra.gmra.mxu0 %vm169_vm2, %v2732_v20  ;;  %2245 = vmatmul.mubr.msk.bf16.vlgmr.msra.gmra.mxu1 %vm169_vm2, %v2732_v20  ;;  %v2590_v35 = vld [vmem:[%s3491_s0 + $0x1a0] ss:$52 sps:$4 sm:$0xff]   ;;  %v2593_v36 = vld [vmem:[%s3491_s0 + $0x1a8] ss:$52 sps:$4 sm:$0xff]   ;;  %v1197_v40 = vand.u32 %v2601_v33, %v2690_v4  ;;  %v2605_v50 = vld [vmem:[%s3491_s0 + $0x1b8] ss:$52 sps:$4 sm:$0xff]  }
  0x1e   :  { %2471 = vmatpush3.bf16.msra.mxu0 %v214_v46  ;;  %715 = vmatpush1.bf16.msra.mxu1 %v664_v47  ;;  %v2596_v37 = vld [vmem:[%s3491_s0 + $0x218] ss:$52 sps:$4 sm:$0x1f]   ;;  %v2599_v38 = vld [vmem:[%s3491_s0 + $0x220] ss:$52 sps:$4 sm:$0x1f]  }
  0x1f   :  { %2472 = vmatprep.subr.bf16.mxu0 %v2662_v49  ;;  %716 = vmatprep.subr.bf16.mxu1 %v2550_v45  ;;  %v2604_v41 = vld [vmem:[%s3491_s0 + $0x1b4] ss:$52 sps:$4 sm:$0xff]   ;;  %v1188_v42 = vand.u32 %v2596_v37, %v2690_v4  ;;  %v1194_v43 = vand.u32 %v2599_v38, %v2690_v4  ;;  %v2607_v44 = vld [vmem:[%s3491_s0 + $0x1bc] ss:$52 sps:$4 sm:$0xff]   ;;  %v2634_v22 = vld [vmem:[%s3491_s0 + $0x278] ss:$52 sps:$4 sm:$0xff]  }
  0x20   :  { %2474 = vmatprep.mubr.msk.bf16.mxu0 %vm2663_vm3, %v2662_v49  ;;  %734 = vmatprep.mubr.bf16.mxu1 %v2660_v1  ;;  %v2610_v45 = vld [vmem:[%s3491_s0 + $0x22c] ss:$52 sps:$4 sm:$0x1f]   ;;  %v2613_v46 = vld [vmem:[%s3491_s0 + $0x234] ss:$52 sps:$4 sm:$0x1f]  }
  0x21   :  { %v2602_v47 = vld [vmem:[%s3491_s0 + $0x1b0] ss:$52 sps:$4 sm:$0xff]   ;;  %v2608_v48 = vld [vmem:[%s3491_s0 + $0x228] ss:$52 sps:$4 sm:$0x1f]   ;;  %v1209_v53 = vand.u32 %v2613_v46, %v2690_v4 }
  0x22   :  { %2473 = vmatpush3.bf16.msra.mxu0 %v2551_v52  ;;  %717 = vmatpush1.bf16.msra.mxu1 %v2548_v51  ;;  %v2611_v51 = vld [vmem:[%s3491_s0 + $0x230] ss:$52 sps:$4 sm:$0x1f]   ;;  %v1203_v52 = vand.u32 %v2610_v45, %v2690_v4  ;;  %v2620_v61 = vld [vmem:[%s3491_s0 + $0x2d8] ss:$52 sps:$4 sm:$0x1f]  }
  0x23   :  { %757 = vmatprep.subr.bf16.mxu0 %v673_v55  ;;  %800 = vmatprep.subr.bf16.mxu1 %v679_v56  ;;  %v1200_v55 = vand.u32 %v2608_v48, %v2690_v4  ;;  %v1206_v56 = vand.u32 %v2611_v51, %v2690_v4  ;;  %v2617_v62 = vld [vmem:[%s3491_s0 + $0x1c8] ss:$52 sps:$4 sm:$0xff]   ;;  %v2628_v11 = vld [vmem:[%s3491_s0 + $0x2e0] ss:$52 sps:$4 sm:$0x1f]  }
  0x24   :  { %v1694_v15 = vand.u32 %v2628_v11, %v2690_v4  ;;  %v2645_v21 = vld [vmem:[%s3491_s0 + $0x2fc] ss:$52 sps:$4 sm:$0x1f]   ;;  %v2648_v30 = vld [vmem:[%s3491_s0 + $0x28c] ss:$52 sps:$4 sm:$0xff]  }
  0x25   :  { %2475 = vmatmul.mubr.msk.bf16.vlgmr.msra.gmra.mxu0 %vm169_vm2, %v2732_v20  ;;  %2301 = vmatmul.mubr.msk.bf16.vlgmr.msra.gmra.mxu1 %vm169_vm2, %v2732_v20  ;;  %v2640_v24 = vld [vmem:[%s3491_s0 + $0x2f0] ss:$52 sps:$4 sm:$0x1f]   ;;  %v2646_v33 = vld [vmem:[%s3491_s0 + $0x288] ss:$52 sps:$4 sm:$0xff]  }
  0x26   :  { %758 = vmatpush1.bf16.msra.mxu0 %v670_v59  ;;  %801 = vmatpush1.bf16.msra.mxu1 %v676_v60  ;;  %v2622_v59 = vld [vmem:[%s3491_s0 + $0x2dc] ss:$52 sps:$4 sm:$0x1f]   ;;  %v2614_v60 = vld [vmem:[%s3491_s0 + $0x1c0] ss:$52 sps:$4 sm:$0xff]  }
  0x27   :  { %759 = vmatprep.subr.bf16.mxu0 %v2560_v57  ;;  %802 = vmatprep.subr.bf16.mxu1 %v2563_v58  ;;  %v2616_v57 = vld [vmem:[%s3491_s0 + $0x1c4] ss:$52 sps:$4 sm:$0xff]   ;;  %v2619_v58 = vld [vmem:[%s3491_s0 + $0x1cc] ss:$52 sps:$4 sm:$0xff]   ;;  %v1691_v2 = vand.u32 %v2622_v59, %v2690_v4 }
  0x28   :  { %777 = vmatprep.mubr.bf16.mxu0 %v2660_v1  ;;  %820 = vmatprep.mubr.bf16.mxu1 %v2660_v1 }
  0x2a   :  { %760 = vmatpush1.bf16.msra.mxu0 %v2558_v63  ;;  %803 = vmatpush1.bf16.msra.mxu1 %v2561_v0  ;;  %v2623_v63 = vld [vmem:[%s3491_s0 + $0x238] ss:$52 sps:$4 sm:$0x1f]  }
  0x2b   :  { %843 = vmatprep.subr.bf16.mxu0 %v685_v5  ;;  %886 = vmatprep.subr.bf16.mxu1 %v691_v6  ;;  %v2052_v0 = vld [vmem:[%s3493_s2 + $0x8] sm:$0xff]  ;;  %v1212_v3 = vand.u32 %v2623_v63, %v2690_v4  ;;  %v1688_v5 = vand.u32 %v2620_v61, %v2690_v4 }
  0x2c   :  { %2060 = vperm.xlu0 %2506, %v2052_v0   ;;  %v2626_v6 = vld [vmem:[%s3491_s0 + $0x274] ss:$52 sps:$4 sm:$0xff]  }
  0x2d   :  { %2302 = vmatmul.mubr.msk.bf16.vlgmr.msra.gmra.mxu0 %vm169_vm2, %v2732_v20  ;;  %2303 = vmatmul.mubr.msk.bf16.vlgmr.msra.gmra.mxu1 %vm169_vm2, %v2732_v20 }
  0x2e   :  { %844 = vmatpush1.bf16.msra.mxu0 %v682_v8  ;;  %887 = vmatpush1.bf16.msra.mxu1 %v688_v9  ;;  %v2633_v8 = vld [vmem:[%s3491_s0 + $0x2ec] ss:$52 sps:$4 sm:$0x1f]   ;;  %v2624_v9 = vld [vmem:[%s3491_s0 + $0x270] ss:$52 sps:$4 sm:$0xff]  }
  0x2f   :  { %845 = vmatprep.subr.bf16.mxu0 %v2572_v7  ;;  %888 = vmatprep.subr.bf16.mxu1 %v2575_v10  ;;  %v2630_v7 = vld [vmem:[%s3491_s0 + $0x2e4] ss:$52 sps:$4 sm:$0x1f]   ;;  %v1703_v14 = vand.u32 %v2633_v8, %v2690_v4 }
  0x30   :  { %863 = vmatprep.mubr.bf16.mxu0 %v2660_v1  ;;  %906 = vmatprep.mubr.bf16.mxu1 %v2660_v1  ;;  %v2627_v10 = vld [vmem:[%s3491_s0 + $0x1d0] ss:$52 sps:$4 sm:$0xff]  }
  0x32   :  { %846 = vmatpush1.bf16.msra.mxu0 %v2570_v12  ;;  %889 = vmatpush1.bf16.msra.mxu1 %v2573_v13  ;;  %v2631_v12 = vld [vmem:[%s3491_s0 + $0x2e8] ss:$52 sps:$4 sm:$0x1f]   ;;  %v1697_v13 = vand.u32 %v2630_v7, %v2690_v4 }
  0x33   :  { %929 = vmatprep.subr.bf16.mxu0 %v697_v16  ;;  %2478 = vmatprep.subr.bf16.mxu1 %v2662_v49  ;;  %v1700_v16 = vand.u32 %v2631_v12, %v2690_v4 }
  0x35   :  { %2304 = vmatmul.mubr.msk.bf16.vlgmr.msra.gmra.mxu0 %vm169_vm2, %v2732_v20  ;;  %2305 = vmatmul.mubr.msk.bf16.vlgmr.msra.gmra.mxu1 %vm169_vm2, %v2732_v20 }
  0x36   :  { %930 = vmatpush1.bf16.msra.mxu0 %v694_v17  ;;  %2479 = vmatpush3.bf16.msra.mxu1 %v700_v18  ;;  %v2636_v17 = vld [vmem:[%s3491_s0 + $0x27c] ss:$52 sps:$4 sm:$0xff]   ;;  %v2639_v18 = vld [vmem:[%s3491_s0 + $0x284] ss:$52 sps:$4 sm:$0xff]  }
  0x37   :  { %931 = vmatprep.subr.bf16.mxu0 %v2582_v19  ;;  %2480 = vmatprep.subr.bf16.mxu1 %v2662_v49  ;;  %v2642_v19 = vld [vmem:[%s3491_s0 + $0x2f4] ss:$52 sps:$4 sm:$0x1f]  }
  0x38   :  { %949 = vmatprep.mubr.bf16.mxu0 %v2660_v1  ;;  %2482 = vmatprep.mubr.msk.bf16.mxu1 %vm2663_vm3, %v2662_v49  ;;  %v1709_v26 = vand.u32 %v2642_v19, %v2690_v4 }
  0x3a   :  { %932 = vmatpush1.bf16.msra.mxu0 %v2580_v23  ;;  %2481 = vmatpush3.bf16.msra.mxu1 %v2583_v25  ;;  %v2637_v23 = vld [vmem:[%s3491_s0 + $0x280] ss:$52 sps:$4 sm:$0xff]   ;;  %v2643_v25 = vld [vmem:[%s3491_s0 + $0x2f8] ss:$52 sps:$4 sm:$0x1f]  }
  0x3b   :  { %1226 = vmatprep.subr.bf16.mxu0 %v1179_v27  ;;  %1269 = vmatprep.subr.bf16.mxu1 %v1185_v28  ;;  %v1715_v27 = vand.u32 %v2645_v21, %v2690_v4  ;;  %v1706_v28 = vand.u32 %v2640_v24, %v2690_v4 }
  0x3d   :  { %2306 = vmatmul.mubr.msk.bf16.vlgmr.msra.gmra.mxu0 %vm169_vm2, %v2732_v20  ;;  %2483 = vmatmul.mubr.msk.bf16.vlgmr.msra.gmra.mxu1 %vm169_vm2, %v2732_v20 }
  0x3e   :  { %1227 = vmatpush1.bf16.msra.mxu0 %v1176_v31  ;;  %1270 = vmatpush1.bf16.msra.mxu1 %v1182_v32  ;;  %v2651_v31 = vld [vmem:[%s3491_s0 + $0x294] ss:$52 sps:$4 sm:$0xff]   ;;  %v2654_v32 = vld [vmem:[%s3491_s0 + $0x304] ss:$52 sps:$4 sm:$0x1f]  }
  0x3f   :  { %1228 = vmatprep.subr.bf16.mxu0 %v2592_v29  ;;  %1271 = vmatprep.subr.bf16.mxu1 %v2595_v34  ;;  %v1712_v29 = vand.u32 %v2643_v25, %v2690_v4  ;;  %v2649_v34 = vld [vmem:[%s3491_s0 + $0x290] ss:$52 sps:$4 sm:$0xff]   ;;  %v1721_v37 = vand.u32 %v2654_v32, %v2690_v4 }
  0x40   :  { %1246 = vmatprep.mubr.bf16.mxu0 %v2660_v1  ;;  %1289 = vmatprep.mubr.bf16.mxu1 %v2660_v1 }
  0x42   :  { %1229 = vmatpush1.bf16.msra.mxu0 %v2590_v35  ;;  %1272 = vmatpush1.bf16.msra.mxu1 %v2593_v36  ;;  %v2652_v35 = vld [vmem:[%s3491_s0 + $0x300] ss:$52 sps:$4 sm:$0x1f]   ;;  %v2655_v36 = vld [vmem:[%s3491_s0 + $0x308] ss:$52 sps:$4 sm:$0x1f]  }
  0x43   :  { %1312 = vmatprep.subr.bf16.mxu0 %v1191_v39  ;;  %1355 = vmatprep.subr.bf16.mxu1 %v1197_v40  ;;  %v1718_v38 = vand.u32 %v2652_v35, %v2690_v4  ;;  %v1724_v39 = vand.u32 %v2655_v36, %v2690_v4  ;;  %v2658_v40 = vld [vmem:[%s3491_s0 + $0x29c] ss:$52 sps:$4 sm:$0xff]   ;;  %v2659_v4 = vld [vmem:[%s3491_s0 + $0x2a0] ss:$52 sps:$4 sm:$0xff]  }
  0x45   :  { %2362 = vmatmul.mubr.msk.bf16.vlgmr.msra.gmra.mxu0 %vm169_vm2, %v2732_v20  ;;  %2363 = vmatmul.mubr.msk.bf16.vlgmr.msra.gmra.mxu1 %vm169_vm2, %v2732_v20 }
  0x46   :  { %1313 = vmatpush1.bf16.msra.mxu0 %v1188_v42  ;;  %1356 = vmatpush1.bf16.msra.mxu1 %v1194_v43 }
  0x47   :  { %1314 = vmatprep.subr.bf16.mxu0 %v2604_v41  ;;  %1357 = vmatprep.subr.bf16.mxu1 %v2607_v44  ;;  %v2656_v41 = vld [vmem:[%s3491_s0 + $0x298] ss:$52 sps:$4 sm:$0xff]  }
  0x48   :  { %1332 = vmatprep.mubr.bf16.mxu0 %v2660_v1  ;;  %1375 = vmatprep.mubr.bf16.mxu1 %v2660_v1 }
  0x4a   :  { %1315 = vmatpush1.bf16.msra.mxu0 %v2602_v47  ;;  %1358 = vmatpush1.bf16.msra.mxu1 %v2605_v50 }
  0x4b   :  { %1398 = vmatprep.subr.bf16.mxu0 %v1203_v52  ;;  %1441 = vmatprep.subr.bf16.mxu1 %v1209_v53 }
  0x4d   :  { %2364 = vmatmul.mubr.msk.bf16.vlgmr.msra.gmra.mxu0 %vm169_vm2, %v2732_v20  ;;  %2365 = vmatmul.mubr.msk.bf16.vlgmr.msra.gmra.mxu1 %vm169_vm2, %v2732_v20 }
  0x4e   :  { %1399 = vmatpush1.bf16.msra.mxu0 %v1200_v55  ;;  %1442 = vmatpush1.bf16.msra.mxu1 %v1206_v56 }
  0x4f   :  { %1400 = vmatprep.subr.bf16.mxu0 %v2616_v57  ;;  %1443 = vmatprep.subr.bf16.mxu1 %v2619_v58 }
  0x50   :  { %1418 = vmatprep.mubr.bf16.mxu0 %v2660_v1  ;;  %1461 = vmatprep.mubr.bf16.mxu1 %v2660_v1 }
  0x52   :  { %1401 = vmatpush1.bf16.msra.mxu0 %v2614_v60  ;;  %1444 = vmatpush1.bf16.msra.mxu1 %v2617_v62 }
  0x53   :  { %2486 = vmatprep.subr.bf16.mxu0 %v2662_v49  ;;  %1738 = vmatprep.subr.bf16.mxu1 %v1691_v2 }
  0x55   :  { %2366 = vmatmul.mubr.msk.bf16.vlgmr.msra.gmra.mxu0 %vm169_vm2, %v2732_v20  ;;  %2367 = vmatmul.mubr.msk.bf16.vlgmr.msra.gmra.mxu1 %vm169_vm2, %v2732_v20 }
  0x56   :  { %2487 = vmatpush3.bf16.msra.mxu0 %v1212_v3  ;;  %1739 = vmatpush1.bf16.msra.mxu1 %v1688_v5 }
  0x57   :  { %2488 = vmatprep.subr.bf16.mxu0 %v2662_v49  ;;  %1740 = vmatprep.subr.bf16.mxu1 %v2626_v6 }
  0x58   :  { %2490 = vmatprep.mubr.msk.bf16.mxu0 %vm2663_vm3, %v2662_v49  ;;  %1758 = vmatprep.mubr.bf16.mxu1 %v2660_v1 }
  0x5a   :  { %2489 = vmatpush3.bf16.msra.mxu0 %v2627_v10  ;;  %1741 = vmatpush1.bf16.msra.mxu1 %v2624_v9 }
  0x5b   :  { %1781 = vmatprep.subr.bf16.mxu0 %v1697_v13  ;;  %1824 = vmatprep.subr.bf16.mxu1 %v1703_v14 }
  0x5d   :  { %2491 = vmatmul.mubr.msk.bf16.vlgmr.msra.gmra.mxu0 %vm169_vm2, %v2732_v20  ;;  %2423 = vmatmul.mubr.msk.bf16.vlgmr.msra.gmra.mxu1 %vm169_vm2, %v2732_v20 }
  0x5e   :  { %1782 = vmatpush1.bf16.msra.mxu0 %v1694_v15  ;;  %1825 = vmatpush1.bf16.msra.mxu1 %v1700_v16 }
  0x5f   :  { %1783 = vmatprep.subr.bf16.mxu0 %v2636_v17  ;;  %1826 = vmatprep.subr.bf16.mxu1 %v2639_v18 }
  0x60   :  { %1801 = vmatprep.mubr.bf16.mxu0 %v2660_v1  ;;  %1844 = vmatprep.mubr.bf16.mxu1 %v2660_v1 }
  0x62   :  { %1784 = vmatpush1.bf16.msra.mxu0 %v2634_v22  ;;  %1827 = vmatpush1.bf16.msra.mxu1 %v2637_v23 }
  0x63   :  { %1867 = vmatprep.subr.bf16.mxu0 %v1709_v26  ;;  %1910 = vmatprep.subr.bf16.mxu1 %v1715_v27 }
  0x65   :  { %2424 = vmatmul.mubr.msk.bf16.vlgmr.msra.gmra.mxu0 %vm169_vm2, %v2732_v20  ;;  %2425 = vmatmul.mubr.msk.bf16.vlgmr.msra.gmra.mxu1 %vm169_vm2, %v2732_v20 }
  0x66   :  { %1868 = vmatpush1.bf16.msra.mxu0 %v1706_v28  ;;  %1911 = vmatpush1.bf16.msra.mxu1 %v1712_v29 }
  0x67   :  { %1869 = vmatprep.subr.bf16.mxu0 %v2648_v30  ;;  %1912 = vmatprep.subr.bf16.mxu1 %v2651_v31 }
  0x68   :  { %1887 = vmatprep.mubr.bf16.mxu0 %v2660_v1  ;;  %1930 = vmatprep.mubr.bf16.mxu1 %v2660_v1 }
  0x6a   :  { %1870 = vmatpush1.bf16.msra.mxu0 %v2646_v33  ;;  %1913 = vmatpush1.bf16.msra.mxu1 %v2649_v34 }
  0x6b   :  { %1953 = vmatprep.subr.bf16.mxu0 %v1721_v37  ;;  %2494 = vmatprep.subr.bf16.mxu1 %v2662_v49 }
  0x6d   :  { %2426 = vmatmul.mubr.msk.bf16.vlgmr.msra.gmra.mxu0 %vm169_vm2, %v2732_v20  ;;  %2427 = vmatmul.mubr.msk.bf16.vlgmr.msra.gmra.mxu1 %vm169_vm2, %v2732_v20 }
  0x6e   :  { %1954 = vmatpush1.bf16.msra.mxu0 %v1718_v38  ;;  %2495 = vmatpush3.bf16.msra.mxu1 %v1724_v39 }
  0x6f   :  { %1955 = vmatprep.subr.bf16.mxu0 %v2658_v40  ;;  %2496 = vmatprep.subr.bf16.mxu1 %v2662_v49 }
  0x70   :  { %1973 = vmatprep.mubr.bf16.mxu0 %v2660_v1  ;;  %2498 = vmatprep.mubr.msk.bf16.mxu1 %vm2663_vm3, %v2662_v49 }
  0x72   :  { %1956 = vmatpush1.bf16.msra.mxu0 %v2656_v41  ;;  %2497 = vmatpush3.bf16.msra.mxu1 %v2659_v4 }
  0x75   :  { %2428 = vmatmul.mubr.msk.bf16.vlgmr.msra.gmra.mxu0 %vm169_vm2, %v2732_v20  ;;  %2499 = vmatmul.mubr.msk.bf16.vlgmr.msra.gmra.mxu1 %vm169_vm2, %v2732_v20 }
  0xcd   :  { %v3158_v42 = vpop.f32.mrf.mxu0  ;;  %v3160_v43 = vpop.f32.mrf.mxu1 }
  0xcf   :  { %v3162_v44 = vpop.f32.mrf.mxu0  ;;  %v3164_v45 = vpop.f32.mrf.mxu1 }
  0xd1   :  { %v3166_v1 = vpop.f32.mrf.mxu0  ;;  %v3168_v46 = vpop.f32.mrf.mxu1 }
  0xd3   :  { %v3170_v49 = vpop.f32.mrf.mxu0  ;;  %v3172_v47 = vpop.f32.mrf.mxu1 }
  0xd5   :  { %v3174_v48 = vpop.f32.mrf.mxu0  ;;  %v3176_v50 = vpop.f32.mrf.mxu1 }
  0xd7   :  { %v3178_v20 = vpop.f32.mrf.mxu0  ;;  %v3180_v51 = vpop.f32.mrf.mxu1 }
  0xd9   :  { %v3182_v52 = vpop.f32.mrf.mxu0  ;;  %v3184_v53 = vpop.f32.mrf.mxu1 }
  0xdb   :  { %v3186_v54 = vpop.f32.mrf.mxu0  ;;  %v3188_v55 = vpop.f32.mrf.mxu1 }
  0xdd   :  { %v3190_v56 = vpop.f32.mrf.mxu0  ;;  %v3192_v57 = vpop.f32.mrf.mxu1 }
  0xdf   :  { %v3194_v58 = vpop.f32.mrf.mxu0  ;;  %v3196_v59 = vpop.f32.mrf.mxu1 }
  0xe1   :  { %v3198_v60 = vpop.f32.mrf.mxu0  ;;  %v3200_v61 = vpop.f32.mrf.mxu1 }
  0xe3   :  { %v3202_v62 = vpop.f32.mrf.mxu0  ;;  %v3204_v63 = vpop.f32.mrf.mxu1 }
  0xe4   :  { %3498 = vst [vmem:[#allocation2_spill] sm:$0xff] %v3204_v63 }
  0xe5   :  { %v3206_v0 = vpop.f32.mrf.mxu0  ;;  %v3208_v2 = vpop.f32.mrf.mxu1 }
  0xe7   :  { %v2476_v3 = vpop.f32.mrf.mxu0  ;;  %v3210_v5 = vpop.f32.mrf.mxu1 }
  0xe9   :  { %v3212_v6 = vpop.f32.mrf.mxu0  ;;  %v3214_v7 = vpop.f32.mrf.mxu1 }
  0xea   :  { %3499 = vst [vmem:[#allocation3_spill] sm:$0xff] %v3212_v6 }
  0xeb   :  { %v2477_v8 = vpop.f32.mrf.mxu0  ;;  %v3216_v9 = vpop.f32.mrf.mxu1 }
  0xed   :  { %v3218_v10 = vpop.f32.mrf.mxu0  ;;  %v3220_v11 = vpop.f32.mrf.mxu1 }
  0xef   :  { %v3222_v12 = vpop.f32.mrf.mxu0  ;;  %v3224_v13 = vpop.f32.mrf.mxu1 }
  0xf1   :  { %v3226_v14 = vpop.f32.mrf.mxu0  ;;  %v3228_v15 = vpop.f32.mrf.mxu1 }
  0xf3   :  { %v3230_v16 = vpop.f32.mrf.mxu0  ;;  %v3232_v17 = vpop.f32.mrf.mxu1 }
  0xf5   :  { %v3234_v18 = vpop.f32.mrf.mxu0  ;;  %v3236_v19 = vpop.f32.mrf.mxu1 }
  0xf7   :  { %v3238_v21 = vpop.f32.mrf.mxu0  ;;  %v3240_v22 = vpop.f32.mrf.mxu1 }
  0xf9   :  { %v3242_v23 = vpop.f32.mrf.mxu0  ;;  %v3244_v24 = vpop.f32.mrf.mxu1 }
  0xfb   :  { %v3246_v25 = vpop.f32.mrf.mxu0  ;;  %v3248_v26 = vpop.f32.mrf.mxu1 }
  0xfd   :  { %v3250_v27 = vpop.f32.mrf.mxu0  ;;  %v3252_v28 = vpop.f32.mrf.mxu1 }
  0xff   :  { %v3254_v29 = vpop.f32.mrf.mxu0  ;;  %v2484_v30 = vpop.f32.mrf.mxu1 }
 0x101   :  { %v3256_v31 = vpop.f32.mrf.mxu0  ;;  %v3258_v32 = vpop.f32.mrf.mxu1 }
 0x103   :  { %v3260_v33 = vpop.f32.mrf.mxu0  ;;  %v2485_v34 = vpop.f32.mrf.mxu1 }
 0x104   :  { %3500 = vst [vmem:[#allocation4_spill] sm:$0xff] %v3260_v33 }
 0x105   :  { %v1248_v35 = vpop.f32.mrf.mxu0  ;;  %v3262_v36 = vpop.f32.mrf.mxu1 }
 0x106   :  { %3501 = vst [vmem:[#allocation5_spill] sm:$0xff] %v3262_v36 }
 0x107   :  { %v1250_v37 = vpop.f32.mrf.mxu0  ;;  %v3264_v38 = vpop.f32.mrf.mxu1 }
 0x108   :  { %3502 = vst [vmem:[#allocation6_spill] sm:$0xff] %v3264_v38 }
 0x109   :  { %v1252_v39 = vpop.f32.mrf.mxu0  ;;  %v3266_v40 = vpop.f32.mrf.mxu1 }
 0x10a   :  { %3503 = vst [vmem:[#allocation7_spill] sm:$0xff] %v3266_v40 }
 0x10b   :  { %v1254_v41 = vpop.f32.mrf.mxu0  ;;  %v3268_v4 = vpop.f32.mrf.mxu1 }
 0x10c   :  { %3504 = vst [vmem:[#allocation8_spill] sm:$0xff] %v3268_v4 }
 0x10d   :  { %v3270_v3 = vpop.f32.mrf.mxu0  ;;  %v3272_v8 = vpop.f32.mrf.mxu1 }
 0x10e   :  { %3505 = vst [vmem:[#allocation9_spill] sm:$0xff] %v3270_v3  ;;  %3506 = vst [vmem:[#allocation10_spill] sm:$0xff] %v3272_v8 }
 0x10f   :  { %v3274_v30 = vpop.f32.mrf.mxu0  ;;  %v3276_v63 = vpop.f32.mrf.mxu1 }
 0x110   :  { %3507 = vst [vmem:[#allocation11_spill] sm:$0xff] %v3274_v30 }
 0x111   :  { %v3278_v34 = vpop.f32.mrf.mxu0  ;;  %v3280_v36 = vpop.f32.mrf.mxu1 }
 0x112   :  { %3508 = vst [vmem:[#allocation12_spill] sm:$0xff] %v3278_v34  ;;  %3509 = vst [vmem:[#allocation13_spill] sm:$0xff] %v3280_v36  ;;  %v1001_v34 = vmax.f32 %v3158_v42, %v3208_v2  ;;  %v3300_v36 = vpop.permute.xlu0 %2055  ;;  %v1005_v42 = vmax.f32 %v3174_v48, %v3220_v11  ;;  %v1004_v2 = vmax.f32 %v3164_v45, %v3222_v12 }
 0x113   :  { %v3282_v33 = vpop.f32.mrf.mxu0  ;;  %v3284_v38 = vpop.f32.mrf.mxu1  ;;  %v1007_v45 = vmax.f32 %v3176_v50, %v3234_v18  ;;  %v1022_v11 = vmax.f32 %v3198_v60, %v3244_v24  ;;  %v1021_v50 = vmax.f32 %v3188_v55, %v3246_v25 }
 0x114   :  { %3510 = vst [vmem:[#allocation14_spill] sm:$0xff] %v3284_v38  ;;  %v1002_v38 = vmax.f32 %v3162_v44, %v3210_v5  ;;  %v1006_v44 = vmax.f32 %v3178_v20, %v3224_v13  ;;  %v1017_v5 = vmax.f32 %v3172_v47, %v3230_v16  ;;  %v1009_v20 = vmax.f32 %v3190_v56, %v3236_v19 }
 0x115   :  { %v3286_v40 = vpop.f32.mrf.mxu0  ;;  %v3288_v6 = vpop.f32.mrf.mxu1  ;;  %v1010_v47 = vmax.f32 %v3194_v58, %v3240_v22  ;;  %v3524_v18 = vld [vmem:[#allocation10_spill] sm:$0xff] }
 0x116   :  { %3511 = vst [vmem:[#allocation15_spill] sm:$0xff] %v3286_v40  ;;  %v1014_v40 = vmax.f32 %v3166_v1, %v3214_v7  ;;  %v1513_v1 = vmax.f32 %v1001_v34, %v1248_v35  ;;  %v1019_v7 = vmax.f32 %v3186_v54, %v3232_v17  ;;  %v1020_v54 = vmax.f32 %v3184_v53, %v3242_v23  ;;  %v3345_v16 = vpop.permute.xlu0 %2060 }
 0x117   :  { %v3290_v4 = vpop.f32.mrf.mxu0  ;;  %v3292_v3 = vpop.f32.mrf.mxu1  ;;  %v1011_v53 = vmax.f32 %v3192_v57, %v3250_v27  ;;  %v3517_v57 = vld [vmem:[#allocation4_spill] sm:$0xff]  ;;  %v3518_v27 = vld [vmem:[#allocation2_spill] sm:$0xff] }
 0x118   :  { %3512 = vst [vmem:[#allocation16_spill] sm:$0xff] %v3290_v4  ;;  %3513 = vst [vmem:[#allocation17_spill] sm:$0xff] %v3292_v3  ;;  %v1015_v4 = vmax.f32 %v3170_v49, %v3216_v9  ;;  %v1003_v3 = vmax.f32 %v3160_v43, %v3218_v10  ;;  %v1016_v49 = vmax.f32 %v3168_v46, %v3226_v14 }
 0x119   :  { %v3294_v8 = vpop.f32.mrf.mxu0  ;;  %v3296_v30 = vpop.f32.mrf.mxu1  ;;  %v1018_v43 = vmax.f32 %v3182_v52, %v3228_v15  ;;  %v1514_v10 = vmax.f32 %v1002_v38, %v1250_v37  ;;  %v1008_v52 = vmax.f32 %v3180_v51, %v3238_v21  ;;  %v1526_v56 = vmax.f32 %v1014_v40, %v1252_v39  ;;  %v3516_v37 = vld [vmem:[#allocation3_spill] sm:$0xff]  ;;  %v3519_v40 = vld [vmem:[#allocation5_spill] sm:$0xff] }
 0x11a   :  { %3514 = vst [vmem:[#allocation18_spill] sm:$0xff] %v3294_v8  ;;  %3515 = vst [vmem:[#allocation19_spill] sm:$0xff] %v3296_v30  ;;  %v1527_v23 = vmax.f32 %v1015_v4, %v1254_v41  ;;  %v1515_v34 = vmax.f32 %v1003_v3, %v3519_v40  ;;  %v3521_v4 = vld [vmem:[#allocation7_spill] sm:$0xff]  ;;  %v3523_v21 = vld [vmem:[#allocation9_spill] sm:$0xff]  ;;  %v3371_v51 = vmax.f32 %v1007_v45, %v3524_v18 }
 0x11b   :  { %v3310_v8 = vpop.f32.mrf.mxu0  ;;  %v3312_v30 = vpop.f32.mrf.mxu1  ;;  %v1517_v38 = vmax.f32 %v1005_v42, %v3523_v21  ;;  %v3525_v40 = vld [vmem:[#allocation11_spill] sm:$0xff] }
 0x11d   :  { %v3328_v48 = vpop.f32.mrf.mxu0  ;;  %v1760_v9 = vpop.f32.mrf.mxu1 }
 0x11e   :  { %v2025_v46 = vmax.f32 %v1513_v1, %v1760_v9  ;;  %v3520_v1 = vld [vmem:[#allocation6_spill] sm:$0xff] }
 0x11f   :  { %v2492_v12 = vpop.f32.mrf.mxu0  ;;  %v1762_v13 = vpop.f32.mrf.mxu1  ;;  %v1516_v9 = vmax.f32 %v1004_v2, %v3520_v1  ;;  %v1518_v2 = vmax.f32 %v1006_v44, %v3525_v40 }
 0x120   :  { %v2026_v14 = vmax.f32 %v1514_v10, %v1762_v13  ;;  %v2063_v15 = vadd.f32 %v3300_v36, %v2025_v46 }
 0x121   :  { %v3355_v19 = vpop.f32.mrf.mxu0  ;;  %v1764_v55 = vpop.f32.mrf.mxu1 }
 0x122   :  { %v2064_v25 = vadd.f32 %v3300_v36, %v2026_v14  ;;  %v2038_v35 = vmax.f32 %v1526_v56, %v1764_v55  ;;  %v2089_v12 = vmax.f32 %v2063_v15, 0.0  ;;  %v1528_v14 = vmax.f32 %v1016_v49, %v3521_v4  ;;  %v3522_v56 = vld [vmem:[#allocation8_spill] sm:$0xff] }
 0x123   :  { %v2493_v10 = vpop.f32.mrf.mxu0  ;;  %v1766_v46 = vpop.f32.mrf.mxu1  ;;  %v1529_v55 = vmax.f32 %v1017_v5, %v3522_v56 }
 0x124   :  { %v2090_v13 = vmax.f32 %v2064_v25, 0.0  ;;  %v2039_v17 = vmax.f32 %v1527_v23, %v1766_v46  ;;  %v2076_v41 = vadd.f32 %v3345_v16, %v2038_v35  ;;  %v3376_v23 = vmax.f32 %v1008_v52, %v3276_v63  ;;  %v3526_v35 = vld [vmem:[#allocation12_spill] sm:$0xff]  ;;  %v3528_v52 = vld [vmem:[#allocation14_spill] sm:$0xff] }
 0x125   :  { %v1803_v39 = vpop.f32.mrf.mxu0  ;;  %v1846_v3 = vpop.f32.mrf.mxu1  ;;  %v1530_v49 = vmax.f32 %v1018_v43, %v3526_v35  ;;  %v1531_v63 = vmax.f32 %v1019_v7, %v3282_v33  ;;  %v3388_v43 = vmax.f32 %v1021_v50, %v3528_v52  ;;  %v3530_v35 = vld [vmem:[#allocation16_spill] sm:$0xff] }
 0x126   :  { %v2444_v1 = vpack.c.bf16 %v2090_v13, %v2089_v12  ;;  %v2077_v15 = vadd.f32 %v3345_v16, %v2039_v17  ;;  %v2027_v25 = vmax.f32 %v1515_v34, %v1803_v39  ;;  %v2102_v10 = vmax.f32 %v2076_v41, 0.0  ;;  %v3527_v17 = vld [vmem:[#allocation13_spill] sm:$0xff]  ;;  %v3529_v13 = vld [vmem:[#allocation15_spill] sm:$0xff] }
 0x127   :  { %v2029_v5 = vmax.f32 %v1517_v38, %v1846_v3  ;;  %v1805_v46 = vpop.f32.mrf.mxu0  ;;  %v1848_v42 = vpop.f32.mrf.mxu1  ;;  %v3384_v39 = vmax.f32 %v1020_v54, %v3527_v17  ;;  %v1521_v41 = vmax.f32 %v1009_v20, %v3529_v13  ;;  %v3398_v20 = vmax.f32 %v1011_v53, %v3288_v6 }
 0x128   :  { %2195 = vst [vmem:[%s3494_s3] sm:$0xff] %v2444_v1  ;;  %v2103_v45 = vmax.f32 %v2077_v15, 0.0  ;;  %v2065_v44 = vadd.f32 %v3300_v36, %v2027_v25  ;;  %v2028_v18 = vmax.f32 %v1516_v9, %v1805_v46  ;;  %v2030_v21 = vmax.f32 %v1518_v2, %v1848_v42 }
 0x129   :  { %v2067_v38 = vadd.f32 %v3300_v36, %v2029_v5  ;;  %v1807_v34 = vpop.f32.mrf.mxu0  ;;  %v1850_v12 = vpop.f32.mrf.mxu1 }
 0x12a   :  { %v2451_v4 = vpack.c.bf16 %v2103_v45, %v2102_v10  ;;  %v2066_v56 = vadd.f32 %v3300_v36, %v2028_v18  ;;  %v2068_v9 = vadd.f32 %v3300_v36, %v2030_v21  ;;  %v2091_v3 = vmax.f32 %v2065_v44, 0.0 }
 0x12b   :  { %v2093_v40 = vmax.f32 %v2067_v38, 0.0  ;;  %v2040_v54 = vmax.f32 %v1528_v14, %v1807_v34  ;;  %v2042_v2 = vmax.f32 %v1530_v49, %v1850_v12  ;;  %v1809_v1 = vpop.f32.mrf.mxu0  ;;  %v1852_v33 = vpop.f32.mrf.mxu1  ;;  %v1522_v10 = vmax.f32 %v1010_v47, %v3530_v35  ;;  %v3531_v38 = vld [vmem:[#allocation18_spill] sm:$0xff] }
 0x12c   :  { %2202 = vst [vmem:[%s3494_s3 + $0x34] sm:$0xff] %v2451_v4  ;;  %v2092_v7 = vmax.f32 %v2066_v56, 0.0  ;;  %v2094_v50 = vmax.f32 %v2068_v9, 0.0  ;;  %v2041_v15 = vmax.f32 %v1529_v55, %v1809_v1  ;;  %v2043_v25 = vmax.f32 %v1531_v63, %v1852_v33 }
 0x12d   :  { %v2078_v14 = vadd.f32 %v3345_v16, %v2040_v54  ;;  %v2080_v49 = vadd.f32 %v3345_v16, %v2042_v2  ;;  %v1889_v5 = vpop.f32.mrf.mxu0  ;;  %v1932_v46 = vpop.f32.mrf.mxu1  ;;  %v3532_v34 = vmax.f32 %v3202_v62, %v3248_v26 }
 0x12e   :  { %v2445_v42 = vpack.c.bf16 %v2092_v7, %v2091_v3  ;;  %v2446_v45 = vpack.c.bf16 %v2094_v50, %v2093_v40  ;;  %v2079_v44 = vadd.f32 %v3345_v16, %v2041_v15  ;;  %v2081_v55 = vadd.f32 %v3345_v16, %v2043_v25  ;;  %v3533_v7 = vld [vmem:[#allocation17_spill] sm:$0xff] }
 0x12f   :  { %v2104_v18 = vmax.f32 %v2078_v14, 0.0  ;;  %v2106_v6 = vmax.f32 %v2080_v49, 0.0  ;;  %v2031_v53 = vmax.f32 %v3371_v51, %v1889_v5  ;;  %v2033_v21 = vmax.f32 %v1521_v41, %v1932_v46  ;;  %v1891_v17 = vpop.f32.mrf.mxu0  ;;  %v1934_v58 = vpop.f32.mrf.mxu1 }
 0x130   :  { %2196 = vst [vmem:[%s3494_s3 + $0x8] sm:$0xff] %v2445_v42  ;;  %2197 = vst [vmem:[%s3494_s3 + $0x10] sm:$0xff] %v2446_v45  ;;  %v2105_v22 = vmax.f32 %v2079_v44, 0.0  ;;  %v2107_v47 = vmax.f32 %v2081_v55, 0.0  ;;  %v2032_v63 = vmax.f32 %v3376_v23, %v1891_v17  ;;  %v2034_v52 = vmax.f32 %v1522_v10, %v1934_v58  ;;  %v3536_v45 = vld [vmem:[#allocation19_spill] sm:$0xff] }
 0x131   :  { %v1534_v51 = vmax.f32 %v1022_v11, %v3531_v38  ;;  %v1535_v12 = vmax.f32 %v3532_v34, %v3310_v8  ;;  %v2069_v13 = vadd.f32 %v3300_v36, %v2031_v53  ;;  %v2071_v41 = vadd.f32 %v3300_v36, %v2033_v21  ;;  %v1893_v4 = vpop.f32.mrf.mxu0  ;;  %v1936_v56 = vpop.f32.mrf.mxu1 }
 0x132   :  { %v2452_v9 = vpack.c.bf16 %v2105_v22, %v2104_v18  ;;  %v2453_v3 = vpack.c.bf16 %v2107_v47, %v2106_v6  ;;  %v2070_v23 = vadd.f32 %v3300_v36, %v2032_v63  ;;  %v2072_v40 = vadd.f32 %v3300_v36, %v2034_v52 }
 0x133   :  { %v2095_v54 = vmax.f32 %v2069_v13, 0.0  ;;  %v2097_v60 = vmax.f32 %v2071_v41, 0.0  ;;  %v2044_v24 = vmax.f32 %v3384_v39, %v1893_v4  ;;  %v2046_v11 = vmax.f32 %v1534_v51, %v1936_v56  ;;  %v1895_v2 = vpop.f32.mrf.mxu0  ;;  %v1938_v62 = vpop.f32.mrf.mxu1 }
 0x134   :  { %2203 = vst [vmem:[%s3494_s3 + $0x3c] sm:$0xff] %v2452_v9  ;;  %2204 = vst [vmem:[%s3494_s3 + $0x44] sm:$0xff] %v2453_v3  ;;  %v2096_v26 = vmax.f32 %v2070_v23, 0.0  ;;  %v2098_v8 = vmax.f32 %v2072_v40, 0.0  ;;  %v2045_v1 = vmax.f32 %v3388_v43, %v1895_v2  ;;  %v2047_v33 = vmax.f32 %v1535_v12, %v1938_v62 }
 0x135   :  { %v3534_v39 = vmax.f32 %v3196_v59, %v3254_v29  ;;  %v3535_v15 = vmax.f32 %v3206_v0, %v3252_v28  ;;  %v2082_v35 = vadd.f32 %v3345_v16, %v2044_v24  ;;  %v2084_v10 = vadd.f32 %v3345_v16, %v2046_v11  ;;  %v1975_v14 = vpop.f32.mrf.mxu0  ;;  %v2018_v49 = vpop.f32.mrf.mxu1 }
 0x136   :  { %v2447_v5 = vpack.c.bf16 %v2096_v26, %v2095_v54  ;;  %v2448_v46 = vpack.c.bf16 %v2098_v8, %v2097_v60  ;;  %v2083_v43 = vadd.f32 %v3345_v16, %v2045_v1  ;;  %v2085_v42 = vadd.f32 %v3345_v16, %v2047_v33 }
 0x137   :  { %v1524_v50 = vmax.f32 %v3534_v39, %v3533_v7  ;;  %v1525_v25 = vmax.f32 %v3535_v15, %v3328_v48  ;;  %v3537_v59 = vmax.f32 %v3200_v61, %v3256_v31  ;;  %v2108_v44 = vmax.f32 %v2082_v35, 0.0  ;;  %v1977_v48 = vpop.f32.mrf.mxu0  ;;  %v2500_v55 = vpop.f32.mrf.mxu1 }
 0x138   :  { %v2035_v0 = vmax.f32 %v3398_v20, %v1975_v14  ;;  %2198 = vst [vmem:[%s3494_s3 + $0x18] sm:$0xff] %v2447_v5  ;;  %2199 = vst [vmem:[%s3494_s3 + $0x20] sm:$0xff] %v2448_v46  ;;  %v2110_v18 = vmax.f32 %v2084_v10, 0.0  ;;  %v2109_v6 = vmax.f32 %v2083_v43, 0.0  ;;  %v2111_v53 = vmax.f32 %v2085_v42, 0.0 }
 0x139   :  { %v1536_v29 = vmax.f32 %v3537_v59, %v3536_v45  ;;  %v2037_v28 = vmax.f32 %v1525_v25, %v2018_v49  ;;  %v2036_v21 = vmax.f32 %v1524_v50, %v1977_v48  ;;  %v3538_v61 = vmax.f32 %v3518_v27, %v3517_v57  ;;  %v1979_v47 = vpop.f32.mrf.mxu0  ;;  %v2021_v63 = vpop.f32.mrf.mxu1 }
 0x13a   :  { %v3539_v20 = vmax.f32 %v3516_v37, %v3258_v32  ;;  %v2073_v58 = vadd.f32 %v3300_v36, %v2035_v0  ;;  %v2454_v52 = vpack.c.bf16 %v2109_v6, %v2108_v44  ;;  %v2455_v38 = vpack.c.bf16 %v2111_v53, %v2110_v18 }
 0x13b   :  { %v1537_v31 = vmax.f32 %v3538_v61, %v3312_v30  ;;  %v2075_v22 = vadd.f32 %v3300_v36, %v2037_v28  ;;  %v2074_v51 = vadd.f32 %v3300_v36, %v2036_v21  ;;  %v2048_v34 = vmax.f32 %v1536_v29, %v1979_v47  ;;  %v1981_v57 = vpop.f32.mrf.mxu0  ;;  %v2501_v30 = vpop.f32.mrf.mxu1 }
 0x13c   :  { %v1538_v17 = vmax.f32 %v3539_v20, %v3355_v19  ;;  %2205 = vst [vmem:[%s3494_s3 + $0x4c] sm:$0xff] %v2454_v52  ;;  %2206 = vst [vmem:[%s3494_s3 + $0x54] sm:$0xff] %v2455_v38  ;;  %v2099_v32 = vmax.f32 %v2073_v58, 0.0 }
 0x13d   :  { %v2101_v12 = vmax.f32 %v2075_v22, 0.0  ;;  %v2100_v19 = vmax.f32 %v2074_v51, 0.0  ;;  %v2086_v37 = vadd.f32 %v3345_v16, %v2048_v34  ;;  %v2049_v27 = vmax.f32 %v1537_v31, %v1981_v57 }
 0x13e   :  { %v2050_v13 = vmax.f32 %v1538_v17, %v2021_v63 }
 0x13f   :  { %v2450_v41 = vpack.c.bf16 %v2101_v12, %v2101_v12  ;;  %v2449_v4 = vpack.c.bf16 %v2100_v19, %v2099_v32  ;;  %v2087_v56 = vadd.f32 %v3345_v16, %v2049_v27  ;;  %v2112_v3 = vmax.f32 %v2086_v37, 0.0 }
 0x140   :  { %v2088_v36 = vadd.f32 %v3345_v16, %v2050_v13 }
 0x141   :  { %2201 = vst [vmem:[%s3494_s3 + $0x30] sm:$0xf] %v2450_v41  ;;  %2200 = vst [vmem:[%s3494_s3 + $0x28] sm:$0xff] %v2449_v4  ;;  %v2113_v23 = vmax.f32 %v2087_v56, 0.0 }
 0x142   :  { %v2114_v9 = vmax.f32 %v2088_v36, 0.0 }
 0x143   :  { %v2456_v54 = vpack.c.bf16 %v2113_v23, %v2112_v3 }
 0x144   :  { %v2457_v40 = vpack.c.bf16 %v2114_v9, %v2114_v9 }
 0x145   :  { %2207 = vst [vmem:[%s3494_s3 + $0x5c] sm:$0xff] %v2456_v54 }
 0x146   :  { %2208 = vst [vmem:[%s3494_s3 + $0x64] sm:$0xf] %v2457_v40 }

// kernel: cnn_forward.4
= control target key start
LH: loop header
LB: loop body
LE: loop exit
PB: predicated region body
PF: predicated region fallthrough
CT: control target
= control target key end

     0   :  { %vm661_vm0 = vcmask 130048   ;;  %s6518_s0 = inlined_call_operand.vmem [shape: bf16[4,400,512], index: 0, kind: input, shape index: {}]   ;;  %s6519_s1 = inlined_call_operand.vmem [shape: bf16[32,400], index: 1, kind: input, shape index: {}]   ;;  %s6520_s2 = inlined_call_operand.vmem [shape: f32[32,1], index: 2, kind: input, shape index: {}]   ;;  %s6521_s3 = inlined_call_operand.vmem [shape: bf16[32,512], index: 3, kind: output, shape index: {}]  }
   0x1   :  { %v4226_v0 = vld [vmem:[%s6518_s0 + $0xe4] ss:$16 sps:$4 sm:$0xff]   ;;  %v4230_v2 = vld [vmem:[%s6518_s0 + $0xe0] ss:$16 sps:$4 sm:$0xff]   ;;  %v4963_v29 = vld [vmem:[%s6519_s1 + $0xc] ss:$16 sps:$4 sm:$0xff]  }
   0x2   :  { %v4228_v1 = vld [vmem:[%s6518_s0 + $0x2e4] ss:$16 sps:$4 sm:$0xff]   ;;  %668 = vmatprep.subr.bf16.mxu0 %v4226_v0  ;;  %v4231_v3 = vld [vmem:[%s6518_s0 + $0x2e0] ss:$16 sps:$4 sm:$0xff]   ;;  %3591 = vmatprep.mubr.msk.bf16.mxu1 %vm661_vm0, %v4963_v29  ;;  %v4287_v38 = vld [vmem:[%s6518_s0 + $0xec] ss:$16 sps:$4 sm:$0xff]  }
   0x3   :  { %721 = vmatprep.subr.bf16.mxu1 %v4228_v1  ;;  %v4232_v4 = vld [vmem:[%s6518_s0 + $0xc4] ss:$16 sps:$4 sm:$0xff]   ;;  %669 = vmatpush1.bf16.msra.mxu0 %v4230_v2  ;;  %v4236_v6 = vld [vmem:[%s6518_s0 + $0xc0] ss:$16 sps:$4 sm:$0xff]   ;;  %v4997_v39 = vld [vmem:[%s6519_s1 + $0x8] ss:$16 sps:$4 sm:$0xff]  }
   0x4   :  { %722 = vmatpush1.bf16.msra.mxu1 %v4231_v3  ;;  %v4234_v5 = vld [vmem:[%s6518_s0 + $0x2c4] ss:$16 sps:$4 sm:$0xff]   ;;  %670 = vmatprep.subr.bf16.mxu0 %v4232_v4  ;;  %v4237_v7 = vld [vmem:[%s6518_s0 + $0x2c0] ss:$16 sps:$4 sm:$0xff]   ;;  %v4285_v40 = vld [vmem:[%s6518_s0 + $0xe8] ss:$16 sps:$4 sm:$0xff]  }
   0x5   :  { %723 = vmatprep.subr.bf16.mxu1 %v4234_v5  ;;  %v4238_v8 = vld [vmem:[%s6518_s0 + $0xa4] ss:$16 sps:$4 sm:$0xff]   ;;  %v4242_v10 = vld [vmem:[%s6518_s0 + $0xa0] ss:$16 sps:$4 sm:$0xff]   ;;  %v4293_v43 = vld [vmem:[%s6518_s0 + $0xcc] ss:$16 sps:$4 sm:$0xff]  }
   0x6   :  { %v4240_v9 = vld [vmem:[%s6518_s0 + $0x2a4] ss:$16 sps:$4 sm:$0xff]   ;;  %v4243_v11 = vld [vmem:[%s6518_s0 + $0x2a0] ss:$16 sps:$4 sm:$0xff]   ;;  %v4291_v44 = vld [vmem:[%s6518_s0 + $0xc8] ss:$16 sps:$4 sm:$0xff]  }
   0x7   :  { %671 = vmatpush1.bf16.msra.mxu0 %v4236_v6  ;;  %v4244_v12 = vld [vmem:[%s6518_s0 + $0x84] ss:$16 sps:$4 sm:$0xff]   ;;  %v4248_v14 = vld [vmem:[%s6518_s0 + $0x80] ss:$16 sps:$4 sm:$0xff]   ;;  %v4299_v47 = vld [vmem:[%s6518_s0 + $0xac] ss:$16 sps:$4 sm:$0xff]  }
   0x8   :  { %724 = vmatpush1.bf16.msra.mxu1 %v4237_v7  ;;  %672 = vmatprep.subr.bf16.mxu0 %v4238_v8  ;;  %v4246_v13 = vld [vmem:[%s6518_s0 + $0x284] ss:$16 sps:$4 sm:$0xff]   ;;  %v4249_v15 = vld [vmem:[%s6518_s0 + $0x280] ss:$16 sps:$4 sm:$0xff]   ;;  %v4297_v48 = vld [vmem:[%s6518_s0 + $0xa8] ss:$16 sps:$4 sm:$0xff]  }
   0x9   :  { %725 = vmatprep.subr.bf16.mxu1 %v4240_v9  ;;  %v4250_v16 = vld [vmem:[%s6518_s0 + $0x64] ss:$16 sps:$4 sm:$0xff]   ;;  %v4254_v18 = vld [vmem:[%s6518_s0 + $0x60] ss:$16 sps:$4 sm:$0xff]   ;;  %v4305_v52 = vld [vmem:[%s6518_s0 + $0x8c] ss:$16 sps:$4 sm:$0xff]  }
   0xa   :  { %v4252_v17 = vld [vmem:[%s6518_s0 + $0x264] ss:$16 sps:$4 sm:$0xff]   ;;  %v4255_v19 = vld [vmem:[%s6518_s0 + $0x260] ss:$16 sps:$4 sm:$0xff]   ;;  %v4303_v53 = vld [vmem:[%s6518_s0 + $0x88] ss:$16 sps:$4 sm:$0xff]  }
   0xb   :  { %673 = vmatpush1.bf16.msra.mxu0 %v4242_v10  ;;  %v4256_v20 = vld [vmem:[%s6518_s0 + $0x44] ss:$16 sps:$4 sm:$0xff]   ;;  %v4260_v22 = vld [vmem:[%s6518_s0 + $0x40] ss:$16 sps:$4 sm:$0xff]   ;;  %v4311_v56 = vld [vmem:[%s6518_s0 + $0x6c] ss:$16 sps:$4 sm:$0xff]  }
   0xc   :  { %726 = vmatpush1.bf16.msra.mxu1 %v4243_v11  ;;  %674 = vmatprep.subr.bf16.mxu0 %v4244_v12  ;;  %v4258_v21 = vld [vmem:[%s6518_s0 + $0x244] ss:$16 sps:$4 sm:$0xff]   ;;  %v4261_v23 = vld [vmem:[%s6518_s0 + $0x240] ss:$16 sps:$4 sm:$0xff]   ;;  %v4309_v57 = vld [vmem:[%s6518_s0 + $0x68] ss:$16 sps:$4 sm:$0xff]  }
   0xd   :  { %727 = vmatprep.subr.bf16.mxu1 %v4246_v13  ;;  %v4262_v24 = vld [vmem:[%s6518_s0 + $0x24] ss:$16 sps:$4 sm:$0xff]   ;;  %v4266_v26 = vld [vmem:[%s6518_s0 + $0x20] ss:$16 sps:$4 sm:$0xff]   ;;  %v4317_v60 = vld [vmem:[%s6518_s0 + $0x4c] ss:$16 sps:$4 sm:$0xff]  }
   0xe   :  { %v4264_v25 = vld [vmem:[%s6518_s0 + $0x224] ss:$16 sps:$4 sm:$0xff]   ;;  %v4267_v27 = vld [vmem:[%s6518_s0 + $0x220] ss:$16 sps:$4 sm:$0xff]   ;;  %v4315_v61 = vld [vmem:[%s6518_s0 + $0x48] ss:$16 sps:$4 sm:$0xff]  }
   0xf   :  { %675 = vmatpush1.bf16.msra.mxu0 %v4248_v14  ;;  %v4268_v28 = vld [vmem:[%s6518_s0 + $0x4] ss:$16 sps:$4 sm:$0xff]   ;;  %v4272_v31 = vld [vmem:[%s6518_s0] ss:$16 sps:$4 sm:$0xff]   ;;  %v4323_v0 = vld [vmem:[%s6518_s0 + $0x2c] ss:$16 sps:$4 sm:$0xff]  }
  0x10   :  { %728 = vmatpush1.bf16.msra.mxu1 %v4249_v15  ;;  %676 = vmatprep.subr.bf16.mxu0 %v4250_v16  ;;  %v4270_v30 = vld [vmem:[%s6518_s0 + $0x204] ss:$16 sps:$4 sm:$0xff]   ;;  %v4273_v32 = vld [vmem:[%s6518_s0 + $0x200] ss:$16 sps:$4 sm:$0xff]   ;;  %v4321_v1 = vld [vmem:[%s6518_s0 + $0x28] ss:$16 sps:$4 sm:$0xff]  }
  0x11   :  { %729 = vmatprep.subr.bf16.mxu1 %v4252_v17  ;;  %v4274_v33 = vld [vmem:[%s6518_s0 + $0x1e4] ss:$16 sps:$4 sm:$0xff]   ;;  %v4278_v35 = vld [vmem:[%s6518_s0 + $0x1e0] ss:$16 sps:$4 sm:$0xff]   ;;  %v4330_v3 = vld [vmem:[%s6518_s0 + $0xc] ss:$16 sps:$4 sm:$0xff]  }
  0x12   :  { %v4276_v34 = vld [vmem:[%s6518_s0 + $0x304] ss:$16 sps:$4 sm:$0xff]   ;;  %v4279_v36 = vld [vmem:[%s6518_s0 + $0x300] ss:$16 sps:$4 sm:$0xff]   ;;  %v4333_v5 = vld [vmem:[%s6518_s0 + $0x2ec] ss:$16 sps:$4 sm:$0xff]  }
  0x13   :  { %677 = vmatpush1.bf16.msra.mxu0 %v4254_v18  ;;  %v4282_v37 = vld [vmem:[%s6518_s0 + $0x1c4] ss:$16 sps:$4 sm:$0xff]   ;;  %v4288_v41 = vld [vmem:[%s6518_s0 + $0x1c0] ss:$16 sps:$4 sm:$0xff]   ;;  %v4328_v6 = vld [vmem:[%s6518_s0 + $0x8] ss:$16 sps:$4 sm:$0xff]  }
  0x14   :  { %730 = vmatpush1.bf16.msra.mxu1 %v4255_v19  ;;  %678 = vmatprep.subr.bf16.mxu0 %v4256_v20  ;;  %v4289_v42 = vld [vmem:[%s6518_s0 + $0x1a4] ss:$16 sps:$4 sm:$0xff]   ;;  %v4294_v45 = vld [vmem:[%s6518_s0 + $0x1a0] ss:$16 sps:$4 sm:$0xff]   ;;  %v4331_v7 = vld [vmem:[%s6518_s0 + $0x2e8] ss:$16 sps:$4 sm:$0xff]  }
  0x15   :  { %731 = vmatprep.subr.bf16.mxu1 %v4258_v21  ;;  %v4295_v46 = vld [vmem:[%s6518_s0 + $0x184] ss:$16 sps:$4 sm:$0xff]   ;;  %v4300_v49 = vld [vmem:[%s6518_s0 + $0x180] ss:$16 sps:$4 sm:$0xff]   ;;  %v5104_v8 = vld [vmem:[%s6519_s1 + $0x2c] ss:$16 sps:$4 sm:$0xff]  }
  0x16   :  { %v4301_v50 = vld [vmem:[%s6518_s0 + $0x164] ss:$16 sps:$4 sm:$0xff]   ;;  %v4306_v54 = vld [vmem:[%s6518_s0 + $0x160] ss:$16 sps:$4 sm:$0xff]   ;;  %v5109_v9 = vld [vmem:[%s6519_s1 + $0x28] ss:$16 sps:$4 sm:$0xff]  }
  0x17   :  { %679 = vmatpush1.bf16.msra.mxu0 %v4260_v22  ;;  %v5036_v51 = vld [vmem:[%s6519_s1 + $0x4] ss:$16 sps:$4 sm:$0xff]   ;;  %v4312_v58 = vld [vmem:[%s6518_s0 + $0x140] ss:$16 sps:$4 sm:$0xff]   ;;  %v4336_v10 = vld [vmem:[%s6518_s0 + $0x1ec] ss:$16 sps:$4 sm:$0xff]  }
  0x18   :  { %732 = vmatpush1.bf16.msra.mxu1 %v4261_v23  ;;  %680 = vmatprep.subr.bf16.mxu0 %v4262_v24  ;;  %v4307_v55 = vld [vmem:[%s6518_s0 + $0x144] ss:$16 sps:$4 sm:$0xff]   ;;  %v4318_v62 = vld [vmem:[%s6518_s0 + $0x120] ss:$16 sps:$4 sm:$0xff]   ;;  %v4339_v11 = vld [vmem:[%s6518_s0 + $0x2cc] ss:$16 sps:$4 sm:$0xff]  }
  0x19   :  { %733 = vmatprep.subr.bf16.mxu1 %v4264_v25  ;;  %700 = vmatprep.mubr.bf16.mxu0 %v5036_v51  ;;  %v4313_v59 = vld [vmem:[%s6518_s0 + $0x124] ss:$16 sps:$4 sm:$0xff]   ;;  %v4324_v2 = vld [vmem:[%s6518_s0 + $0x100] ss:$16 sps:$4 sm:$0xff]   ;;  %v4334_v13 = vld [vmem:[%s6518_s0 + $0x1e8] ss:$16 sps:$4 sm:$0xff]  }
  0x1a   :  { %v4319_v63 = vld [vmem:[%s6518_s0 + $0x104] ss:$16 sps:$4 sm:$0xff]   ;;  %v5090_v4 = vld [vmem:[%s6519_s1] ss:$16 sps:$4 sm:$0xff]   ;;  %v4337_v14 = vld [vmem:[%s6518_s0 + $0x2c8] ss:$16 sps:$4 sm:$0xff]  }
  0x1b   :  { %681 = vmatpush1.bf16.msra.mxu0 %v4266_v26  ;;  %v5120_v12 = vld [vmem:[%s6519_s1 + $0x24] ss:$16 sps:$4 sm:$0xff]   ;;  %v4342_v15 = vld [vmem:[%s6518_s0 + $0x1cc] ss:$16 sps:$4 sm:$0xff]   ;;  %v4340_v17 = vld [vmem:[%s6518_s0 + $0x1c8] ss:$16 sps:$4 sm:$0xff]  }
  0x1c   :  { %734 = vmatpush1.bf16.msra.mxu1 %v4267_v27  ;;  %682 = vmatprep.subr.bf16.mxu0 %v4268_v28  ;;  %v4345_v16 = vld [vmem:[%s6518_s0 + $0x2ac] ss:$16 sps:$4 sm:$0xff]   ;;  %v4343_v18 = vld [vmem:[%s6518_s0 + $0x2a8] ss:$16 sps:$4 sm:$0xff]   ;;  %v5149_v19 = vld [vmem:[%s6519_s1 + $0x20] ss:$16 sps:$4 sm:$0xff]  }
  0x1d   :  { %735 = vmatprep.subr.bf16.mxu1 %v4270_v30  ;;  %v4348_v20 = vld [vmem:[%s6518_s0 + $0x1ac] ss:$16 sps:$4 sm:$0xff]   ;;  %v4346_v22 = vld [vmem:[%s6518_s0 + $0x1a8] ss:$16 sps:$4 sm:$0xff]  }
  0x1e   :  { %v4351_v21 = vld [vmem:[%s6518_s0 + $0x28c] ss:$16 sps:$4 sm:$0xff]   ;;  %v4349_v23 = vld [vmem:[%s6518_s0 + $0x288] ss:$16 sps:$4 sm:$0xff]  }
  0x1f   :  { %683 = vmatpush1.bf16.msra.mxu0 %v4272_v31  ;;  %v4354_v24 = vld [vmem:[%s6518_s0 + $0x18c] ss:$16 sps:$4 sm:$0xff]   ;;  %v4352_v26 = vld [vmem:[%s6518_s0 + $0x188] ss:$16 sps:$4 sm:$0xff]  }
  0x20   :  { %736 = vmatpush1.bf16.msra.mxu1 %v4273_v32  ;;  %684 = vmatprep.subr.bf16.mxu0 %v4274_v33  ;;  %v4357_v25 = vld [vmem:[%s6518_s0 + $0x26c] ss:$16 sps:$4 sm:$0xff]   ;;  %v4355_v27 = vld [vmem:[%s6518_s0 + $0x268] ss:$16 sps:$4 sm:$0xff]  }
  0x21   :  { %751 = vmatprep.subr.bf16.mxu1 %v4276_v34  ;;  %v4360_v28 = vld [vmem:[%s6518_s0 + $0x16c] ss:$16 sps:$4 sm:$0xff]   ;;  %v4358_v31 = vld [vmem:[%s6518_s0 + $0x168] ss:$16 sps:$4 sm:$0xff]  }
  0x22   :  { %v4363_v30 = vld [vmem:[%s6518_s0 + $0x24c] ss:$16 sps:$4 sm:$0xff]   ;;  %v4361_v32 = vld [vmem:[%s6518_s0 + $0x248] ss:$16 sps:$4 sm:$0xff]  }
  0x23   :  { %685 = vmatpush2.bf16.msra.mxu0 %v4278_v35  ;;  %v4372_v33 = vld [vmem:[%s6518_s0 + $0x14c] ss:$16 sps:$4 sm:$0xff]   ;;  %v4370_v35 = vld [vmem:[%s6518_s0 + $0x148] ss:$16 sps:$4 sm:$0xff]  }
  0x24   :  { %752 = vmatpush2.bf16.msra.mxu1 %v4279_v36  ;;  %686 = vmatprep.subr.bf16.mxu0 %v4282_v37  ;;  %v4375_v34 = vld [vmem:[%s6518_s0 + $0x22c] ss:$16 sps:$4 sm:$0xff]   ;;  %v4373_v36 = vld [vmem:[%s6518_s0 + $0x228] ss:$16 sps:$4 sm:$0xff]  }
  0x25   :  { %774 = vmatprep.subr.bf16.mxu1 %v4287_v38  ;;  %v4378_v37 = vld [vmem:[%s6518_s0 + $0x12c] ss:$16 sps:$4 sm:$0xff]  }
  0x26   :  { %v4381_v38 = vld [vmem:[%s6518_s0 + $0x20c] ss:$16 sps:$4 sm:$0xff]  }
  0x27   :  { %754 = vmatmul.mubr.bf16.vlgmr.msra.gmra.mxu1 %v4997_v39  ;;  %687 = vmatpush2.bf16.msra.mxu0 %v4288_v41  ;;  %v4379_v41 = vld [vmem:[%s6518_s0 + $0x208] ss:$16 sps:$4 sm:$0xff]  }
  0x28   :  { %775 = vmatpush1.bf16.msra.mxu1 %v4285_v40  ;;  %688 = vmatprep.subr.bf16.mxu0 %v4289_v42  ;;  %v4376_v40 = vld [vmem:[%s6518_s0 + $0x128] ss:$16 sps:$4 sm:$0xff]   ;;  %v4384_v42 = vld [vmem:[%s6518_s0 + $0x10c] ss:$16 sps:$4 sm:$0xff]  }
  0x29   :  { %776 = vmatprep.subr.bf16.mxu1 %v4293_v43  ;;  %3592 = vmatprep.mubr.msk.bf16.mxu1 %vm661_vm0, %v5104_v8  ;;  %v4387_v43 = vld [vmem:[%s6518_s0 + $0x30c] ss:$16 sps:$4 sm:$0xff]  }
  0x2b   :  { %689 = vmatpush2.bf16.msra.mxu0 %v4294_v45  ;;  %v4385_v45 = vld [vmem:[%s6518_s0 + $0x308] ss:$16 sps:$4 sm:$0xff]  }
  0x2c   :  { %777 = vmatpush1.bf16.msra.mxu1 %v4291_v44  ;;  %690 = vmatprep.subr.bf16.mxu0 %v4295_v46  ;;  %v4382_v44 = vld [vmem:[%s6518_s0 + $0x108] ss:$16 sps:$4 sm:$0xff]   ;;  %v4390_v46 = vld [vmem:[%s6518_s0 + $0x404] ss:$16 sps:$4 sm:$0xff]  }
  0x2d   :  { %778 = vmatprep.subr.bf16.mxu1 %v4299_v47  ;;  %v4393_v47 = vld [vmem:[%s6518_s0 + $0x604] ss:$16 sps:$4 sm:$0xff]  }
  0x2f   :  { %691 = vmatpush2.bf16.msra.mxu0 %v4300_v49  ;;  %764 = vmatmul.mubr.bf16.gmra.mxu1 %v5109_v9  ;;  %v4391_v49 = vld [vmem:[%s6518_s0 + $0x600] ss:$16 sps:$4 sm:$0xff]  }
  0x30   :  { %779 = vmatpush1.bf16.msra.mxu1 %v4297_v48  ;;  %692 = vmatprep.subr.bf16.mxu0 %v4301_v50  ;;  %v4388_v48 = vld [vmem:[%s6518_s0 + $0x400] ss:$16 sps:$4 sm:$0xff]   ;;  %v4396_v50 = vld [vmem:[%s6518_s0 + $0x3e4] ss:$16 sps:$4 sm:$0xff]  }
  0x31   :  { %780 = vmatprep.subr.bf16.mxu1 %v4305_v52  ;;  %806 = vmatprep.mubr.bf16.mxu1 %v5036_v51  ;;  %v4399_v52 = vld [vmem:[%s6518_s0 + $0x5e4] ss:$16 sps:$4 sm:$0xff]  }
  0x33   :  { %693 = vmatpush2.bf16.msra.mxu0 %v4306_v54  ;;  %v4397_v54 = vld [vmem:[%s6518_s0 + $0x5e0] ss:$16 sps:$4 sm:$0xff]  }
  0x34   :  { %781 = vmatpush1.bf16.msra.mxu1 %v4303_v53  ;;  %694 = vmatprep.subr.bf16.mxu0 %v4307_v55  ;;  %v4394_v53 = vld [vmem:[%s6518_s0 + $0x3e0] ss:$16 sps:$4 sm:$0xff]   ;;  %v4402_v55 = vld [vmem:[%s6518_s0 + $0x3c4] ss:$16 sps:$4 sm:$0xff]  }
  0x35   :  { %782 = vmatprep.subr.bf16.mxu1 %v4311_v56  ;;  %v4405_v56 = vld [vmem:[%s6518_s0 + $0x5c4] ss:$16 sps:$4 sm:$0xff]  }
  0x37   :  { %695 = vmatpush2.bf16.msra.mxu0 %v4312_v58  ;;  %v4403_v58 = vld [vmem:[%s6518_s0 + $0x5c0] ss:$16 sps:$4 sm:$0xff]  }
  0x38   :  { %783 = vmatpush1.bf16.msra.mxu1 %v4309_v57  ;;  %696 = vmatprep.subr.bf16.mxu0 %v4313_v59  ;;  %v4400_v57 = vld [vmem:[%s6518_s0 + $0x3c0] ss:$16 sps:$4 sm:$0xff]   ;;  %v4408_v59 = vld [vmem:[%s6518_s0 + $0x3a4] ss:$16 sps:$4 sm:$0xff]  }
  0x39   :  { %784 = vmatprep.subr.bf16.mxu1 %v4317_v60  ;;  %v4411_v60 = vld [vmem:[%s6518_s0 + $0x5a4] ss:$16 sps:$4 sm:$0xff]  }
  0x3b   :  { %697 = vmatpush2.bf16.msra.mxu0 %v4318_v62  ;;  %v4409_v62 = vld [vmem:[%s6518_s0 + $0x5a0] ss:$16 sps:$4 sm:$0xff]  }
  0x3c   :  { %785 = vmatpush1.bf16.msra.mxu1 %v4315_v61  ;;  %698 = vmatprep.subr.bf16.mxu0 %v4319_v63  ;;  %v4406_v61 = vld [vmem:[%s6518_s0 + $0x3a0] ss:$16 sps:$4 sm:$0xff]   ;;  %v4414_v63 = vld [vmem:[%s6518_s0 + $0x384] ss:$16 sps:$4 sm:$0xff]  }
  0x3d   :  { %786 = vmatprep.subr.bf16.mxu1 %v4323_v0  ;;  %v4417_v0 = vld [vmem:[%s6518_s0 + $0x584] ss:$16 sps:$4 sm:$0xff]  }
  0x3f   :  { %699 = vmatpush2.bf16.msra.mxu0 %v4324_v2  ;;  %v4415_v2 = vld [vmem:[%s6518_s0 + $0x580] ss:$16 sps:$4 sm:$0xff]  }
  0x40   :  { %787 = vmatpush1.bf16.msra.mxu1 %v4321_v1  ;;  %827 = vmatprep.subr.bf16.mxu0 %v4333_v5  ;;  %v4412_v1 = vld [vmem:[%s6518_s0 + $0x380] ss:$16 sps:$4 sm:$0xff]  }
  0x41   :  { %788 = vmatprep.subr.bf16.mxu1 %v4330_v3  ;;  %v4420_v3 = vld [vmem:[%s6518_s0 + $0x364] ss:$16 sps:$4 sm:$0xff]   ;;  %v4418_v5 = vld [vmem:[%s6518_s0 + $0x360] ss:$16 sps:$4 sm:$0xff]  }
  0x42   :  { %701 = vmatmul.mubr.bf16.vlgmr.msra.gmra.mxu0 %v5090_v4 }
  0x43   :  { %828 = vmatpush1.bf16.msra.mxu0 %v4331_v7  ;;  %710 = vmatprep.mubr.bf16.mxu0 %v5120_v12  ;;  %v4426_v7 = vld [vmem:[%s6518_s0 + $0x344] ss:$16 sps:$4 sm:$0xff]  }
  0x44   :  { %789 = vmatpush1.bf16.msra.mxu1 %v4328_v6  ;;  %829 = vmatprep.subr.bf16.mxu0 %v4339_v11  ;;  %v4421_v6 = vld [vmem:[%s6518_s0 + $0x560] ss:$16 sps:$4 sm:$0xff]  }
  0x45   :  { %790 = vmatprep.subr.bf16.mxu1 %v4336_v10  ;;  %v4429_v10 = vld [vmem:[%s6518_s0 + $0x544] ss:$16 sps:$4 sm:$0xff]   ;;  %v4424_v11 = vld [vmem:[%s6518_s0 + $0x340] ss:$16 sps:$4 sm:$0xff]  }
  0x47   :  { %830 = vmatpush1.bf16.msra.mxu0 %v4337_v14  ;;  %v4432_v14 = vld [vmem:[%s6518_s0 + $0x324] ss:$16 sps:$4 sm:$0xff]  }
  0x48   :  { %791 = vmatpush2.bf16.msra.mxu1 %v4334_v13  ;;  %831 = vmatprep.subr.bf16.mxu0 %v4345_v16  ;;  %v4427_v13 = vld [vmem:[%s6518_s0 + $0x540] ss:$16 sps:$4 sm:$0xff]  }
  0x49   :  { %792 = vmatprep.subr.bf16.mxu1 %v4342_v15  ;;  %v4435_v15 = vld [vmem:[%s6518_s0 + $0x524] ss:$16 sps:$4 sm:$0xff]   ;;  %v4430_v16 = vld [vmem:[%s6518_s0 + $0x320] ss:$16 sps:$4 sm:$0xff]  }
  0x4a   :  { %711 = vmatmul.mubr.bf16.gmra.mxu0 %v5149_v19 }
  0x4b   :  { %832 = vmatpush1.bf16.msra.mxu0 %v4343_v18  ;;  %3593 = vmatprep.mubr.msk.bf16.mxu0 %vm661_vm0, %v4963_v29  ;;  %v4438_v18 = vld [vmem:[%s6518_s0 + $0x504] ss:$16 sps:$4 sm:$0xff]  }
  0x4c   :  { %793 = vmatpush2.bf16.msra.mxu1 %v4340_v17  ;;  %833 = vmatprep.subr.bf16.mxu0 %v4351_v21  ;;  %v4433_v17 = vld [vmem:[%s6518_s0 + $0x520] ss:$16 sps:$4 sm:$0xff]  }
  0x4d   :  { %794 = vmatprep.subr.bf16.mxu1 %v4348_v20  ;;  %v4441_v20 = vld [vmem:[%s6518_s0 + $0x624] ss:$16 sps:$4 sm:$0xff]   ;;  %v4436_v21 = vld [vmem:[%s6518_s0 + $0x500] ss:$16 sps:$4 sm:$0xff]  }
  0x4f   :  { %834 = vmatpush1.bf16.msra.mxu0 %v4349_v23  ;;  %v4444_v23 = vld [vmem:[%s6518_s0 + $0x4e4] ss:$16 sps:$4 sm:$0xff]  }
  0x50   :  { %795 = vmatpush2.bf16.msra.mxu1 %v4346_v22  ;;  %835 = vmatprep.subr.bf16.mxu0 %v4357_v25  ;;  %v4439_v22 = vld [vmem:[%s6518_s0 + $0x620] ss:$16 sps:$4 sm:$0xff]  }
  0x51   :  { %796 = vmatprep.subr.bf16.mxu1 %v4354_v24  ;;  %v4447_v24 = vld [vmem:[%s6518_s0 + $0x40c] ss:$16 sps:$4 sm:$0xff]   ;;  %v4442_v25 = vld [vmem:[%s6518_s0 + $0x4e0] ss:$16 sps:$4 sm:$0xff]  }
  0x53   :  { %836 = vmatpush1.bf16.msra.mxu0 %v4355_v27  ;;  %v4450_v27 = vld [vmem:[%s6518_s0 + $0x4c4] ss:$16 sps:$4 sm:$0xff]  }
  0x54   :  { %797 = vmatpush2.bf16.msra.mxu1 %v4352_v26  ;;  %837 = vmatprep.subr.bf16.mxu0 %v4363_v30  ;;  %v4445_v26 = vld [vmem:[%s6518_s0 + $0x408] ss:$16 sps:$4 sm:$0xff]   ;;  %v4448_v30 = vld [vmem:[%s6518_s0 + $0x4c0] ss:$16 sps:$4 sm:$0xff]  }
  0x55   :  { %798 = vmatprep.subr.bf16.mxu1 %v4360_v28  ;;  %v4453_v28 = vld [vmem:[%s6518_s0 + $0x3ec] ss:$16 sps:$4 sm:$0xff]  }
  0x57   :  { %838 = vmatpush1.bf16.msra.mxu0 %v4361_v32  ;;  %v4456_v32 = vld [vmem:[%s6518_s0 + $0x4a4] ss:$16 sps:$4 sm:$0xff]  }
  0x58   :  { %799 = vmatpush2.bf16.msra.mxu1 %v4358_v31  ;;  %839 = vmatprep.subr.bf16.mxu0 %v4375_v34  ;;  %v4451_v31 = vld [vmem:[%s6518_s0 + $0x3e8] ss:$16 sps:$4 sm:$0xff]  }
  0x59   :  { %800 = vmatprep.subr.bf16.mxu1 %v4372_v33  ;;  %v4454_v33 = vld [vmem:[%s6518_s0 + $0x4a0] ss:$16 sps:$4 sm:$0xff]   ;;  %v4457_v34 = vld [vmem:[%s6518_s0 + $0x3c8] ss:$16 sps:$4 sm:$0xff]  }
  0x5b   :  { %840 = vmatpush1.bf16.msra.mxu0 %v4373_v36  ;;  %v4460_v36 = vld [vmem:[%s6518_s0 + $0x480] ss:$16 sps:$4 sm:$0xff]  }
  0x5c   :  { %801 = vmatpush2.bf16.msra.mxu1 %v4370_v35  ;;  %841 = vmatprep.subr.bf16.mxu0 %v4381_v38  ;;  %v4462_v35 = vld [vmem:[%s6518_s0 + $0x484] ss:$16 sps:$4 sm:$0xff]  }
  0x5d   :  { %802 = vmatprep.subr.bf16.mxu1 %v4378_v37  ;;  %v4463_v37 = vld [vmem:[%s6518_s0 + $0x3a8] ss:$16 sps:$4 sm:$0xff]   ;;  %v4468_v38 = vld [vmem:[%s6518_s0 + $0x464] ss:$16 sps:$4 sm:$0xff]  }
  0x5f   :  { %842 = vmatpush1.bf16.msra.mxu0 %v4379_v41  ;;  %v4466_v41 = vld [vmem:[%s6518_s0 + $0x460] ss:$16 sps:$4 sm:$0xff]  }
  0x60   :  { %803 = vmatpush2.bf16.msra.mxu1 %v4376_v40  ;;  %857 = vmatprep.subr.bf16.mxu0 %v4387_v43  ;;  %v4471_v40 = vld [vmem:[%s6518_s0 + $0x38c] ss:$16 sps:$4 sm:$0xff]   ;;  %v4472_v43 = vld [vmem:[%s6518_s0 + $0x440] ss:$16 sps:$4 sm:$0xff]  }
  0x61   :  { %804 = vmatprep.subr.bf16.mxu1 %v4384_v42  ;;  %v4474_v42 = vld [vmem:[%s6518_s0 + $0x444] ss:$16 sps:$4 sm:$0xff]  }
  0x63   :  { %858 = vmatpush2.bf16.msra.mxu0 %v4385_v45  ;;  %v4480_v45 = vld [vmem:[%s6518_s0 + $0x424] ss:$16 sps:$4 sm:$0xff]  }
  0x64   :  { %805 = vmatpush2.bf16.msra.mxu1 %v4382_v44  ;;  %1481 = vmatprep.subr.bf16.mxu0 %v4390_v46  ;;  %v4475_v44 = vld [vmem:[%s6518_s0 + $0x368] ss:$16 sps:$4 sm:$0xff]   ;;  %v4483_v46 = vld [vmem:[%s6518_s0 + $0x34c] ss:$16 sps:$4 sm:$0xff]  }
  0x65   :  { %1534 = vmatprep.subr.bf16.mxu1 %v4393_v47  ;;  %v4478_v47 = vld [vmem:[%s6518_s0 + $0x420] ss:$16 sps:$4 sm:$0xff]  }
  0x66   :  { %860 = vmatmul.mubr.bf16.vlgmr.msra.gmra.mxu0 %v4997_v39 }
  0x67   :  { %807 = vmatmul.mubr.bf16.vlgmr.msra.gmra.mxu1 %v5090_v4  ;;  %1482 = vmatpush1.bf16.msra.mxu0 %v4388_v48  ;;  %v4481_v48 = vld [vmem:[%s6518_s0 + $0x348] ss:$16 sps:$4 sm:$0xff]  }
  0x68   :  { %1535 = vmatpush1.bf16.msra.mxu1 %v4391_v49  ;;  %1483 = vmatprep.subr.bf16.mxu0 %v4396_v50  ;;  %v4486_v49 = vld [vmem:[%s6518_s0 + $0x32c] ss:$16 sps:$4 sm:$0xff]  }
  0x69   :  { %1536 = vmatprep.subr.bf16.mxu1 %v4399_v52  ;;  %816 = vmatprep.mubr.bf16.mxu1 %v5120_v12  ;;  %v4489_v50 = vld [vmem:[%s6518_s0 + $0x60c] ss:$16 sps:$4 sm:$0xff]   ;;  %v4484_v52 = vld [vmem:[%s6518_s0 + $0x328] ss:$16 sps:$4 sm:$0xff]  }
  0x6a   :  { %3594 = vmatprep.mubr.msk.bf16.mxu0 %vm661_vm0, %v5104_v8 }
  0x6b   :  { %1484 = vmatpush1.bf16.msra.mxu0 %v4394_v53  ;;  %v4487_v53 = vld [vmem:[%s6518_s0 + $0x608] ss:$16 sps:$4 sm:$0xff]  }
  0x6c   :  { %1537 = vmatpush1.bf16.msra.mxu1 %v4397_v54  ;;  %1485 = vmatprep.subr.bf16.mxu0 %v4402_v55  ;;  %v4492_v54 = vld [vmem:[%s6518_s0 + $0x50c] ss:$16 sps:$4 sm:$0xff]  }
  0x6d   :  { %1538 = vmatprep.subr.bf16.mxu1 %v4405_v56  ;;  %v4495_v55 = vld [vmem:[%s6518_s0 + $0x5ec] ss:$16 sps:$4 sm:$0xff]   ;;  %v4490_v56 = vld [vmem:[%s6518_s0 + $0x508] ss:$16 sps:$4 sm:$0xff]  }
  0x6e   :  { %870 = vmatmul.mubr.bf16.gmra.mxu0 %v5109_v9 }
  0x6f   :  { %817 = vmatmul.mubr.bf16.gmra.mxu1 %v5149_v19  ;;  %1486 = vmatpush1.bf16.msra.mxu0 %v4400_v57  ;;  %v4493_v57 = vld [vmem:[%s6518_s0 + $0x5e8] ss:$16 sps:$4 sm:$0xff]  }
  0x70   :  { %1539 = vmatpush1.bf16.msra.mxu1 %v4403_v58  ;;  %1487 = vmatprep.subr.bf16.mxu0 %v4408_v59  ;;  %v4498_v58 = vld [vmem:[%s6518_s0 + $0x4ec] ss:$16 sps:$4 sm:$0xff]   ;;  %v4496_v59 = vld [vmem:[%s6518_s0 + $0x4e8] ss:$16 sps:$4 sm:$0xff]  }
  0x71   :  { %1540 = vmatprep.subr.bf16.mxu1 %v4411_v60  ;;  %3795 = vmatprep.mubr.msk.bf16.mxu1 %vm661_vm0, %v4963_v29  ;;  %v4423_v29 = vld [vmem:[%s6518_s0 + $0x564] ss:$16 sps:$4 sm:$0xff]   ;;  %v4499_v60 = vld [vmem:[%s6518_s0 + $0x5c8] ss:$16 sps:$4 sm:$0xff]  }
  0x72   :  { %1513 = vmatprep.mubr.bf16.mxu0 %v5036_v51 }
  0x73   :  { %1488 = vmatpush1.bf16.msra.mxu0 %v4406_v61  ;;  %v4504_v61 = vld [vmem:[%s6518_s0 + $0x4cc] ss:$16 sps:$4 sm:$0xff]  }
  0x74   :  { %1541 = vmatpush1.bf16.msra.mxu1 %v4409_v62  ;;  %1489 = vmatprep.subr.bf16.mxu0 %v4414_v63  ;;  %v4502_v62 = vld [vmem:[%s6518_s0 + $0x4c8] ss:$16 sps:$4 sm:$0xff]  }
  0x75   :  { %1542 = vmatprep.subr.bf16.mxu1 %v4417_v0  ;;  %v4505_v63 = vld [vmem:[%s6518_s0 + $0x5a8] ss:$16 sps:$4 sm:$0xff]   ;;  %v4510_v0 = vld [vmem:[%s6518_s0 + $0x4ac] ss:$16 sps:$4 sm:$0xff]  }
  0x77   :  { %1490 = vmatpush1.bf16.msra.mxu0 %v4412_v1  ;;  %v4513_v1 = vld [vmem:[%s6518_s0 + $0x58c] ss:$16 sps:$4 sm:$0xff]  }
  0x78   :  { %1543 = vmatpush1.bf16.msra.mxu1 %v4415_v2  ;;  %1491 = vmatprep.subr.bf16.mxu0 %v4420_v3  ;;  %v5493_v2 = vld [vmem:[%s6519_s1 + $0xc] ss:$16 sps:$4 sm:$0xff]   ;;  %v4508_v3 = vld [vmem:[%s6518_s0 + $0x4a8] ss:$16 sps:$4 sm:$0xff]  }
  0x79   :  { %1544 = vmatprep.subr.bf16.mxu1 %v4423_v29  ;;  %v4511_v29 = vld [vmem:[%s6518_s0 + $0x588] ss:$16 sps:$4 sm:$0xff]  }
  0x7b   :  { %1492 = vmatpush1.bf16.msra.mxu0 %v4418_v5  ;;  %v4516_v5 = vld [vmem:[%s6518_s0 + $0x48c] ss:$16 sps:$4 sm:$0xff]  }
  0x7c   :  { %1545 = vmatpush1.bf16.msra.mxu1 %v4421_v6  ;;  %1493 = vmatprep.subr.bf16.mxu0 %v4426_v7  ;;  %v4519_v6 = vld [vmem:[%s6518_s0 + $0x56c] ss:$16 sps:$4 sm:$0xff]   ;;  %v4514_v7 = vld [vmem:[%s6518_s0 + $0x488] ss:$16 sps:$4 sm:$0xff]  }
  0x7d   :  { %1546 = vmatprep.subr.bf16.mxu1 %v4429_v10  ;;  %v4517_v10 = vld [vmem:[%s6518_s0 + $0x568] ss:$16 sps:$4 sm:$0xff]  }
  0x7f   :  { %1494 = vmatpush1.bf16.msra.mxu0 %v4424_v11  ;;  %v4522_v11 = vld [vmem:[%s6518_s0 + $0x46c] ss:$16 sps:$4 sm:$0xff]  }
  0x80   :  { %1547 = vmatpush1.bf16.msra.mxu1 %v4427_v13  ;;  %1495 = vmatprep.subr.bf16.mxu0 %v4432_v14  ;;  %v4525_v13 = vld [vmem:[%s6518_s0 + $0x54c] ss:$16 sps:$4 sm:$0xff]   ;;  %v4520_v14 = vld [vmem:[%s6518_s0 + $0x468] ss:$16 sps:$4 sm:$0xff]  }
  0x81   :  { %1548 = vmatprep.subr.bf16.mxu1 %v4435_v15  ;;  %v4523_v15 = vld [vmem:[%s6518_s0 + $0x548] ss:$16 sps:$4 sm:$0xff]  }
  0x83   :  { %1496 = vmatpush1.bf16.msra.mxu0 %v4430_v16  ;;  %v4528_v16 = vld [vmem:[%s6518_s0 + $0x44c] ss:$16 sps:$4 sm:$0xff]  }
  0x84   :  { %1549 = vmatpush1.bf16.msra.mxu1 %v4433_v17  ;;  %1497 = vmatprep.subr.bf16.mxu0 %v4438_v18  ;;  %v4531_v17 = vld [vmem:[%s6518_s0 + $0x52c] ss:$16 sps:$4 sm:$0xff]   ;;  %v4526_v18 = vld [vmem:[%s6518_s0 + $0x448] ss:$16 sps:$4 sm:$0xff]  }
  0x85   :  { %1564 = vmatprep.subr.bf16.mxu1 %v4441_v20  ;;  %v4529_v20 = vld [vmem:[%s6518_s0 + $0x528] ss:$16 sps:$4 sm:$0xff]  }
  0x87   :  { %1498 = vmatpush2.bf16.msra.mxu0 %v4436_v21  ;;  %v4534_v21 = vld [vmem:[%s6518_s0 + $0x42c] ss:$16 sps:$4 sm:$0xff]  }
  0x88   :  { %1565 = vmatpush2.bf16.msra.mxu1 %v4439_v22  ;;  %1499 = vmatprep.subr.bf16.mxu0 %v4444_v23  ;;  %v4537_v22 = vld [vmem:[%s6518_s0 + $0x62c] ss:$16 sps:$4 sm:$0xff]   ;;  %v4532_v23 = vld [vmem:[%s6518_s0 + $0x428] ss:$16 sps:$4 sm:$0xff]  }
  0x89   :  { %1587 = vmatprep.subr.bf16.mxu1 %v4447_v24  ;;  %v4535_v24 = vld [vmem:[%s6518_s0 + $0x628] ss:$16 sps:$4 sm:$0xff]  }
  0x8b   :  { %1567 = vmatmul.mubr.bf16.vlgmr.msra.gmra.mxu1 %v4997_v39  ;;  %1500 = vmatpush2.bf16.msra.mxu0 %v4442_v25  ;;  %v4459_v39 = vld [vmem:[%s6518_s0 + $0x3cc] ss:$16 sps:$4 sm:$0xff]   ;;  %v4540_v25 = vld [vmem:[%s6518_s0 + $0x724] ss:$16 sps:$4 sm:$0xff]  }
  0x8c   :  { %1588 = vmatpush1.bf16.msra.mxu1 %v4445_v26  ;;  %1501 = vmatprep.subr.bf16.mxu0 %v4450_v27  ;;  %v4543_v26 = vld [vmem:[%s6518_s0 + $0x924] ss:$16 sps:$4 sm:$0xff]   ;;  %v4538_v27 = vld [vmem:[%s6518_s0 + $0x720] ss:$16 sps:$4 sm:$0xff]  }
  0x8d   :  { %1589 = vmatprep.subr.bf16.mxu1 %v4453_v28  ;;  %3796 = vmatprep.mubr.msk.bf16.mxu1 %vm661_vm0, %v5104_v8  ;;  %v4465_v8 = vld [vmem:[%s6518_s0 + $0x3ac] ss:$16 sps:$4 sm:$0xff]   ;;  %v4541_v28 = vld [vmem:[%s6518_s0 + $0x920] ss:$16 sps:$4 sm:$0xff]  }
  0x8f   :  { %1502 = vmatpush2.bf16.msra.mxu0 %v4448_v30  ;;  %v4546_v30 = vld [vmem:[%s6518_s0 + $0x704] ss:$16 sps:$4 sm:$0xff]  }
  0x90   :  { %1590 = vmatpush1.bf16.msra.mxu1 %v4451_v31  ;;  %1503 = vmatprep.subr.bf16.mxu0 %v4456_v32  ;;  %v4549_v31 = vld [vmem:[%s6518_s0 + $0x904] ss:$16 sps:$4 sm:$0xff]   ;;  %v5572_v32 = vld [vmem:[%s6519_s1] ss:$16 sps:$4 sm:$0xff]  }
  0x91   :  { %1591 = vmatprep.subr.bf16.mxu1 %v4459_v39  ;;  %v5578_v39 = vld [vmem:[%s6519_s1 + $0x8] ss:$16 sps:$4 sm:$0xff]  }
  0x93   :  { %1577 = vmatmul.mubr.bf16.gmra.mxu1 %v5109_v9  ;;  %1504 = vmatpush2.bf16.msra.mxu0 %v4454_v33  ;;  %v4469_v9 = vld [vmem:[%s6518_s0 + $0x388] ss:$16 sps:$4 sm:$0xff]   ;;  %v4544_v33 = vld [vmem:[%s6518_s0 + $0x700] ss:$16 sps:$4 sm:$0xff]  }
  0x94   :  { %1592 = vmatpush1.bf16.msra.mxu1 %v4457_v34  ;;  %1505 = vmatprep.subr.bf16.mxu0 %v4462_v35  ;;  %v4547_v34 = vld [vmem:[%s6518_s0 + $0x900] ss:$16 sps:$4 sm:$0xff]   ;;  %v4552_v35 = vld [vmem:[%s6518_s0 + $0x6e4] ss:$16 sps:$4 sm:$0xff]  }
  0x95   :  { %1593 = vmatprep.subr.bf16.mxu1 %v4465_v8  ;;  %1619 = vmatprep.mubr.bf16.mxu1 %v5036_v51  ;;  %v4477_v51 = vld [vmem:[%s6518_s0 + $0x36c] ss:$16 sps:$4 sm:$0xff]   ;;  %v4555_v8 = vld [vmem:[%s6518_s0 + $0x8e4] ss:$16 sps:$4 sm:$0xff]  }
  0x97   :  { %1506 = vmatpush2.bf16.msra.mxu0 %v4460_v36  ;;  %v5596_v36 = vld [vmem:[%s6519_s1 + $0x24] ss:$16 sps:$4 sm:$0xff]  }
  0x98   :  { %1594 = vmatpush1.bf16.msra.mxu1 %v4463_v37  ;;  %1507 = vmatprep.subr.bf16.mxu0 %v4468_v38  ;;  %v5602_v37 = vld [vmem:[%s6519_s1 + $0x2c] ss:$16 sps:$4 sm:$0xff]   ;;  %v4550_v38 = vld [vmem:[%s6518_s0 + $0x6e0] ss:$16 sps:$4 sm:$0xff]  }
  0x99   :  { %1595 = vmatprep.subr.bf16.mxu1 %v4471_v40  ;;  %v4553_v40 = vld [vmem:[%s6518_s0 + $0x8e0] ss:$16 sps:$4 sm:$0xff]  }
  0x9b   :  { %1508 = vmatpush2.bf16.msra.mxu0 %v4466_v41  ;;  %v4558_v41 = vld [vmem:[%s6518_s0 + $0x6c4] ss:$16 sps:$4 sm:$0xff]  }
  0x9c   :  { %1596 = vmatpush1.bf16.msra.mxu1 %v4469_v9  ;;  %1509 = vmatprep.subr.bf16.mxu0 %v4474_v42  ;;  %v4561_v9 = vld [vmem:[%s6518_s0 + $0x8c4] ss:$16 sps:$4 sm:$0xff]   ;;  %v5622_v42 = vld [vmem:[%s6519_s1 + $0x28] ss:$16 sps:$4 sm:$0xff]  }
  0x9d   :  { %1597 = vmatprep.subr.bf16.mxu1 %v4477_v51  ;;  %v4556_v51 = vld [vmem:[%s6518_s0 + $0x6c0] ss:$16 sps:$4 sm:$0xff]  }
  0x9f   :  { %1510 = vmatpush2.bf16.msra.mxu0 %v4472_v43  ;;  %v4559_v43 = vld [vmem:[%s6518_s0 + $0x8c0] ss:$16 sps:$4 sm:$0xff]  }
  0xa0   :  { %1598 = vmatpush1.bf16.msra.mxu1 %v4475_v44  ;;  %1511 = vmatprep.subr.bf16.mxu0 %v4480_v45  ;;  %v4567_v44 = vld [vmem:[%s6518_s0 + $0x8a4] ss:$16 sps:$4 sm:$0xff]  }
  0xa1   :  { %1599 = vmatprep.subr.bf16.mxu1 %v4483_v46  ;;  %v5642_v45 = vld [vmem:[%s6519_s1 + $0x4] ss:$16 sps:$4 sm:$0xff]   ;;  %v4562_v46 = vld [vmem:[%s6518_s0 + $0x6a0] ss:$16 sps:$4 sm:$0xff]  }
  0xa3   :  { %1512 = vmatpush2.bf16.msra.mxu0 %v4478_v47  ;;  %v4565_v47 = vld [vmem:[%s6518_s0 + $0x8a0] ss:$16 sps:$4 sm:$0xff]  }
  0xa4   :  { %1600 = vmatpush1.bf16.msra.mxu1 %v4481_v48  ;;  %1640 = vmatprep.subr.bf16.mxu0 %v4489_v50  ;;  %v4570_v48 = vld [vmem:[%s6518_s0 + $0x684] ss:$16 sps:$4 sm:$0xff]   ;;  %v4568_v50 = vld [vmem:[%s6518_s0 + $0x680] ss:$16 sps:$4 sm:$0xff]  }
  0xa5   :  { %1601 = vmatprep.subr.bf16.mxu1 %v4486_v49  ;;  %v4573_v49 = vld [vmem:[%s6518_s0 + $0x884] ss:$16 sps:$4 sm:$0xff]  }
  0xa6   :  { %1514 = vmatmul.mubr.bf16.vlgmr.msra.gmra.mxu0 %v5090_v4  ;;  %v4501_v4 = vld [vmem:[%s6518_s0 + $0x5cc] ss:$16 sps:$4 sm:$0xff]  }
  0xa7   :  { %1641 = vmatpush1.bf16.msra.mxu0 %v4487_v53  ;;  %1523 = vmatprep.mubr.bf16.mxu0 %v5120_v12  ;;  %v4507_v12 = vld [vmem:[%s6518_s0 + $0x5ac] ss:$16 sps:$4 sm:$0xff]   ;;  %v4576_v53 = vld [vmem:[%s6518_s0 + $0x664] ss:$16 sps:$4 sm:$0xff]  }
  0xa8   :  { %1602 = vmatpush1.bf16.msra.mxu1 %v4484_v52  ;;  %1642 = vmatprep.subr.bf16.mxu0 %v4495_v55  ;;  %v4571_v52 = vld [vmem:[%s6518_s0 + $0x880] ss:$16 sps:$4 sm:$0xff]  }
  0xa9   :  { %1603 = vmatprep.subr.bf16.mxu1 %v4492_v54  ;;  %v4579_v54 = vld [vmem:[%s6518_s0 + $0x864] ss:$16 sps:$4 sm:$0xff]   ;;  %v4574_v55 = vld [vmem:[%s6518_s0 + $0x660] ss:$16 sps:$4 sm:$0xff]  }
  0xab   :  { %1643 = vmatpush1.bf16.msra.mxu0 %v4493_v57  ;;  %v4582_v57 = vld [vmem:[%s6518_s0 + $0x644] ss:$16 sps:$4 sm:$0xff]  }
  0xac   :  { %1604 = vmatpush2.bf16.msra.mxu1 %v4490_v56  ;;  %1644 = vmatprep.subr.bf16.mxu0 %v4501_v4  ;;  %v4577_v56 = vld [vmem:[%s6518_s0 + $0x860] ss:$16 sps:$4 sm:$0xff]  }
  0xad   :  { %1605 = vmatprep.subr.bf16.mxu1 %v4498_v58  ;;  %v4585_v58 = vld [vmem:[%s6518_s0 + $0x844] ss:$16 sps:$4 sm:$0xff]   ;;  %v4580_v4 = vld [vmem:[%s6518_s0 + $0x640] ss:$16 sps:$4 sm:$0xff]  }
  0xae   :  { %1524 = vmatmul.mubr.bf16.gmra.mxu0 %v5149_v19 }
  0xaf   :  { %1645 = vmatpush1.bf16.msra.mxu0 %v4499_v60  ;;  %3797 = vmatprep.mubr.msk.bf16.mxu0 %vm661_vm0, %v5493_v2  ;;  %v4588_v60 = vld [vmem:[%s6518_s0 + $0x824] ss:$16 sps:$4 sm:$0xff]  }
  0xb0   :  { %1606 = vmatpush2.bf16.msra.mxu1 %v4496_v59  ;;  %1646 = vmatprep.subr.bf16.mxu0 %v4507_v12  ;;  %v4583_v59 = vld [vmem:[%s6518_s0 + $0x840] ss:$16 sps:$4 sm:$0xff]  }
  0xb1   :  { %1607 = vmatprep.subr.bf16.mxu1 %v4504_v61  ;;  %v4591_v61 = vld [vmem:[%s6518_s0 + $0x944] ss:$16 sps:$4 sm:$0xff]   ;;  %v4586_v12 = vld [vmem:[%s6518_s0 + $0x820] ss:$16 sps:$4 sm:$0xff]  }
  0xb3   :  { %1647 = vmatpush1.bf16.msra.mxu0 %v4505_v63  ;;  %v4594_v63 = vld [vmem:[%s6518_s0 + $0x804] ss:$16 sps:$4 sm:$0xff]  }
  0xb4   :  { %1608 = vmatpush2.bf16.msra.mxu1 %v4502_v62  ;;  %1648 = vmatprep.subr.bf16.mxu0 %v4513_v1  ;;  %v4589_v62 = vld [vmem:[%s6518_s0 + $0x940] ss:$16 sps:$4 sm:$0xff]  }
  0xb5   :  { %1609 = vmatprep.subr.bf16.mxu1 %v4510_v0  ;;  %v4597_v0 = vld [vmem:[%s6518_s0 + $0x72c] ss:$16 sps:$4 sm:$0xff]   ;;  %v4592_v1 = vld [vmem:[%s6518_s0 + $0x800] ss:$16 sps:$4 sm:$0xff]  }
  0xb7   :  { %1649 = vmatpush1.bf16.msra.mxu0 %v4511_v29  ;;  %v4600_v29 = vld [vmem:[%s6518_s0 + $0x7e4] ss:$16 sps:$4 sm:$0xff]  }
  0xb8   :  { %1610 = vmatpush2.bf16.msra.mxu1 %v4508_v3  ;;  %1650 = vmatprep.subr.bf16.mxu0 %v4519_v6  ;;  %v4595_v3 = vld [vmem:[%s6518_s0 + $0x728] ss:$16 sps:$4 sm:$0xff]   ;;  %v4598_v6 = vld [vmem:[%s6518_s0 + $0x7e0] ss:$16 sps:$4 sm:$0xff]  }
  0xb9   :  { %1611 = vmatprep.subr.bf16.mxu1 %v4516_v5  ;;  %v4603_v5 = vld [vmem:[%s6518_s0 + $0x70c] ss:$16 sps:$4 sm:$0xff]  }
  0xbb   :  { %1651 = vmatpush1.bf16.msra.mxu0 %v4517_v10  ;;  %v4606_v10 = vld [vmem:[%s6518_s0 + $0x7c4] ss:$16 sps:$4 sm:$0xff]  }
  0xbc   :  { %1612 = vmatpush2.bf16.msra.mxu1 %v4514_v7  ;;  %1652 = vmatprep.subr.bf16.mxu0 %v4525_v13  ;;  %v4601_v7 = vld [vmem:[%s6518_s0 + $0x708] ss:$16 sps:$4 sm:$0xff]   ;;  %v4604_v13 = vld [vmem:[%s6518_s0 + $0x7c0] ss:$16 sps:$4 sm:$0xff]  }
  0xbd   :  { %1613 = vmatprep.subr.bf16.mxu1 %v4522_v11  ;;  %v4609_v11 = vld [vmem:[%s6518_s0 + $0x6ec] ss:$16 sps:$4 sm:$0xff]  }
  0xbf   :  { %1653 = vmatpush1.bf16.msra.mxu0 %v4523_v15  ;;  %v4612_v15 = vld [vmem:[%s6518_s0 + $0x7a4] ss:$16 sps:$4 sm:$0xff]  }
  0xc0   :  { %1614 = vmatpush2.bf16.msra.mxu1 %v4520_v14  ;;  %1654 = vmatprep.subr.bf16.mxu0 %v4531_v17  ;;  %v4607_v14 = vld [vmem:[%s6518_s0 + $0x6e8] ss:$16 sps:$4 sm:$0xff]   ;;  %v4615_v17 = vld [vmem:[%s6518_s0 + $0x6cc] ss:$16 sps:$4 sm:$0xff]  }
  0xc1   :  { %1615 = vmatprep.subr.bf16.mxu1 %v4528_v16 }
  0xc3   :  { %1655 = vmatpush1.bf16.msra.mxu0 %v4529_v20  ;;  %v4613_v20 = vld [vmem:[%s6518_s0 + $0x6c8] ss:$16 sps:$4 sm:$0xff]  }
  0xc4   :  { %1616 = vmatpush2.bf16.msra.mxu1 %v4526_v18  ;;  %1670 = vmatprep.subr.bf16.mxu0 %v4537_v22  ;;  %v4610_v18 = vld [vmem:[%s6518_s0 + $0x7a0] ss:$16 sps:$4 sm:$0xff]  }
  0xc5   :  { %1617 = vmatprep.subr.bf16.mxu1 %v4534_v21  ;;  %v4618_v21 = vld [vmem:[%s6518_s0 + $0x784] ss:$16 sps:$4 sm:$0xff]  }
  0xc7   :  { %1671 = vmatpush2.bf16.msra.mxu0 %v4535_v24  ;;  %v4616_v24 = vld [vmem:[%s6518_s0 + $0x780] ss:$16 sps:$4 sm:$0xff]  }
  0xc8   :  { %1618 = vmatpush2.bf16.msra.mxu1 %v4532_v23  ;;  %2310 = vmatprep.subr.bf16.mxu0 %v4540_v25  ;;  %v4621_v23 = vld [vmem:[%s6518_s0 + $0x6ac] ss:$16 sps:$4 sm:$0xff]   ;;  %v4619_v25 = vld [vmem:[%s6518_s0 + $0x6a8] ss:$16 sps:$4 sm:$0xff]  }
  0xc9   :  { %2363 = vmatprep.subr.bf16.mxu1 %v4543_v26  ;;  %v4624_v26 = vld [vmem:[%s6518_s0 + $0x764] ss:$16 sps:$4 sm:$0xff]  }
  0xca   :  { %1673 = vmatmul.mubr.bf16.vlgmr.msra.gmra.mxu0 %v5578_v39 }
  0xcb   :  { %1620 = vmatmul.mubr.bf16.vlgmr.msra.gmra.mxu1 %v5572_v32  ;;  %2311 = vmatpush1.bf16.msra.mxu0 %v4538_v27 }
  0xcc   :  { %2364 = vmatpush1.bf16.msra.mxu1 %v4541_v28  ;;  %2312 = vmatprep.subr.bf16.mxu0 %v4546_v30  ;;  %v4627_v28 = vld [vmem:[%s6518_s0 + $0x68c] ss:$16 sps:$4 sm:$0xff]   ;;  %v4622_v30 = vld [vmem:[%s6518_s0 + $0x760] ss:$16 sps:$4 sm:$0xff]  }
  0xcd   :  { %2365 = vmatprep.subr.bf16.mxu1 %v4549_v31  ;;  %1629 = vmatprep.mubr.bf16.mxu1 %v5596_v36  ;;  %v4625_v31 = vld [vmem:[%s6518_s0 + $0x688] ss:$16 sps:$4 sm:$0xff]  }
  0xce   :  { %3798 = vmatprep.mubr.msk.bf16.mxu0 %vm661_vm0, %v5602_v37 }
  0xcf   :  { %2313 = vmatpush1.bf16.msra.mxu0 %v4544_v33  ;;  %v4630_v33 = vld [vmem:[%s6518_s0 + $0x744] ss:$16 sps:$4 sm:$0xff]  }
  0xd0   :  { %2366 = vmatpush1.bf16.msra.mxu1 %v4547_v34  ;;  %2314 = vmatprep.subr.bf16.mxu0 %v4552_v35  ;;  %v4633_v35 = vld [vmem:[%s6518_s0 + $0x66c] ss:$16 sps:$4 sm:$0xff]  }
  0xd1   :  { %2367 = vmatprep.subr.bf16.mxu1 %v4555_v8 }
  0xd2   :  { %1683 = vmatmul.mubr.bf16.gmra.mxu0 %v5622_v42 }
  0xd3   :  { %1630 = vmatmul.mubr.bf16.gmra.mxu1 %v5149_v19  ;;  %2315 = vmatpush1.bf16.msra.mxu0 %v4550_v38  ;;  %v4564_v19 = vld [vmem:[%s6518_s0 + $0x6a4] ss:$16 sps:$4 sm:$0xff]   ;;  %v4628_v38 = vld [vmem:[%s6518_s0 + $0x740] ss:$16 sps:$4 sm:$0xff]  }
  0xd4   :  { %2368 = vmatpush1.bf16.msra.mxu1 %v4553_v40  ;;  %2316 = vmatprep.subr.bf16.mxu0 %v4558_v41  ;;  %v4631_v40 = vld [vmem:[%s6518_s0 + $0x668] ss:$16 sps:$4 sm:$0xff]  }
  0xd5   :  { %2369 = vmatprep.subr.bf16.mxu1 %v4561_v9  ;;  %3999 = vmatprep.mubr.msk.bf16.mxu1 %vm661_vm0, %v5493_v2 }
  0xd6   :  { %2342 = vmatprep.mubr.bf16.mxu0 %v5642_v45 }
  0xd7   :  { %2317 = vmatpush1.bf16.msra.mxu0 %v4556_v51  ;;  %v4636_v51 = vld [vmem:[%s6518_s0 + $0x64c] ss:$16 sps:$4 sm:$0xff]  }
  0xd8   :  { %2370 = vmatpush1.bf16.msra.mxu1 %v4559_v43  ;;  %2318 = vmatprep.subr.bf16.mxu0 %v4564_v19  ;;  %v4639_v19 = vld [vmem:[%s6518_s0 + $0x92c] ss:$16 sps:$4 sm:$0xff]  }
  0xd9   :  { %2371 = vmatprep.subr.bf16.mxu1 %v4567_v44 }
  0xdb   :  { %2319 = vmatpush1.bf16.msra.mxu0 %v4562_v46 }
  0xdc   :  { %2372 = vmatpush1.bf16.msra.mxu1 %v4565_v47  ;;  %2320 = vmatprep.subr.bf16.mxu0 %v4570_v48  ;;  %v4634_v47 = vld [vmem:[%s6518_s0 + $0x648] ss:$16 sps:$4 sm:$0xff]  }
  0xdd   :  { %2373 = vmatprep.subr.bf16.mxu1 %v4573_v49  ;;  %v4637_v48 = vld [vmem:[%s6518_s0 + $0x928] ss:$16 sps:$4 sm:$0xff]  }
  0xdf   :  { %2321 = vmatpush1.bf16.msra.mxu0 %v4568_v50 }
  0xe0   :  { %2374 = vmatpush1.bf16.msra.mxu1 %v4571_v52  ;;  %2322 = vmatprep.subr.bf16.mxu0 %v4576_v53  ;;  %v4642_v52 = vld [vmem:[%s6518_s0 + $0x82c] ss:$16 sps:$4 sm:$0xff]  }
  0xe1   :  { %2375 = vmatprep.subr.bf16.mxu1 %v4579_v54  ;;  %v4645_v54 = vld [vmem:[%s6518_s0 + $0x90c] ss:$16 sps:$4 sm:$0xff]  }
  0xe3   :  { %2323 = vmatpush1.bf16.msra.mxu0 %v4574_v55 }
  0xe4   :  { %2376 = vmatpush1.bf16.msra.mxu1 %v4577_v56  ;;  %2324 = vmatprep.subr.bf16.mxu0 %v4582_v57  ;;  %v4640_v56 = vld [vmem:[%s6518_s0 + $0x828] ss:$16 sps:$4 sm:$0xff]  }
  0xe5   :  { %2377 = vmatprep.subr.bf16.mxu1 %v4585_v58  ;;  %v4643_v57 = vld [vmem:[%s6518_s0 + $0x908] ss:$16 sps:$4 sm:$0xff]  }
  0xe7   :  { %2325 = vmatpush1.bf16.msra.mxu0 %v4580_v4  ;;  %v755_v16 = vpop.f32.mrf.mxu1 }
  0xe8   :  { %2378 = vmatpush1.bf16.msra.mxu1 %v4583_v59  ;;  %2326 = vmatprep.subr.bf16.mxu0 %v4588_v60  ;;  %v4648_v59 = vld [vmem:[%s6518_s0 + $0x80c] ss:$16 sps:$4 sm:$0xff]  }
  0xe9   :  { %2393 = vmatprep.subr.bf16.mxu1 %v4591_v61  ;;  %v757_v22 = vpop.f32.mrf.mxu1  ;;  %v4651_v61 = vld [vmem:[%s6518_s0 + $0x8ec] ss:$16 sps:$4 sm:$0xff]  }
  0xeb   :  { %2327 = vmatpush2.bf16.msra.mxu0 %v4586_v12  ;;  %v759_v27 = vpop.f32.mrf.mxu1 }
  0xec   :  { %2394 = vmatpush2.bf16.msra.mxu1 %v4589_v62  ;;  %2328 = vmatprep.subr.bf16.mxu0 %v4594_v63 }
  0xed   :  { %2416 = vmatprep.subr.bf16.mxu1 %v4597_v0  ;;  %v761_v34 = vpop.f32.mrf.mxu1 }
  0xef   :  { %2396 = vmatmul.mubr.bf16.vlgmr.msra.gmra.mxu1 %v5578_v39  ;;  %2329 = vmatpush2.bf16.msra.mxu0 %v4592_v1  ;;  %v765_v41 = vpop.f32.mrf.mxu1  ;;  %v4646_v1 = vld [vmem:[%s6518_s0 + $0x808] ss:$16 sps:$4 sm:$0xff]  }
  0xf0   :  { %2417 = vmatpush1.bf16.msra.mxu1 %v4595_v3  ;;  %2330 = vmatprep.subr.bf16.mxu0 %v4600_v29  ;;  %v4649_v3 = vld [vmem:[%s6518_s0 + $0x8e8] ss:$16 sps:$4 sm:$0xff]  }
  0xf1   :  { %2418 = vmatprep.subr.bf16.mxu1 %v4603_v5  ;;  %4000 = vmatprep.mubr.msk.bf16.mxu1 %vm661_vm0, %v5602_v37  ;;  %v767_v49 = vpop.f32.mrf.mxu1  ;;  %v4654_v5 = vld [vmem:[%s6518_s0 + $0x7ec] ss:$16 sps:$4 sm:$0xff]  }
  0xf3   :  { %2331 = vmatpush2.bf16.msra.mxu0 %v4598_v6  ;;  %v769_v4 = vpop.f32.mrf.mxu1  ;;  %v4657_v6 = vld [vmem:[%s6518_s0 + $0x8cc] ss:$16 sps:$4 sm:$0xff]  }
  0xf4   :  { %2419 = vmatpush1.bf16.msra.mxu1 %v4601_v7  ;;  %2332 = vmatprep.subr.bf16.mxu0 %v4606_v10 }
  0xf5   :  { %2420 = vmatprep.subr.bf16.mxu1 %v4609_v11  ;;  %v771_v0 = vpop.f32.mrf.mxu1  ;;  %v5851_v11 = vld [vmem:[%s6519_s1 + $0x20] ss:$16 sps:$4 sm:$0xff]  }
  0xf7   :  { %2406 = vmatmul.mubr.bf16.gmra.mxu1 %v5622_v42  ;;  %2333 = vmatpush2.bf16.msra.mxu0 %v4604_v13  ;;  %v4652_v13 = vld [vmem:[%s6518_s0 + $0x7e8] ss:$16 sps:$4 sm:$0xff]  }
  0xf8   :  { %2421 = vmatpush1.bf16.msra.mxu1 %v4607_v14  ;;  %2334 = vmatprep.subr.bf16.mxu0 %v4612_v15  ;;  %v4655_v14 = vld [vmem:[%s6518_s0 + $0x8c8] ss:$16 sps:$4 sm:$0xff]   ;;  %v4660_v15 = vld [vmem:[%s6518_s0 + $0x7cc] ss:$16 sps:$4 sm:$0xff]  }
  0xf9   :  { %2422 = vmatprep.subr.bf16.mxu1 %v4615_v17  ;;  %2448 = vmatprep.mubr.bf16.mxu1 %v5642_v45  ;;  %v4658_v17 = vld [vmem:[%s6518_s0 + $0x7c8] ss:$16 sps:$4 sm:$0xff]  }
  0xfb   :  { %2335 = vmatpush2.bf16.msra.mxu0 %v4610_v18  ;;  %v4661_v18 = vld [vmem:[%s6518_s0 + $0x8a8] ss:$16 sps:$4 sm:$0xff]  }
  0xfc   :  { %2423 = vmatpush1.bf16.msra.mxu1 %v4613_v20  ;;  %2336 = vmatprep.subr.bf16.mxu0 %v4618_v21  ;;  %v4666_v20 = vld [vmem:[%s6518_s0 + $0x7ac] ss:$16 sps:$4 sm:$0xff]  }
  0xfd   :  { %2424 = vmatprep.subr.bf16.mxu1 %v4621_v23  ;;  %v4669_v21 = vld [vmem:[%s6518_s0 + $0x88c] ss:$16 sps:$4 sm:$0xff]   ;;  %v4667_v23 = vld [vmem:[%s6518_s0 + $0x888] ss:$16 sps:$4 sm:$0xff]  }
  0xff   :  { %2337 = vmatpush2.bf16.msra.mxu0 %v4616_v24  ;;  %v4672_v24 = vld [vmem:[%s6518_s0 + $0x78c] ss:$16 sps:$4 sm:$0xff]  }
 0x100   :  { %2425 = vmatpush1.bf16.msra.mxu1 %v4619_v25  ;;  %2338 = vmatprep.subr.bf16.mxu0 %v4624_v26  ;;  %v4675_v25 = vld [vmem:[%s6518_s0 + $0x86c] ss:$16 sps:$4 sm:$0xff]   ;;  %v4670_v26 = vld [vmem:[%s6518_s0 + $0x788] ss:$16 sps:$4 sm:$0xff]  }
 0x101   :  { %2426 = vmatprep.subr.bf16.mxu1 %v4627_v28  ;;  %v4678_v28 = vld [vmem:[%s6518_s0 + $0x76c] ss:$16 sps:$4 sm:$0xff]  }
 0x102   :  { %v702_v8 = vpop.f32.mrf.mxu0 }
 0x103   :  { %v5788_v9 = vadd.f32 %v755_v16, %v702_v8  ;;  %2339 = vmatpush2.bf16.msra.mxu0 %v4622_v30  ;;  %v4663_v16 = vld [vmem:[%s6518_s0 + $0x8ac] ss:$16 sps:$4 sm:$0xff]  }
 0x104   :  { %2427 = vmatpush1.bf16.msra.mxu1 %v4625_v31  ;;  %v704_v43 = vpop.f32.mrf.mxu0  ;;  %2340 = vmatprep.subr.bf16.mxu0 %v4630_v33  ;;  %v4681_v30 = vld [vmem:[%s6518_s0 + $0x84c] ss:$16 sps:$4 sm:$0xff]   ;;  %v4676_v31 = vld [vmem:[%s6518_s0 + $0x768] ss:$16 sps:$4 sm:$0xff]  }
 0x105   :  { %2428 = vmatprep.subr.bf16.mxu1 %v4633_v35  ;;  %v5796_v44 = vadd.f32 %v757_v22, %v704_v43  ;;  %v4664_v22 = vld [vmem:[%s6518_s0 + $0x7a8] ss:$16 sps:$4 sm:$0xff]   ;;  %v4687_v35 = vld [vmem:[%s6518_s0 + $0x94c] ss:$16 sps:$4 sm:$0xff]  }
 0x106   :  { %v706_v46 = vpop.f32.mrf.mxu0  ;;  %v4679_v33 = vld [vmem:[%s6518_s0 + $0x848] ss:$16 sps:$4 sm:$0xff]  }
 0x107   :  { %v5804_v50 = vadd.f32 %v759_v27, %v706_v46  ;;  %2341 = vmatpush2.bf16.msra.mxu0 %v4628_v38  ;;  %v4673_v27 = vld [vmem:[%s6518_s0 + $0x868] ss:$16 sps:$4 sm:$0xff]   ;;  %v4690_v46 = vld [vmem:[%s6518_s0 + $0xa44] ss:$16 sps:$4 sm:$0xff]  }
 0x108   :  { %2429 = vmatpush1.bf16.msra.mxu1 %v4631_v40  ;;  %v708_v53 = vpop.f32.mrf.mxu0  ;;  %2469 = vmatprep.subr.bf16.mxu0 %v4639_v19 }
 0x109   :  { %2430 = vmatprep.subr.bf16.mxu1 %v4636_v51  ;;  %v5812_v55 = vadd.f32 %v761_v34, %v708_v53  ;;  %v4684_v34 = vld [vmem:[%s6518_s0 + $0x74c] ss:$16 sps:$4 sm:$0xff]   ;;  %v4685_v51 = vld [vmem:[%s6518_s0 + $0x948] ss:$16 sps:$4 sm:$0xff]  }
 0x10a   :  { %2343 = vmatmul.mubr.bf16.vlgmr.msra.gmra.mxu0 %v5572_v32  ;;  %v712_v58 = vpop.f32.mrf.mxu0 }
 0x10b   :  { %2470 = vmatpush1.bf16.msra.mxu0 %v4637_v48  ;;  %v5824_v60 = vadd.f32 %v765_v41, %v712_v58  ;;  %2352 = vmatprep.mubr.bf16.mxu0 %v5596_v36  ;;  %v4682_v41 = vld [vmem:[%s6518_s0 + $0x748] ss:$16 sps:$4 sm:$0xff]  }
 0x10c   :  { %2431 = vmatpush1.bf16.msra.mxu1 %v4634_v47  ;;  %2471 = vmatprep.subr.bf16.mxu0 %v4645_v54  ;;  %v714_v12 = vpop.f32.mrf.mxu0  ;;  %v4693_v47 = vld [vmem:[%s6518_s0 + $0xc44] ss:$16 sps:$4 sm:$0xff]   ;;  %v4688_v54 = vld [vmem:[%s6518_s0 + $0xa40] ss:$16 sps:$4 sm:$0xff]  }
 0x10d   :  { %2432 = vmatprep.subr.bf16.mxu1 %v4642_v52  ;;  %v5830_v62 = vadd.f32 %v767_v49, %v714_v12 }
 0x10e   :  { %v716_v63 = vpop.f32.mrf.mxu0 }
 0x10f   :  { %2472 = vmatpush1.bf16.msra.mxu0 %v4643_v57  ;;  %v5838_v29 = vadd.f32 %v769_v4, %v716_v63  ;;  %v4696_v4 = vld [vmem:[%s6518_s0 + $0xa24] ss:$16 sps:$4 sm:$0xff]  }
 0x110   :  { %2433 = vmatpush2.bf16.msra.mxu1 %v4640_v56  ;;  %2473 = vmatprep.subr.bf16.mxu0 %v4651_v61  ;;  %v718_v7 = vpop.f32.mrf.mxu0  ;;  %v4691_v56 = vld [vmem:[%s6518_s0 + $0xc40] ss:$16 sps:$4 sm:$0xff]  }
 0x111   :  { %2434 = vmatprep.subr.bf16.mxu1 %v4648_v59  ;;  %v5846_v10 = vadd.f32 %v771_v0, %v718_v7  ;;  %v4699_v59 = vld [vmem:[%s6518_s0 + $0xc24] ss:$16 sps:$4 sm:$0xff]   ;;  %v4694_v0 = vld [vmem:[%s6518_s0 + $0xa20] ss:$16 sps:$4 sm:$0xff]  }
 0x112   :  { %2353 = vmatmul.mubr.bf16.gmra.mxu0 %v5851_v11 }
 0x113   :  { %2474 = vmatpush1.bf16.msra.mxu0 %v4649_v3  ;;  %4001 = vmatprep.mubr.msk.bf16.mxu0 %vm661_vm0, %v5493_v2 }
 0x114   :  { %2435 = vmatpush2.bf16.msra.mxu1 %v4646_v1  ;;  %2475 = vmatprep.subr.bf16.mxu0 %v4657_v6  ;;  %v4697_v1 = vld [vmem:[%s6518_s0 + $0xc20] ss:$16 sps:$4 sm:$0xff]  }
 0x115   :  { %2436 = vmatprep.subr.bf16.mxu1 %v4654_v5  ;;  %v4705_v5 = vld [vmem:[%s6518_s0 + $0xc04] ss:$16 sps:$4 sm:$0xff]  }
 0x117   :  { %2476 = vmatpush1.bf16.msra.mxu0 %v4655_v14 }
 0x118   :  { %2437 = vmatpush2.bf16.msra.mxu1 %v4652_v13  ;;  %2477 = vmatprep.subr.bf16.mxu0 %v4663_v16  ;;  %v4700_v16 = vld [vmem:[%s6518_s0 + $0xa00] ss:$16 sps:$4 sm:$0xff]  }
 0x119   :  { %2438 = vmatprep.subr.bf16.mxu1 %v4660_v15 }
 0x11b   :  { %2478 = vmatpush1.bf16.msra.mxu0 %v4661_v18 }
 0x11c   :  { %2439 = vmatpush2.bf16.msra.mxu1 %v4658_v17  ;;  %2479 = vmatprep.subr.bf16.mxu0 %v4669_v21  ;;  %v4703_v17 = vld [vmem:[%s6518_s0 + $0xc00] ss:$16 sps:$4 sm:$0xff]  }
 0x11d   :  { %2440 = vmatprep.subr.bf16.mxu1 %v4666_v20  ;;  %v4711_v20 = vld [vmem:[%s6518_s0 + $0xbe4] ss:$16 sps:$4 sm:$0xff]  }
 0x11f   :  { %2480 = vmatpush1.bf16.msra.mxu0 %v4667_v23 }
 0x120   :  { %2441 = vmatpush2.bf16.msra.mxu1 %v4664_v22  ;;  %2481 = vmatprep.subr.bf16.mxu0 %v4675_v25  ;;  %v4706_v25 = vld [vmem:[%s6518_s0 + $0x9e0] ss:$16 sps:$4 sm:$0xff]  }
 0x121   :  { %2442 = vmatprep.subr.bf16.mxu1 %v4672_v24  ;;  %v4852_v24 = vmov 0  }
 0x122   :  { %4224 = vset.pattern.permute.xlu0 %v4852_v24  ;;  %4225 = vset.pattern.permute.xlu1 %v4852_v24  ;;  %v4769_v24 = vld [vmem:[%s6518_s0 + $0x9c8] ss:$16 sps:$4 sm:$0xff]  }
 0x123   :  { %2482 = vmatpush1.bf16.msra.mxu0 %v4673_v27  ;;  %v3367_v27 = vld [vmem:[%s6520_s2] sm:$0xff] }
 0x124   :  { %2443 = vmatpush2.bf16.msra.mxu1 %v4670_v26  ;;  %2483 = vmatprep.subr.bf16.mxu0 %v4681_v30  ;;  %v4709_v26 = vld [vmem:[%s6518_s0 + $0xbe0] ss:$16 sps:$4 sm:$0xff]   ;;  %v4714_v30 = vld [vmem:[%s6518_s0 + $0x9c4] ss:$16 sps:$4 sm:$0xff]  }
 0x125   :  { %2444 = vmatprep.subr.bf16.mxu1 %v4678_v28  ;;  %v3369_v28 = vld [vmem:[%s6520_s2 + $0x10] sm:$0xff]  ;;  %3373 = vperm.xlu0 %4224, %v3367_v27   ;;  %v4775_v27 = vld [vmem:[%s6518_s0 + $0x9a8] ss:$16 sps:$4 sm:$0xff]  }
 0x126   :  { %v861_v38 = vpop.f32.mrf.mxu0  ;;  %3383 = vperm.xlu1 %4225, %v3369_v28   ;;  %v4780_v28 = vld [vmem:[%s6518_s0 + $0xa64] ss:$16 sps:$4 sm:$0xff]  }
 0x127   :  { %v808_v8 = vpop.f32.mrf.mxu1  ;;  %2484 = vmatpush1.bf16.msra.mxu0 %v4679_v33  ;;  %v4712_v33 = vld [vmem:[%s6518_s0 + $0x9c0] ss:$16 sps:$4 sm:$0xff]  }
 0x128   :  { %v5916_v40 = vadd.f32 %v861_v38, %v808_v8  ;;  %2445 = vmatpush2.bf16.msra.mxu1 %v4676_v31  ;;  %v863_v19 = vpop.f32.mrf.mxu0  ;;  %2499 = vmatprep.subr.bf16.mxu0 %v4687_v35  ;;  %v4717_v31 = vld [vmem:[%s6518_s0 + $0xbc4] ss:$16 sps:$4 sm:$0xff]   ;;  %v3368_v35 = vld [vmem:[%s6520_s2 + $0x8] sm:$0xff] }
 0x129   :  { %v810_v43 = vpop.f32.mrf.mxu1  ;;  %2446 = vmatprep.subr.bf16.mxu1 %v4684_v34  ;;  %v4715_v34 = vld [vmem:[%s6518_s0 + $0xbc0] ss:$16 sps:$4 sm:$0xff]   ;;  %v4720_v8 = vld [vmem:[%s6518_s0 + $0x9a4] ss:$16 sps:$4 sm:$0xff]   ;;  %3378 = vperm.xlu0 %4224, %v3368_v35   ;;  %v4789_v35 = vld [vmem:[%s6518_s0 + $0xc4c] ss:$16 sps:$4 sm:$0xff]  }
 0x12a   :  { %v5930_v48 = vadd.f32 %v863_v19, %v810_v43  ;;  %v865_v52 = vpop.f32.mrf.mxu0  ;;  %v4723_v38 = vld [vmem:[%s6518_s0 + $0xba4] ss:$16 sps:$4 sm:$0xff]  }
 0x12b   :  { %v812_v49 = vpop.f32.mrf.mxu1  ;;  %2500 = vmatpush2.bf16.msra.mxu0 %v4685_v51  ;;  %v4721_v51 = vld [vmem:[%s6518_s0 + $0xba0] ss:$16 sps:$4 sm:$0xff]   ;;  %v4726_v43 = vld [vmem:[%s6518_s0 + $0x984] ss:$16 sps:$4 sm:$0xff]  }
 0x12c   :  { %6536 = vst [vmem:[#allocation2_spill] sm:$0xff] %v5930_v48  ;;  %v5932_v53 = vadd.f32 %v865_v52, %v812_v49  ;;  %2447 = vmatpush2.bf16.msra.mxu1 %v4682_v41  ;;  %v867_v58 = vpop.f32.mrf.mxu0  ;;  %3139 = vmatprep.subr.bf16.mxu0 %v4690_v46  ;;  %v4718_v41 = vld [vmem:[%s6518_s0 + $0x9a0] ss:$16 sps:$4 sm:$0xff]   ;;  %v4729_v19 = vld [vmem:[%s6518_s0 + $0xb84] ss:$16 sps:$4 sm:$0xff]  }
 0x12d   :  { %v814_v57 = vpop.f32.mrf.mxu1  ;;  %3192 = vmatprep.subr.bf16.mxu1 %v4693_v47  ;;  %v4724_v46 = vld [vmem:[%s6518_s0 + $0x980] ss:$16 sps:$4 sm:$0xff]   ;;  %v4732_v49 = vld [vmem:[%s6518_s0 + $0x964] ss:$16 sps:$4 sm:$0xff]  }
 0x12e   :  { %6537 = vst [vmem:[#allocation3_spill] sm:$0xff] %v5932_v53  ;;  %v5946_v61 = vadd.f32 %v867_v58, %v814_v57  ;;  %2502 = vmatmul.mubr.bf16.vlgmr.msra.gmra.mxu0 %v5578_v39  ;;  %v871_v63 = vpop.f32.mrf.mxu0  ;;  %v4727_v47 = vld [vmem:[%s6518_s0 + $0xb80] ss:$16 sps:$4 sm:$0xff]   ;;  %v4735_v52 = vld [vmem:[%s6518_s0 + $0xb64] ss:$16 sps:$4 sm:$0xff]  }
 0x12f   :  { %2449 = vmatmul.mubr.bf16.vlgmr.msra.gmra.mxu1 %v5572_v32  ;;  %v818_v12 = vpop.f32.mrf.mxu1  ;;  %3140 = vmatpush1.bf16.msra.mxu0 %v4688_v54  ;;  %v4702_v32 = vld [vmem:[%s6518_s0 + $0xa04] ss:$16 sps:$4 sm:$0xff]   ;;  %v4730_v54 = vld [vmem:[%s6518_s0 + $0x960] ss:$16 sps:$4 sm:$0xff]  }
 0x130   :  { %6538 = vst [vmem:[#allocation4_spill] sm:$0xff] %v5946_v61  ;;  %3193 = vmatpush1.bf16.msra.mxu1 %v4691_v56  ;;  %v5956_v3 = vadd.f32 %v871_v63, %v818_v12  ;;  %3141 = vmatprep.subr.bf16.mxu0 %v4696_v4  ;;  %v873_v7 = vpop.f32.mrf.mxu0  ;;  %v4733_v56 = vld [vmem:[%s6518_s0 + $0xb60] ss:$16 sps:$4 sm:$0xff]   ;;  %v4738_v57 = vld [vmem:[%s6518_s0 + $0xb44] ss:$16 sps:$4 sm:$0xff]  }
 0x131   :  { %3194 = vmatprep.subr.bf16.mxu1 %v4699_v59  ;;  %v820_v6 = vpop.f32.mrf.mxu1  ;;  %2458 = vmatprep.mubr.bf16.mxu1 %v5596_v36  ;;  %v4708_v36 = vld [vmem:[%s6518_s0 + $0x9e4] ss:$16 sps:$4 sm:$0xff]   ;;  %v4736_v4 = vld [vmem:[%s6518_s0 + $0xb40] ss:$16 sps:$4 sm:$0xff]   ;;  %v4747_v63 = vld [vmem:[%s6518_s0 + $0xa4c] ss:$16 sps:$4 sm:$0xff]  }
 0x132   :  { %6539 = vst [vmem:[#allocation5_spill] sm:$0xff] %v5956_v3  ;;  %4002 = vmatprep.mubr.msk.bf16.mxu0 %vm661_vm0, %v5602_v37  ;;  %v5967_v13 = vadd.f32 %v873_v7, %v820_v6  ;;  %v875_v15 = vpop.f32.mrf.mxu0  ;;  %v4741_v58 = vld [vmem:[%s6518_s0 + $0xc64] ss:$16 sps:$4 sm:$0xff]   ;;  %v4739_v59 = vld [vmem:[%s6518_s0 + $0xc60] ss:$16 sps:$4 sm:$0xff]  }
 0x133   :  { %v822_v14 = vpop.f32.mrf.mxu1  ;;  %3142 = vmatpush1.bf16.msra.mxu0 %v4694_v0  ;;  %v4744_v12 = vld [vmem:[%s6518_s0 + $0xb24] ss:$16 sps:$4 sm:$0xff]   ;;  %v4742_v0 = vld [vmem:[%s6518_s0 + $0xb20] ss:$16 sps:$4 sm:$0xff]   ;;  %v4751_v7 = vld [vmem:[%s6518_s0 + $0xa28] ss:$16 sps:$4 sm:$0xff]  }
 0x134   :  { %6540 = vst [vmem:[#allocation6_spill] sm:$0xff] %v5967_v13  ;;  %3195 = vmatpush1.bf16.msra.mxu1 %v4697_v1  ;;  %v5975_v18 = vadd.f32 %v875_v15, %v822_v14  ;;  %3143 = vmatprep.subr.bf16.mxu0 %v4702_v32  ;;  %v877_v22 = vpop.f32.mrf.mxu0  ;;  %v4745_v1 = vld [vmem:[%s6518_s0 + $0xa48] ss:$16 sps:$4 sm:$0xff]   ;;  %v4750_v32 = vld [vmem:[%s6518_s0 + $0xb04] ss:$16 sps:$4 sm:$0xff]  }
 0x135   :  { %3196 = vmatprep.subr.bf16.mxu1 %v4705_v5  ;;  %v824_v21 = vpop.f32.mrf.mxu1  ;;  %v4753_v5 = vld [vmem:[%s6518_s0 + $0xa2c] ss:$16 sps:$4 sm:$0xff]   ;;  %v4748_v6 = vld [vmem:[%s6518_s0 + $0xb00] ss:$16 sps:$4 sm:$0xff]   ;;  %v4756_v14 = vld [vmem:[%s6518_s0 + $0xae4] ss:$16 sps:$4 sm:$0xff]  }
 0x136   :  { %6541 = vst [vmem:[#allocation7_spill] sm:$0xff] %v5975_v18  ;;  %v5983_v23 = vadd.f32 %v877_v22, %v824_v21  ;;  %2512 = vmatmul.mubr.bf16.gmra.mxu0 %v5622_v42  ;;  %v4754_v15 = vld [vmem:[%s6518_s0 + $0xae0] ss:$16 sps:$4 sm:$0xff]   ;;  %v4768_v21 = vld [vmem:[%s6518_s0 + $0xaa4] ss:$16 sps:$4 sm:$0xff]  }
 0x137   :  { %2459 = vmatmul.mubr.bf16.gmra.mxu1 %v5851_v11  ;;  %3144 = vmatpush1.bf16.msra.mxu0 %v4700_v16  ;;  %v4757_v16 = vld [vmem:[%s6518_s0 + $0xa08] ss:$16 sps:$4 sm:$0xff]   ;;  %v4766_v22 = vld [vmem:[%s6518_s0 + $0xaa0] ss:$16 sps:$4 sm:$0xff]  }
 0x138   :  { %6542 = vst [vmem:[#allocation8_spill] sm:$0xff] %v5983_v23  ;;  %3197 = vmatpush1.bf16.msra.mxu1 %v4703_v17  ;;  %3145 = vmatprep.subr.bf16.mxu0 %v4708_v36  ;;  %v4762_v17 = vld [vmem:[%s6518_s0 + $0xac4] ss:$16 sps:$4 sm:$0xff]   ;;  %v4760_v36 = vld [vmem:[%s6518_s0 + $0xac0] ss:$16 sps:$4 sm:$0xff]  }
 0x139   :  { %3198 = vmatprep.subr.bf16.mxu1 %v4711_v20  ;;  %4203 = vmatprep.mubr.msk.bf16.mxu1 %vm661_vm0, %v5493_v2  ;;  %v3370_v2 = vld [vmem:[%s6520_s2 + $0x18] sm:$0xff] }
 0x13a   :  { %3171 = vmatprep.mubr.bf16.mxu0 %v5642_v45  ;;  %3388 = vperm.xlu1 %4225, %v3370_v2   ;;  %v4763_v20 = vld [vmem:[%s6518_s0 + $0x9e8] ss:$16 sps:$4 sm:$0xff]  }
 0x13b   :  { %3146 = vmatpush1.bf16.msra.mxu0 %v4706_v25  ;;  %v4774_v25 = vld [vmem:[%s6518_s0 + $0xa84] ss:$16 sps:$4 sm:$0xff]   ;;  %v4784_v2 = vld [vmem:[%s6518_s0 + $0x968] ss:$16 sps:$4 sm:$0xff]  }
 0x13c   :  { %3199 = vmatpush1.bf16.msra.mxu1 %v4709_v26  ;;  %3147 = vmatprep.subr.bf16.mxu0 %v4714_v30  ;;  %v4772_v26 = vld [vmem:[%s6518_s0 + $0xa80] ss:$16 sps:$4 sm:$0xff]   ;;  %v4783_v30 = vld [vmem:[%s6518_s0 + $0x98c] ss:$16 sps:$4 sm:$0xff]  }
 0x13d   :  { %3200 = vmatprep.subr.bf16.mxu1 %v4717_v31  ;;  %v4778_v31 = vld [vmem:[%s6518_s0 + $0xa60] ss:$16 sps:$4 sm:$0xff]  }
 0x13f   :  { %3148 = vmatpush1.bf16.msra.mxu0 %v4712_v33  ;;  %v4781_v33 = vld [vmem:[%s6518_s0 + $0x988] ss:$16 sps:$4 sm:$0xff]  }
 0x140   :  { %3201 = vmatpush1.bf16.msra.mxu1 %v4715_v34  ;;  %3149 = vmatprep.subr.bf16.mxu0 %v4720_v8  ;;  %v4786_v34 = vld [vmem:[%s6518_s0 + $0x96c] ss:$16 sps:$4 sm:$0xff]   ;;  %v4787_v8 = vld [vmem:[%s6518_s0 + $0xc48] ss:$16 sps:$4 sm:$0xff]  }
 0x141   :  { %3202 = vmatprep.subr.bf16.mxu1 %v4723_v38 }
 0x143   :  { %3150 = vmatpush1.bf16.msra.mxu0 %v4718_v41  ;;  %v4792_v41 = vld [vmem:[%s6518_s0 + $0xb4c] ss:$16 sps:$4 sm:$0xff]  }
 0x144   :  { %3203 = vmatpush1.bf16.msra.mxu1 %v4721_v51  ;;  %3151 = vmatprep.subr.bf16.mxu0 %v4726_v43  ;;  %v4795_v51 = vld [vmem:[%s6518_s0 + $0xc2c] ss:$16 sps:$4 sm:$0xff]  }
 0x145   :  { %3204 = vmatprep.subr.bf16.mxu1 %v4729_v19  ;;  %v6182_v19 = vld [vmem:[%s6519_s1] ss:$16 sps:$4 sm:$0xff]  }
 0x147   :  { %3152 = vmatpush1.bf16.msra.mxu0 %v4724_v46  ;;  %v4790_v46 = vld [vmem:[%s6518_s0 + $0xb48] ss:$16 sps:$4 sm:$0xff]  }
 0x148   :  { %3205 = vmatpush1.bf16.msra.mxu1 %v4727_v47  ;;  %3153 = vmatprep.subr.bf16.mxu0 %v4732_v49  ;;  %v4793_v47 = vld [vmem:[%s6518_s0 + $0xc28] ss:$16 sps:$4 sm:$0xff]  }
 0x149   :  { %3206 = vmatprep.subr.bf16.mxu1 %v4735_v52  ;;  %v4798_v52 = vld [vmem:[%s6518_s0 + $0xb2c] ss:$16 sps:$4 sm:$0xff]  }
 0x14b   :  { %3154 = vmatpush1.bf16.msra.mxu0 %v4730_v54  ;;  %v6177_v43 = vpop.f32.mrf.mxu1  ;;  %v4801_v54 = vld [vmem:[%s6518_s0 + $0xc0c] ss:$16 sps:$4 sm:$0xff]  }
 0x14c   :  { %3207 = vmatpush1.bf16.msra.mxu1 %v4733_v56  ;;  %3155 = vmatprep.subr.bf16.mxu0 %v4738_v57  ;;  %v6202_v56 = vld [vmem:[%s6519_s1 + $0x24] ss:$16 sps:$4 sm:$0xff]  }
 0x14d   :  { %3222 = vmatprep.subr.bf16.mxu1 %v4741_v58  ;;  %v6205_v57 = vpop.f32.mrf.mxu1  ;;  %v4796_v58 = vld [vmem:[%s6518_s0 + $0xb28] ss:$16 sps:$4 sm:$0xff]  }
 0x14f   :  { %3156 = vmatpush2.bf16.msra.mxu0 %v4736_v4  ;;  %v4799_v4 = vld [vmem:[%s6518_s0 + $0xc08] ss:$16 sps:$4 sm:$0xff]  }
 0x150   :  { %3223 = vmatpush2.bf16.msra.mxu1 %v4739_v59  ;;  %3157 = vmatprep.subr.bf16.mxu0 %v4744_v12  ;;  %v4804_v12 = vld [vmem:[%s6518_s0 + $0xb0c] ss:$16 sps:$4 sm:$0xff]  }
 0x151   :  { %3245 = vmatprep.subr.bf16.mxu1 %v4747_v63  ;;  %v4807_v63 = vld [vmem:[%s6518_s0 + $0xbec] ss:$16 sps:$4 sm:$0xff]  }
 0x153   :  { %3225 = vmatmul.mubr.bf16.vlgmr.msra.gmra.mxu1 %v5578_v39  ;;  %3158 = vmatpush2.bf16.msra.mxu0 %v4742_v0  ;;  %v4759_v39 = vld [vmem:[%s6518_s0 + $0xa0c] ss:$16 sps:$4 sm:$0xff]   ;;  %v6221_v0 = vpop.f32.mrf.mxu1 }
 0x154   :  { %3246 = vmatpush1.bf16.msra.mxu1 %v4745_v1  ;;  %3159 = vmatprep.subr.bf16.mxu0 %v4750_v32  ;;  %v4802_v1 = vld [vmem:[%s6518_s0 + $0xb08] ss:$16 sps:$4 sm:$0xff]  }
 0x155   :  { %3247 = vmatprep.subr.bf16.mxu1 %v4753_v5  ;;  %4204 = vmatprep.mubr.msk.bf16.mxu1 %vm661_vm0, %v5602_v37  ;;  %v4765_v37 = vld [vmem:[%s6518_s0 + $0x9ec] ss:$16 sps:$4 sm:$0xff]   ;;  %v4805_v32 = vld [vmem:[%s6518_s0 + $0xbe8] ss:$16 sps:$4 sm:$0xff]  }
 0x157   :  { %3160 = vmatpush2.bf16.msra.mxu0 %v4748_v6  ;;  %v4810_v6 = vld [vmem:[%s6518_s0 + $0xaec] ss:$16 sps:$4 sm:$0xff]  }
 0x158   :  { %3248 = vmatpush1.bf16.msra.mxu1 %v4751_v7  ;;  %3161 = vmatprep.subr.bf16.mxu0 %v4756_v14  ;;  %v4813_v7 = vld [vmem:[%s6518_s0 + $0xbcc] ss:$16 sps:$4 sm:$0xff]  }
 0x159   :  { %3249 = vmatprep.subr.bf16.mxu1 %v4759_v39  ;;  %v4848_v14 = vld [vmem:[%s6519_s1 + $0xc] ss:$16 sps:$4 sm:$0xff]   ;;  %v6242_v39 = vpop.f32.mrf.mxu1 }
 0x15b   :  { %3235 = vmatmul.mubr.bf16.gmra.mxu1 %v5622_v42  ;;  %3162 = vmatpush2.bf16.msra.mxu0 %v4754_v15  ;;  %v4771_v42 = vld [vmem:[%s6518_s0 + $0x9cc] ss:$16 sps:$4 sm:$0xff]   ;;  %v4808_v15 = vld [vmem:[%s6518_s0 + $0xae8] ss:$16 sps:$4 sm:$0xff]  }
 0x15c   :  { %3250 = vmatpush1.bf16.msra.mxu1 %v4757_v16  ;;  %3163 = vmatprep.subr.bf16.mxu0 %v4762_v17  ;;  %v4811_v16 = vld [vmem:[%s6518_s0 + $0xbc8] ss:$16 sps:$4 sm:$0xff]  }
 0x15d   :  { %3251 = vmatprep.subr.bf16.mxu1 %v4765_v37  ;;  %3277 = vmatprep.mubr.bf16.mxu1 %v5642_v45  ;;  %v4777_v45 = vld [vmem:[%s6518_s0 + $0x9ac] ss:$16 sps:$4 sm:$0xff]   ;;  %v6252_v37 = vpop.f32.mrf.mxu1 }
 0x15f   :  { %3164 = vmatpush2.bf16.msra.mxu0 %v4760_v36  ;;  %v4816_v36 = vld [vmem:[%s6518_s0 + $0xacc] ss:$16 sps:$4 sm:$0xff]  }
 0x160   :  { %3252 = vmatpush1.bf16.msra.mxu1 %v4763_v20  ;;  %3165 = vmatprep.subr.bf16.mxu0 %v4768_v21  ;;  %v4819_v20 = vld [vmem:[%s6518_s0 + $0xbac] ss:$16 sps:$4 sm:$0xff]   ;;  %v4814_v21 = vld [vmem:[%s6518_s0 + $0xac8] ss:$16 sps:$4 sm:$0xff]  }
 0x161   :  { %3253 = vmatprep.subr.bf16.mxu1 %v4771_v42  ;;  %v4817_v42 = vld [vmem:[%s6518_s0 + $0xba8] ss:$16 sps:$4 sm:$0xff]  }
 0x163   :  { %3166 = vmatpush2.bf16.msra.mxu0 %v4766_v22 }
 0x164   :  { %3254 = vmatpush1.bf16.msra.mxu1 %v4769_v24  ;;  %3167 = vmatprep.subr.bf16.mxu0 %v4774_v25  ;;  %v6268_v24 = vpop.f32.mrf.mxu1  ;;  %v4822_v25 = vld [vmem:[%s6518_s0 + $0xaac] ss:$16 sps:$4 sm:$0xff]  }
 0x165   :  { %3255 = vmatprep.subr.bf16.mxu1 %v4777_v45  ;;  %v4825_v45 = vld [vmem:[%s6518_s0 + $0xb8c] ss:$16 sps:$4 sm:$0xff]  }
 0x166   :  { %v6169_v38 = vpop.f32.mrf.mxu0 }
 0x167   :  { %3168 = vmatpush2.bf16.msra.mxu0 %v4772_v26  ;;  %v4820_v26 = vld [vmem:[%s6518_s0 + $0xaa8] ss:$16 sps:$4 sm:$0xff]  }
 0x168   :  { %3256 = vmatpush1.bf16.msra.mxu1 %v4775_v27  ;;  %3169 = vmatprep.subr.bf16.mxu0 %v4780_v28  ;;  %v6191_v49 = vpop.f32.mrf.mxu0  ;;  %v4823_v27 = vld [vmem:[%s6518_s0 + $0xb88] ss:$16 sps:$4 sm:$0xff]  }
 0x169   :  { %3257 = vmatprep.subr.bf16.mxu1 %v4783_v30  ;;  %v6284_v30 = vpop.f32.mrf.mxu1 }
 0x16a   :  { %v6213_v59 = vpop.f32.mrf.mxu0 }
 0x16b   :  { %3170 = vmatpush2.bf16.msra.mxu0 %v4778_v31  ;;  %v4828_v31 = vld [vmem:[%s6518_s0 + $0xa8c] ss:$16 sps:$4 sm:$0xff]   ;;  %v1573_v53 = vadd.f32 %v6221_v0, %v6213_v59 }
 0x16c   :  { %3258 = vmatpush1.bf16.msra.mxu1 %v4781_v33  ;;  %3298 = vmatprep.subr.bf16.mxu0 %v4789_v35  ;;  %v6230_v5 = vpop.f32.mrf.mxu0  ;;  %v4831_v33 = vld [vmem:[%s6518_s0 + $0xb6c] ss:$16 sps:$4 sm:$0xff]   ;;  %v4829_v35 = vld [vmem:[%s6518_s0 + $0xb68] ss:$16 sps:$4 sm:$0xff]  }
 0x16d   :  { %3259 = vmatprep.subr.bf16.mxu1 %v4786_v34  ;;  %v4826_v34 = vld [vmem:[%s6518_s0 + $0xa88] ss:$16 sps:$4 sm:$0xff]   ;;  %v1697_v59 = vmax.f32 %v5804_v50, %v1573_v53 }
 0x16e   :  { %3172 = vmatmul.mubr.bf16.vlgmr.msra.gmra.mxu0 %v6182_v19  ;;  %v6250_v17 = vpop.f32.mrf.mxu0 }
 0x16f   :  { %3299 = vmatpush1.bf16.msra.mxu0 %v4787_v8  ;;  %3181 = vmatprep.mubr.bf16.mxu0 %v6202_v56  ;;  %v6300_v8 = vpop.f32.mrf.mxu1  ;;  %v1579_v0 = vadd.f32 %v6252_v37, %v6250_v17 }
 0x170   :  { %3260 = vmatpush1.bf16.msra.mxu1 %v4784_v2  ;;  %3300 = vmatprep.subr.bf16.mxu0 %v4795_v51  ;;  %v6266_v22 = vpop.f32.mrf.mxu0  ;;  %v4837_v51 = vld [vmem:[%s6518_s0 + $0xc6c] ss:$16 sps:$4 sm:$0xff]  }
 0x171   :  { %3261 = vmatprep.subr.bf16.mxu1 %v4792_v41  ;;  %v4834_v41 = vld [vmem:[%s6518_s0 + $0xa6c] ss:$16 sps:$4 sm:$0xff]   ;;  %v1701_v50 = vmax.f32 %v5824_v60, %v1579_v0  ;;  %v1581_v53 = vadd.f32 %v6268_v24, %v6266_v22 }
 0x172   :  { %v6282_v28 = vpop.f32.mrf.mxu0 }
 0x173   :  { %3301 = vmatpush1.bf16.msra.mxu0 %v4793_v47  ;;  %v1583_v17 = vadd.f32 %v6284_v30, %v6282_v28 }
 0x174   :  { %3262 = vmatpush2.bf16.msra.mxu1 %v4790_v46  ;;  %3302 = vmatprep.subr.bf16.mxu0 %v4801_v54  ;;  %v6298_v2 = vpop.f32.mrf.mxu0  ;;  %v4832_v54 = vld [vmem:[%s6518_s0 + $0xa68] ss:$16 sps:$4 sm:$0xff]  }
 0x175   :  { %3263 = vmatprep.subr.bf16.mxu1 %v4798_v52 }
 0x176   :  { %3182 = vmatmul.mubr.bf16.gmra.mxu0 %v5851_v11 }
 0x177   :  { %3303 = vmatpush1.bf16.msra.mxu0 %v4799_v4  ;;  %4205 = vmatprep.mubr.msk.bf16.mxu0 %vm661_vm0, %v4848_v14 }
 0x178   :  { %3264 = vmatpush2.bf16.msra.mxu1 %v4796_v58  ;;  %3304 = vmatprep.subr.bf16.mxu0 %v4807_v63  ;;  %v4835_v58 = vld [vmem:[%s6518_s0 + $0xc68] ss:$16 sps:$4 sm:$0xff]  }
 0x179   :  { %3265 = vmatprep.subr.bf16.mxu1 %v4804_v12 }
 0x17b   :  { %3305 = vmatpush1.bf16.msra.mxu0 %v4805_v32 }
 0x17c   :  { %3266 = vmatpush2.bf16.msra.mxu1 %v4802_v1  ;;  %3306 = vmatprep.subr.bf16.mxu0 %v4813_v7 }
 0x17d   :  { %3267 = vmatprep.subr.bf16.mxu1 %v4810_v6 }
 0x17f   :  { %3307 = vmatpush1.bf16.msra.mxu0 %v4811_v16 }
 0x180   :  { %3268 = vmatpush2.bf16.msra.mxu1 %v4808_v15  ;;  %3308 = vmatprep.subr.bf16.mxu0 %v4819_v20 }
 0x181   :  { %3269 = vmatprep.subr.bf16.mxu1 %v4816_v36 }
 0x183   :  { %3309 = vmatpush1.bf16.msra.mxu0 %v4817_v42 }
 0x184   :  { %3270 = vmatpush2.bf16.msra.mxu1 %v4814_v21  ;;  %3310 = vmatprep.subr.bf16.mxu0 %v4825_v45 }
 0x185   :  { %3271 = vmatprep.subr.bf16.mxu1 %v4822_v25  ;;  %v4849_v25 = vld [vmem:[%s6519_s1 + $0x8] ss:$16 sps:$4 sm:$0xff]  }
 0x187   :  { %3311 = vmatpush1.bf16.msra.mxu0 %v4823_v27  ;;  %v4850_v27 = vld [vmem:[%s6519_s1 + $0x2c] ss:$16 sps:$4 sm:$0xff]  }
 0x188   :  { %3272 = vmatpush2.bf16.msra.mxu1 %v4820_v26  ;;  %3312 = vmatprep.subr.bf16.mxu0 %v4831_v33 }
 0x189   :  { %3273 = vmatprep.subr.bf16.mxu1 %v4828_v31 }
 0x18a   :  { %v1674_v47 = vpop.f32.mrf.mxu0 }
 0x18b   :  { %v1621_v46 = vpop.f32.mrf.mxu1  ;;  %3313 = vmatpush1.bf16.msra.mxu0 %v4829_v35 }
 0x18c   :  { %v6308_v52 = vadd.f32 %v1674_v47, %v1621_v46  ;;  %3274 = vmatpush2.bf16.msra.mxu1 %v4826_v34  ;;  %v1676_v12 = vpop.f32.mrf.mxu0  ;;  %3328 = vmatprep.subr.bf16.mxu0 %v4837_v51 }
 0x18d   :  { %v1623_v4 = vpop.f32.mrf.mxu1  ;;  %3275 = vmatprep.subr.bf16.mxu1 %v4834_v41 }
 0x18e   :  { %v6318_v1 = vadd.f32 %v1676_v12, %v1623_v4  ;;  %v1678_v6 = vpop.f32.mrf.mxu0  ;;  %v4851_v4 = vld [vmem:[%s6519_s1 + $0x28] ss:$16 sps:$4 sm:$0xff]  }
 0x18f   :  { %v1625_v32 = vpop.f32.mrf.mxu1  ;;  %3329 = vmatpush2.bf16.msra.mxu0 %v4835_v58 }
 0x190   :  { %6543 = vst [vmem:[#allocation9_spill] sm:$0xff] %v6318_v1  ;;  %v6322_v14 = vadd.f32 %v1678_v6, %v1625_v32  ;;  %3276 = vmatpush2.bf16.msra.mxu1 %v4832_v54  ;;  %v1680_v16 = vpop.f32.mrf.mxu0 }
 0x191   :  { %v1627_v15 = vpop.f32.mrf.mxu1 }
 0x192   :  { %6544 = vst [vmem:[#allocation10_spill] sm:$0xff] %v6322_v14  ;;  %v6326_v20 = vadd.f32 %v1680_v16, %v1627_v15  ;;  %v1684_v42 = vpop.f32.mrf.mxu0  ;;  %3331 = vmatmul.mubr.bf16.vlgmr.msra.gmra.mxu0 %v4849_v25  ;;  %v1571_v14 = vadd.f32 %v6205_v57, %v6191_v49 }
 0x193   :  { %v1631_v21 = vpop.f32.mrf.mxu1  ;;  %3278 = vmatmul.mubr.bf16.vlgmr.msra.gmra.mxu1 %v6182_v19  ;;  %4206 = vmatprep.mubr.msk.bf16.mxu0 %vm661_vm0, %v4850_v27 }
 0x194   :  { %6545 = vst [vmem:[#allocation11_spill] sm:$0xff] %v6326_v20  ;;  %v6334_v26 = vadd.f32 %v1684_v42, %v1631_v21  ;;  %3287 = vmatprep.mubr.bf16.mxu1 %v6202_v56  ;;  %v1686_v19 = vpop.f32.mrf.mxu0 }
 0x195   :  { %v1633_v31 = vpop.f32.mrf.mxu1 }
 0x196   :  { %6546 = vst [vmem:[#allocation12_spill] sm:$0xff] %v6334_v26  ;;  %v6343_v34 = vadd.f32 %v1686_v19, %v1633_v31  ;;  %v1688_v41 = vpop.f32.mrf.mxu0 }
 0x197   :  { %v1635_v35 = vpop.f32.mrf.mxu1 }
 0x198   :  { %6547 = vst [vmem:[#allocation13_spill] sm:$0xff] %v6343_v34  ;;  %v6347_v46 = vadd.f32 %v1688_v41, %v1635_v35  ;;  %v1690_v47 = vpop.f32.mrf.mxu0 }
 0x199   :  { %v1637_v56 = vpop.f32.mrf.mxu1 }
 0x19a   :  { %6548 = vst [vmem:[#allocation14_spill] sm:$0xff] %v6347_v46  ;;  %v6351_v58 = vadd.f32 %v1690_v47, %v1637_v56  ;;  %3341 = vmatmul.mubr.bf16.gmra.mxu0 %v4851_v4 }
 0x19b   :  { %3288 = vmatmul.mubr.bf16.gmra.mxu1 %v5851_v11 }
 0x19c   :  { %6549 = vst [vmem:[#allocation15_spill] sm:$0xff] %v6351_v58 }
 0x1af   :  { %v2397_v32 = vpop.f32.mrf.mxu1 }
 0x1b1   :  { %v2399_v6 = vpop.f32.mrf.mxu1 }
 0x1b3   :  { %v2401_v15 = vpop.f32.mrf.mxu1 }
 0x1b5   :  { %v2403_v16 = vpop.f32.mrf.mxu1 }
 0x1b7   :  { %v2407_v42 = vpop.f32.mrf.mxu1 }
 0x1b9   :  { %v6359_v27 = vpop.f32.mrf.mxu1 }
 0x1bb   :  { %v6361_v19 = vpop.f32.mrf.mxu1 }
 0x1bd   :  { %v6363_v35 = vpop.f32.mrf.mxu1 }
 0x1ca   :  { %v2344_v21 = vpop.f32.mrf.mxu0 }
 0x1cc   :  { %v2346_v25 = vpop.f32.mrf.mxu0 }
 0x1ce   :  { %v2348_v31 = vpop.f32.mrf.mxu0 }
 0x1cf   :  { %v2402_v57 = vadd.f32 %v2401_v15, %v2348_v31 }
 0x1d0   :  { %v2350_v11 = vpop.f32.mrf.mxu0 }
 0x1d1   :  { %v2526_v48 = vmax.f32 %v1697_v59, %v2402_v57 }
 0x1d2   :  { %v2354_v41 = vpop.f32.mrf.mxu0 }
 0x1d4   :  { %v6367_v47 = vpop.f32.mrf.mxu0 }
 0x1d5   :  { %v2410_v22 = vadd.f32 %v6359_v27, %v6367_v47 }
 0x1d6   :  { %v2358_v12 = vpop.f32.mrf.mxu0 }
 0x1d7   :  { %v2412_v24 = vadd.f32 %v6361_v19, %v2358_v12 }
 0x1d8   :  { %v6373_v51 = vpop.f32.mrf.mxu0 }
 0x1ee   :  { %v6377_v45 = vpop.f32.mrf.mxu0 }
 0x1ef   :  { %v6365_v56 = vpop.f32.mrf.mxu1 }
 0x1f0   :  { %v6381_v7 = vpop.f32.mrf.mxu0 }
 0x1f1   :  { %v6369_v4 = vpop.f32.mrf.mxu1 }
 0x1f2   :  { %v6385_v58 = vpop.f32.mrf.mxu0 }
 0x1f3   :  { %v6371_v54 = vpop.f32.mrf.mxu1 }
 0x1f4   :  { %v6389_v46 = vpop.f32.mrf.mxu0 }
 0x1f5   :  { %v6375_v33 = vpop.f32.mrf.mxu1  ;;  %6554 = vst [vmem:[#allocation20_spill] sm:$0xff] %v6389_v46  ;;  %v6408_v46 = vpop.permute.xlu0 %3373 }
 0x1f6   :  { %6550 = vst [vmem:[#allocation16_spill] sm:$0xff] %v6375_v33  ;;  %v6393_v34 = vpop.f32.mrf.mxu0 }
 0x1f7   :  { %v6379_v36 = vpop.f32.mrf.mxu1  ;;  %6556 = vst [vmem:[#allocation22_spill] sm:$0xff] %v6393_v34 }
 0x1f8   :  { %6551 = vst [vmem:[#allocation17_spill] sm:$0xff] %v6379_v36  ;;  %v6395_v26 = vpop.f32.mrf.mxu0 }
 0x1f9   :  { %v6383_v63 = vpop.f32.mrf.mxu1  ;;  %6557 = vst [vmem:[#allocation23_spill] sm:$0xff] %v6395_v26  ;;  %v2400_v26 = vadd.f32 %v2399_v6, %v2346_v25  ;;  %v6425_v37 = vpop.permute.xlu0 %3378 }
 0x1fa   :  { %6552 = vst [vmem:[#allocation18_spill] sm:$0xff] %v6383_v63  ;;  %v6397_v20 = vpop.f32.mrf.mxu0  ;;  %v1569_v63 = vadd.f32 %v6177_v43, %v6169_v38  ;;  %v1694_v43 = vmax.f32 %v5796_v44, %v1571_v14 }
 0x1fb   :  { %v6387_v23 = vpop.f32.mrf.mxu1  ;;  %6558 = vst [vmem:[#allocation24_spill] sm:$0xff] %v6397_v20  ;;  %v1575_v20 = vadd.f32 %v6242_v39, %v6230_v5  ;;  %v2408_v5 = vadd.f32 %v2407_v42, %v2354_v41  ;;  %v2414_v42 = vadd.f32 %v6363_v35, %v6373_v51 }
 0x1fc   :  { %6553 = vst [vmem:[#allocation19_spill] sm:$0xff] %v6387_v23  ;;  %v2398_v23 = vadd.f32 %v2397_v32, %v2344_v21  ;;  %v1693_v36 = vmax.f32 %v5788_v9, %v1569_v63  ;;  %v2523_v9 = vmax.f32 %v1694_v43, %v2400_v26  ;;  %v2404_v63 = vadd.f32 %v2403_v16, %v2350_v11 }
 0x1fd   :  { %v6391_v18 = vpop.f32.mrf.mxu1  ;;  %v2530_v60 = vmax.f32 %v1701_v50, %v2408_v5  ;;  %v1702_v16 = vmax.f32 %v5830_v62, %v1581_v53  ;;  %v2504_v50 = vadd.f32 %v6377_v45, %v6365_v56  ;;  %v2506_v53 = vadd.f32 %v6381_v7, %v6369_v4  ;;  %v6564_v45 = vld [vmem:[#allocation16_spill] sm:$0xff] }
 0x1fe   :  { %6555 = vst [vmem:[#allocation21_spill] sm:$0xff] %v6391_v18  ;;  %v6405_v18 = vpop.f32.mrf.mxu0  ;;  %v2522_v49 = vmax.f32 %v1693_v36, %v2398_v23  ;;  %v6565_v56 = vld [vmem:[#allocation20_spill] sm:$0xff] }
 0x1ff   :  { %6559 = vst [vmem:[#allocation25_spill] sm:$0xff] %v6405_v18  ;;  %v1698_v18 = vmax.f32 %v5812_v55, %v1575_v20  ;;  %v2531_v11 = vmax.f32 %v1702_v16, %v2410_v22  ;;  %v6561_v22 = vld [vmem:[#allocation2_spill] sm:$0xff] }
 0x200   :  { %v6569_v16 = vld [vmem:[#allocation10_spill] sm:$0xff] }
 0x201   :  { %v2527_v14 = vmax.f32 %v1698_v18, %v2404_v63 }
 0x213   :  { %v3226_v13 = vpop.f32.mrf.mxu1 }
 0x215   :  { %v3228_v3 = vpop.f32.mrf.mxu1 }
 0x217   :  { %v3230_v61 = vpop.f32.mrf.mxu1 }
 0x219   :  { %v3232_v34 = vpop.f32.mrf.mxu1 }
 0x21b   :  { %v3236_v38 = vpop.f32.mrf.mxu1 }
 0x21d   :  { %v3238_v1 = vpop.f32.mrf.mxu1 }
 0x22e   :  { %v3173_v33 = vpop.f32.mrf.mxu0 }
 0x22f   :  { %v3227_v32 = vadd.f32 %v3226_v13, %v3173_v33  ;;  %v3240_v33 = vpop.f32.mrf.mxu1 }
 0x230   :  { %v3175_v21 = vpop.f32.mrf.mxu0 }
 0x231   :  { %v3351_v6 = vmax.f32 %v2522_v49, %v3227_v32  ;;  %v3229_v25 = vadd.f32 %v3228_v3, %v3175_v21  ;;  %v1585_v3 = vadd.f32 %v6300_v8, %v6298_v2  ;;  %v3242_v43 = vpop.f32.mrf.mxu1 }
 0x232   :  { %v3177_v39 = vpop.f32.mrf.mxu0 }
 0x233   :  { %v3352_v44 = vmax.f32 %v2523_v9, %v3229_v25  ;;  %v3391_v23 = vadd.f32 %v6408_v46, %v3351_v6  ;;  %v3231_v13 = vadd.f32 %v3230_v61, %v3177_v39  ;;  %v6428_v61 = vpop.permute.xlu1 %3383  ;;  %v1706_v19 = vmax.f32 %v5846_v10, %v1585_v3 }
 0x234   :  { %v3179_v55 = vpop.f32.mrf.mxu0 }
 0x235   :  { %v3392_v36 = vadd.f32 %v6408_v46, %v3352_v44  ;;  %v3355_v20 = vmax.f32 %v2526_v48, %v3231_v13  ;;  %v3233_v26 = vadd.f32 %v3232_v34, %v3179_v55  ;;  %v3407_v28 = vmax.f32 %v3391_v23, 0.0 }
 0x236   :  { %v3183_v30 = vpop.f32.mrf.mxu0  ;;  %v1705_v48 = vmax.f32 %v5838_v29, %v1583_v17  ;;  %v2535_v59 = vmax.f32 %v1706_v19, %v2414_v42  ;;  %v6560_v55 = vmax.f32 %v5916_v40, %v6308_v52  ;;  %v6572_v19 = vld [vmem:[#allocation11_spill] sm:$0xff] }
 0x237   :  { %v3408_v2 = vmax.f32 %v3392_v36, 0.0  ;;  %v3356_v8 = vmax.f32 %v2527_v14, %v3233_v26  ;;  %v3395_v15 = vadd.f32 %v6425_v37, %v3355_v20  ;;  %v3237_v18 = vadd.f32 %v3236_v38, %v3183_v30  ;;  %v6444_v32 = vpop.permute.xlu1 %3388 }
 0x238   :  { %v3185_v34 = vpop.f32.mrf.mxu0  ;;  %v2534_v49 = vmax.f32 %v1705_v48, %v2412_v24  ;;  %v2524_v14 = vmax.f32 %v6560_v55, %v2504_v50  ;;  %v2508_v36 = vadd.f32 %v6385_v58, %v6371_v54  ;;  %v6562_v24 = vld [vmem:[#allocation9_spill] sm:$0xff]  ;;  %v6583_v55 = vld [vmem:[#allocation6_spill] sm:$0xff] }
 0x239   :  { %v4215_v31 = vpack.c.bf16 %v3408_v2, %v3407_v28  ;;  %v3396_v27 = vadd.f32 %v6425_v37, %v3356_v8  ;;  %v3359_v12 = vmax.f32 %v2530_v60, %v3237_v18  ;;  %v3239_v41 = vadd.f32 %v3238_v1, %v3185_v34  ;;  %v6566_v2 = vld [vmem:[#allocation17_spill] sm:$0xff]  ;;  %v6567_v8 = vld [vmem:[#allocation22_spill] sm:$0xff]  ;;  %v6568_v18 = vld [vmem:[#allocation3_spill] sm:$0xff] }
 0x23a   :  { %v3187_v47 = vpop.f32.mrf.mxu0  ;;  %v3411_v62 = vmax.f32 %v3395_v15, 0.0  ;;  %v6563_v28 = vmax.f32 %v6561_v22, %v6562_v24  ;;  %v2514_v15 = vadd.f32 %v6567_v8, %v6566_v2  ;;  %v6570_v54 = vmax.f32 %v6568_v18, %v6569_v16  ;;  %v6586_v24 = vld [vmem:[#allocation7_spill] sm:$0xff] }
 0x23b   :  { %3471 = vst [vmem:[%s6521_s3] sm:$0xff] %v4215_v31  ;;  %v3412_v29 = vmax.f32 %v3396_v27, 0.0  ;;  %v3241_v38 = vadd.f32 %v3240_v33, %v3187_v47  ;;  %v3360_v57 = vmax.f32 %v2531_v11, %v3239_v41  ;;  %v3399_v51 = vadd.f32 %v6428_v61, %v3359_v12  ;;  %v6571_v12 = vld [vmem:[#allocation4_spill] sm:$0xff] }
 0x23c   :  { %v3189_v35 = vpop.f32.mrf.mxu0  ;;  %v2525_v30 = vmax.f32 %v6563_v28, %v2506_v53  ;;  %v2510_v33 = vadd.f32 %v6565_v56, %v6564_v45  ;;  %v2528_v58 = vmax.f32 %v6570_v54, %v2508_v36  ;;  %v6573_v11 = vmax.f32 %v6571_v12, %v6572_v19  ;;  %v6587_v28 = vld [vmem:[#allocation14_spill] sm:$0xff] }
 0x23d   :  { %v4217_v10 = vpack.c.bf16 %v3412_v29, %v3411_v62  ;;  %v3363_v0 = vmax.f32 %v2534_v49, %v3241_v38  ;;  %v3243_v1 = vadd.f32 %v3242_v43, %v3189_v35  ;;  %v3400_v21 = vadd.f32 %v6428_v61, %v3360_v57  ;;  %v6574_v62 = vld [vmem:[#allocation5_spill] sm:$0xff]  ;;  %v6575_v29 = vld [vmem:[#allocation12_spill] sm:$0xff]  ;;  %v6578_v35 = vld [vmem:[#allocation23_spill] sm:$0xff] }
 0x23e   :  { %v3415_v6 = vmax.f32 %v3399_v51, 0.0  ;;  %v2529_v41 = vmax.f32 %v6573_v11, %v2510_v33  ;;  %v6576_v38 = vmax.f32 %v6574_v62, %v6575_v29  ;;  %v6577_v51 = vld [vmem:[#allocation18_spill] sm:$0xff] }
 0x23f   :  { %3473 = vst [vmem:[%s6521_s3 + $0x10] sm:$0xff] %v4217_v10  ;;  %v3364_v9 = vmax.f32 %v2535_v59, %v3243_v1  ;;  %v3403_v63 = vadd.f32 %v6444_v32, %v3363_v0  ;;  %v3416_v25 = vmax.f32 %v3400_v21, 0.0  ;;  %v2516_v59 = vadd.f32 %v6578_v35, %v6577_v51  ;;  %v6579_v10 = vld [vmem:[#allocation19_spill] sm:$0xff]  ;;  %v6580_v0 = vld [vmem:[#allocation24_spill] sm:$0xff] }
 0x240   :  { %v2532_v57 = vmax.f32 %v6576_v38, %v2514_v15  ;;  %v2518_v1 = vadd.f32 %v6580_v0, %v6579_v10  ;;  %v6589_v15 = vld [vmem:[#allocation8_spill] sm:$0xff] }
 0x241   :  { %v3404_v5 = vadd.f32 %v6444_v32, %v3364_v9  ;;  %v4219_v39 = vpack.c.bf16 %v3416_v25, %v3415_v6  ;;  %v3419_v44 = vmax.f32 %v3403_v63, 0.0 }
 0x243   :  { %v3420_v23 = vmax.f32 %v3404_v5, 0.0  ;;  %3475 = vst [vmem:[%s6521_s3 + $0x20] sm:$0xff] %v4219_v39 }
 0x245   :  { %v4221_v13 = vpack.c.bf16 %v3420_v23, %v3419_v44  ;;  %v6581_v23 = vld [vmem:[#allocation21_spill] sm:$0xff] }
 0x247   :  { %3477 = vst [vmem:[%s6521_s3 + $0x30] sm:$0xff] %v4221_v13  ;;  %v6582_v13 = vld [vmem:[#allocation25_spill] sm:$0xff] }
 0x248   :  { %v2520_v50 = vadd.f32 %v6582_v13, %v6581_v23 }
 0x252   :  { %v3332_v3 = vpop.f32.mrf.mxu0 }
 0x253   :  { %v3279_v17 = vpop.f32.mrf.mxu1 }
 0x254   :  { %v3333_v20 = vadd.f32 %v3332_v3, %v3279_v17  ;;  %v3334_v60 = vpop.f32.mrf.mxu0 }
 0x255   :  { %v3281_v26 = vpop.f32.mrf.mxu1 }
 0x256   :  { %v3353_v7 = vmax.f32 %v2524_v14, %v3333_v20  ;;  %v3335_v4 = vadd.f32 %v3334_v60, %v3281_v26  ;;  %v3336_v52 = vpop.f32.mrf.mxu0  ;;  %v6584_v14 = vld [vmem:[#allocation13_spill] sm:$0xff] }
 0x257   :  { %v3283_v40 = vpop.f32.mrf.mxu1  ;;  %v6585_v36 = vmax.f32 %v6583_v55, %v6584_v14 }
 0x258   :  { %v3393_v48 = vadd.f32 %v6408_v46, %v3353_v7  ;;  %v3354_v34 = vmax.f32 %v2525_v30, %v3335_v4  ;;  %v3337_v42 = vadd.f32 %v3336_v52, %v3283_v40  ;;  %v3338_v27 = vpop.f32.mrf.mxu0  ;;  %v6588_v30 = vmax.f32 %v6586_v24, %v6587_v28  ;;  %v6590_v40 = vld [vmem:[#allocation15_spill] sm:$0xff] }
 0x259   :  { %v3285_v31 = vpop.f32.mrf.mxu1  ;;  %v2533_v20 = vmax.f32 %v6585_v36, %v2516_v59  ;;  %v6591_v52 = vmax.f32 %v6589_v15, %v6590_v40 }
 0x25a   :  { %v3394_v47 = vadd.f32 %v6408_v46, %v3354_v34  ;;  %v3357_v43 = vmax.f32 %v2528_v58, %v3337_v42  ;;  %v3339_v49 = vadd.f32 %v3338_v27, %v3285_v31  ;;  %v3409_v21 = vmax.f32 %v3393_v48, 0.0  ;;  %v3342_v63 = vpop.f32.mrf.mxu0 }
 0x25b   :  { %v3289_v9 = vpop.f32.mrf.mxu1  ;;  %v2536_v45 = vmax.f32 %v6588_v30, %v2518_v1  ;;  %v2537_v18 = vmax.f32 %v6591_v52, %v2520_v50 }
 0x25c   :  { %v3410_v6 = vmax.f32 %v3394_v47, 0.0  ;;  %v3397_v25 = vadd.f32 %v6425_v37, %v3357_v43  ;;  %v3358_v5 = vmax.f32 %v2529_v41, %v3339_v49  ;;  %v3343_v46 = vadd.f32 %v3342_v63, %v3289_v9  ;;  %v3344_v44 = vpop.f32.mrf.mxu0 }
 0x25d   :  { %v3291_v39 = vpop.f32.mrf.mxu1 }
 0x25e   :  { %v4216_v53 = vpack.c.bf16 %v3410_v6, %v3409_v21  ;;  %v3398_v17 = vadd.f32 %v6425_v37, %v3358_v5  ;;  %v3361_v3 = vmax.f32 %v2532_v57, %v3343_v46  ;;  %v3345_v26 = vadd.f32 %v3344_v44, %v3291_v39  ;;  %v3346_v22 = vpop.f32.mrf.mxu0 }
 0x25f   :  { %v3293_v60 = vpop.f32.mrf.mxu1  ;;  %v3413_v56 = vmax.f32 %v3397_v25, 0.0 }
 0x260   :  { %3472 = vst [vmem:[%s6521_s3 + $0x8] sm:$0xff] %v4216_v53  ;;  %v3414_v33 = vmax.f32 %v3398_v17, 0.0  ;;  %v3347_v7 = vadd.f32 %v3346_v22, %v3293_v60  ;;  %v3401_v37 = vadd.f32 %v6428_v61, %v3361_v3  ;;  %v3362_v4 = vmax.f32 %v2533_v20, %v3345_v26  ;;  %v3348_v8 = vpop.f32.mrf.mxu0 }
 0x261   :  { %v3295_v2 = vpop.f32.mrf.mxu1 }
 0x262   :  { %v4218_v16 = vpack.c.bf16 %v3414_v33, %v3413_v56  ;;  %v3365_v54 = vmax.f32 %v2536_v45, %v3347_v7  ;;  %v3349_v58 = vadd.f32 %v3348_v8, %v3295_v2  ;;  %v3402_v48 = vadd.f32 %v6428_v61, %v3362_v4 }
 0x263   :  { %v3417_v31 = vmax.f32 %v3401_v37, 0.0 }
 0x264   :  { %3474 = vst [vmem:[%s6521_s3 + $0x18] sm:$0xff] %v4218_v16  ;;  %v3405_v34 = vadd.f32 %v6444_v32, %v3365_v54  ;;  %v3366_v42 = vmax.f32 %v2537_v18, %v3349_v58  ;;  %v3418_v27 = vmax.f32 %v3402_v48, 0.0 }
 0x266   :  { %v3406_v12 = vadd.f32 %v6444_v32, %v3366_v42  ;;  %v4220_v19 = vpack.c.bf16 %v3418_v27, %v3417_v31  ;;  %v3421_v11 = vmax.f32 %v3405_v34, 0.0 }
 0x268   :  { %v3422_v41 = vmax.f32 %v3406_v12, 0.0  ;;  %3476 = vst [vmem:[%s6521_s3 + $0x28] sm:$0xff] %v4220_v19 }
 0x26a   :  { %v4222_v47 = vpack.c.bf16 %v3422_v41, %v3421_v11 }
 0x26c   :  { %3478 = vst [vmem:[%s6521_s3 + $0x38] sm:$0xff] %v4222_v47 }

// kernel: cnn_forward.5
= control target key start
LH: loop header
LB: loop body
LE: loop exit
PB: predicated region body
PF: predicated region fallthrough
CT: control target
= control target key end

     0   :  { %vm1517_vm0 = vmmov 0   ;;  %vm858_vm1 = vcmask 261120   ;;  %s1859_s1 = inlined_call_operand.vmem [shape: bf16[1568,128], index: 1, kind: input, shape index: {}]   ;;  %s1860_s0 = inlined_call_operand.vmem [shape: bf16[8,1568], index: 0, kind: input, shape index: {}]   ;;  %s1861_s2 = inlined_call_operand.vmem [shape: f32[1,128], index: 2, kind: input, shape index: {}]   ;;  %s1862_s3 = inlined_call_operand.vmem [shape: f32[8,128], index: 3, kind: output, shape index: {}]  }
   0x1   :  { %v1405_v0 = vld [vmem:[%s1859_s1 + $0x78] sm:$0xff]   ;;  %v1409_v4 = vld [vmem:[%s1859_s1 + $0x70] sm:$0xff]   ;;  %v1413_v8 = vld [vmem:[%s1859_s1 + $0x68] sm:$0xff]  }
   0x2   :  { %v1406_v1 = vld [vmem:[%s1859_s1 + $0xf8] sm:$0xff]   ;;  %1260 = vmatprep.subr.bf16.mxu0 %v1405_v0  ;;  %v1410_v5 = vld [vmem:[%s1859_s1 + $0xf0] sm:$0xff]   ;;  %v1414_v9 = vld [vmem:[%s1859_s1 + $0xe8] sm:$0xff]  }
   0x3   :  { %v1407_v2 = vld [vmem:[%s1859_s1 + $0x38] sm:$0xff]   ;;  %1282 = vmatprep.subr.bf16.mxu1 %v1406_v1  ;;  %v1411_v6 = vld [vmem:[%s1859_s1 + $0x30] sm:$0xff]   ;;  %v1415_v10 = vld [vmem:[%s1859_s1 + $0x28] sm:$0xff]  }
   0x4   :  { %v1408_v3 = vld [vmem:[%s1859_s1 + $0xb8] sm:$0xff]   ;;  %1261 = vmatpush3.bf16.msra.mxu0 %v1407_v2  ;;  %v1412_v7 = vld [vmem:[%s1859_s1 + $0xb0] sm:$0xff]   ;;  %v1416_v11 = vld [vmem:[%s1859_s1 + $0xa8] sm:$0xff]  }
   0x5   :  { %1283 = vmatpush3.bf16.msra.mxu1 %v1408_v3  ;;  %1262 = vmatprep.subr.bf16.mxu0 %v1409_v4  ;;  %v1417_v12 = vld [vmem:[%s1859_s1 + $0x60] sm:$0xff]   ;;  %v1421_v16 = vld [vmem:[%s1859_s1 + $0x58] sm:$0xff]   ;;  %v1425_v20 = vld [vmem:[%s1859_s1 + $0x50] sm:$0xff]  }
   0x6   :  { %1284 = vmatprep.subr.bf16.mxu1 %v1410_v5  ;;  %v1418_v13 = vld [vmem:[%s1859_s1 + $0xe0] sm:$0xff]   ;;  %v1422_v17 = vld [vmem:[%s1859_s1 + $0xd8] sm:$0xff]   ;;  %v1426_v21 = vld [vmem:[%s1859_s1 + $0xd0] sm:$0xff]  }
   0x7   :  { %v1419_v14 = vld [vmem:[%s1859_s1 + $0x20] sm:$0xff]   ;;  %v1423_v18 = vld [vmem:[%s1859_s1 + $0x18] sm:$0xff]   ;;  %v1427_v22 = vld [vmem:[%s1859_s1 + $0x10] sm:$0xff]  }
   0x8   :  { %1263 = vmatpush3.bf16.msra.mxu0 %v1411_v6  ;;  %v1420_v15 = vld [vmem:[%s1859_s1 + $0xa0] sm:$0xff]   ;;  %v1424_v19 = vld [vmem:[%s1859_s1 + $0x98] sm:$0xff]   ;;  %v1428_v23 = vld [vmem:[%s1859_s1 + $0x90] sm:$0xff]  }
   0x9   :  { %1285 = vmatpush3.bf16.msra.mxu1 %v1412_v7  ;;  %1264 = vmatprep.subr.bf16.mxu0 %v1413_v8  ;;  %v1429_v24 = vld [vmem:[%s1859_s1 + $0x48] sm:$0xff]   ;;  %v1433_v28 = vld [vmem:[%s1859_s1 + $0x40] sm:$0xff]   ;;  %v1441_v38 = vld [vmem:[%s1859_s1 + $0x178] sm:$0xff]  }
   0xa   :  { %1286 = vmatprep.subr.bf16.mxu1 %v1414_v9  ;;  %v1430_v25 = vld [vmem:[%s1859_s1 + $0xc8] sm:$0xff]   ;;  %v1434_v29 = vld [vmem:[%s1859_s1 + $0xc0] sm:$0xff]   ;;  %v1442_v39 = vld [vmem:[%s1859_s1 + $0x1f8] sm:$0xff]  }
   0xb   :  { %v1431_v26 = vld [vmem:[%s1859_s1 + $0x8] sm:$0xff]   ;;  %v1435_v30 = vld [vmem:[%s1859_s1] sm:$0xff]   ;;  %v1443_v40 = vld [vmem:[%s1859_s1 + $0x138] sm:$0xff]  }
   0xc   :  { %1265 = vmatpush3.bf16.msra.mxu0 %v1415_v10  ;;  %v1432_v27 = vld [vmem:[%s1859_s1 + $0x88] sm:$0xff]   ;;  %v1436_v31 = vld [vmem:[%s1859_s1 + $0x80] sm:$0xff]   ;;  %v1444_v41 = vld [vmem:[%s1859_s1 + $0x1b8] sm:$0xff]  }
   0xd   :  { %1287 = vmatpush3.bf16.msra.mxu1 %v1416_v11  ;;  %1266 = vmatprep.subr.bf16.mxu0 %v1417_v12  ;;  %v15_v32 = vld [vmem:[%s1860_s0] sm:$0xff]  ;;  %v16_v33 = vld [vmem:[%s1860_s0 + $0x8] sm:$0xff]  ;;  %v1445_v42 = vld [vmem:[%s1859_s1 + $0x170] sm:$0xff]  }
   0xe   :  { %1288 = vmatprep.subr.bf16.mxu1 %v1418_v13  ;;  %v1148_v34 = vcombine.low %v15_v32, %v15_v32  ;;  %v1149_v35 = vcombine.high %v15_v32, %v15_v32  ;;  %v1150_v36 = vcombine.low %v16_v33, %v16_v33  ;;  %v1151_v37 = vcombine.high %v16_v33, %v16_v33  ;;  %v1446_v43 = vld [vmem:[%s1859_s1 + $0x1f0] sm:$0xff]   ;;  %v1449_v46 = vld [vmem:[%s1859_s1 + $0x168] sm:$0xff]   ;;  %v1453_v50 = vld [vmem:[%s1859_s1 + $0x160] sm:$0xff]  }
   0xf   :  { %v1447_v44 = vld [vmem:[%s1859_s1 + $0x130] sm:$0xff]   ;;  %v1450_v47 = vld [vmem:[%s1859_s1 + $0x1e8] sm:$0xff]   ;;  %v1454_v51 = vld [vmem:[%s1859_s1 + $0x1e0] sm:$0xff]  }
  0x10   :  { %1267 = vmatpush3.bf16.msra.mxu0 %v1419_v14  ;;  %894 = vmatprep.mubr.bf16.mxu0 %v1149_v35  ;;  %v1448_v45 = vld [vmem:[%s1859_s1 + $0x1b0] sm:$0xff]   ;;  %v1451_v48 = vld [vmem:[%s1859_s1 + $0x128] sm:$0xff]   ;;  %v1455_v52 = vld [vmem:[%s1859_s1 + $0x120] sm:$0xff]  }
  0x11   :  { %1289 = vmatpush3.bf16.msra.mxu1 %v1420_v15  ;;  %1268 = vmatprep.subr.bf16.mxu0 %v1421_v16  ;;  %v1452_v49 = vld [vmem:[%s1859_s1 + $0x1a8] sm:$0xff]   ;;  %v1456_v53 = vld [vmem:[%s1859_s1 + $0x1a0] sm:$0xff]   ;;  %v1457_v54 = vld [vmem:[%s1859_s1 + $0x158] sm:$0xff]  }
  0x12   :  { %1290 = vmatprep.subr.bf16.mxu1 %v1422_v17  ;;  %934 = vmatprep.mubr.bf16.mxu1 %v1151_v37  ;;  %v1458_v55 = vld [vmem:[%s1859_s1 + $0x1d8] sm:$0xff]   ;;  %v1461_v58 = vld [vmem:[%s1859_s1 + $0x150] sm:$0xff]   ;;  %v1465_v62 = vld [vmem:[%s1859_s1 + $0x148] sm:$0xff]  }
  0x13   :  { %v1459_v56 = vld [vmem:[%s1859_s1 + $0x118] sm:$0xff]   ;;  %v1462_v59 = vld [vmem:[%s1859_s1 + $0x1d0] sm:$0xff]   ;;  %v1466_v63 = vld [vmem:[%s1859_s1 + $0x1c8] sm:$0xff]  }
  0x14   :  { %1269 = vmatpush3.bf16.msra.mxu0 %v1423_v18  ;;  %v1460_v57 = vld [vmem:[%s1859_s1 + $0x198] sm:$0xff]   ;;  %v1463_v60 = vld [vmem:[%s1859_s1 + $0x110] sm:$0xff]   ;;  %v1467_v0 = vld [vmem:[%s1859_s1 + $0x108] sm:$0xff]  }
  0x15   :  { %1291 = vmatpush3.bf16.msra.mxu1 %v1424_v19  ;;  %1270 = vmatprep.subr.bf16.mxu0 %v1425_v20  ;;  %v1464_v61 = vld [vmem:[%s1859_s1 + $0x190] sm:$0xff]   ;;  %v1468_v1 = vld [vmem:[%s1859_s1 + $0x188] sm:$0xff]   ;;  %v1469_v2 = vld [vmem:[%s1859_s1 + $0x140] sm:$0xff]  }
  0x16   :  { %1292 = vmatprep.subr.bf16.mxu1 %v1426_v21  ;;  %v1470_v3 = vld [vmem:[%s1859_s1 + $0x1c0] sm:$0xff]   ;;  %v17_v6 = vld [vmem:[%s1860_s0 + $0x10] sm:$0xff]  ;;  %v18_v9 = vld [vmem:[%s1860_s0 + $0x18] sm:$0xff] }
  0x17   :  { %v1471_v4 = vld [vmem:[%s1859_s1 + $0x100] sm:$0xff]   ;;  %v1152_v7 = vcombine.low %v17_v6, %v17_v6  ;;  %v1153_v8 = vcombine.high %v17_v6, %v17_v6  ;;  %v1154_v10 = vcombine.low %v18_v9, %v18_v9  ;;  %v1155_v11 = vcombine.high %v18_v9, %v18_v9  ;;  %v1477_v12 = vld [vmem:[%s1859_s1 + $0x278] sm:$0xff]   ;;  %v1481_v16 = vld [vmem:[%s1859_s1 + $0x270] sm:$0xff]  }
  0x18   :  { %1271 = vmatpush3.bf16.msra.mxu0 %v1427_v22  ;;  %v1472_v5 = vld [vmem:[%s1859_s1 + $0x180] sm:$0xff]   ;;  %v1478_v13 = vld [vmem:[%s1859_s1 + $0x2f8] sm:$0xff]   ;;  %v1482_v17 = vld [vmem:[%s1859_s1 + $0x2f0] sm:$0xff]  }
  0x19   :  { %1293 = vmatpush3.bf16.msra.mxu1 %v1428_v23  ;;  %1272 = vmatprep.subr.bf16.mxu0 %v1429_v24  ;;  %v1479_v14 = vld [vmem:[%s1859_s1 + $0x238] sm:$0xff]   ;;  %v1483_v18 = vld [vmem:[%s1859_s1 + $0x230] sm:$0xff]   ;;  %v1485_v20 = vld [vmem:[%s1859_s1 + $0x268] sm:$0xff]  }
  0x1a   :  { %1294 = vmatprep.subr.bf16.mxu1 %v1430_v25  ;;  %v1480_v15 = vld [vmem:[%s1859_s1 + $0x2b8] sm:$0xff]   ;;  %v1484_v19 = vld [vmem:[%s1859_s1 + $0x2b0] sm:$0xff]   ;;  %v1486_v21 = vld [vmem:[%s1859_s1 + $0x2e8] sm:$0xff]  }
  0x1b   :  { %v1487_v22 = vld [vmem:[%s1859_s1 + $0x228] sm:$0xff]   ;;  %v1489_v24 = vld [vmem:[%s1859_s1 + $0x260] sm:$0xff]   ;;  %v1497_v32 = vld [vmem:[%s1859_s1 + $0x250] sm:$0xff]  }
  0x1c   :  { %1273 = vmatpush3.bf16.msra.mxu0 %v1431_v26  ;;  %v1488_v23 = vld [vmem:[%s1859_s1 + $0x2a8] sm:$0xff]   ;;  %v1490_v25 = vld [vmem:[%s1859_s1 + $0x2e0] sm:$0xff]   ;;  %v1498_v33 = vld [vmem:[%s1859_s1 + $0x2d0] sm:$0xff]  }
  0x1d   :  { %1295 = vmatpush3.bf16.msra.mxu1 %v1432_v27  ;;  %1274 = vmatprep.subr.bf16.mxu0 %v1433_v28  ;;  %v1491_v26 = vld [vmem:[%s1859_s1 + $0x220] sm:$0xff]   ;;  %v1493_v28 = vld [vmem:[%s1859_s1 + $0x258] sm:$0xff]   ;;  %v1500_v35 = vld [vmem:[%s1859_s1 + $0x290] sm:$0xff]  }
  0x1e   :  { %1296 = vmatprep.subr.bf16.mxu1 %v1434_v29  ;;  %v1492_v27 = vld [vmem:[%s1859_s1 + $0x2a0] sm:$0xff]   ;;  %v1494_v29 = vld [vmem:[%s1859_s1 + $0x2d8] sm:$0xff]   ;;  %v1502_v37 = vld [vmem:[%s1859_s1 + $0x2c8] sm:$0xff]  }
  0x20   :  { %1275 = vmatpush3.bf16.msra.mxu0 %v1435_v30  ;;  %v1495_v30 = vld [vmem:[%s1859_s1 + $0x218] sm:$0xff]  }
  0x21   :  { %1297 = vmatpush3.bf16.msra.mxu1 %v1436_v31  ;;  %1304 = vmatprep.subr.bf16.mxu0 %v1441_v38  ;;  %v1496_v31 = vld [vmem:[%s1859_s1 + $0x298] sm:$0xff]   ;;  %v1503_v38 = vld [vmem:[%s1859_s1 + $0x208] sm:$0xff]  }
  0x22   :  { %1326 = vmatprep.subr.bf16.mxu1 %v1442_v39  ;;  %v1504_v39 = vld [vmem:[%s1859_s1 + $0x288] sm:$0xff]  }
  0x23   :  { %895 = vmatmul.mubr.bf16.vlgmr.msra.gmra.mxu0 %v1148_v34  ;;  %v1499_v34 = vld [vmem:[%s1859_s1 + $0x210] sm:$0xff]  }
  0x24   :  { %935 = vmatmul.mubr.bf16.vlgmr.msra.gmra.mxu1 %v1150_v36  ;;  %1305 = vmatpush3.bf16.msra.mxu0 %v1443_v40  ;;  %v1501_v36 = vld [vmem:[%s1859_s1 + $0x248] sm:$0xff]   ;;  %v1505_v40 = vld [vmem:[%s1859_s1 + $0x240] sm:$0xff]  }
  0x25   :  { %1327 = vmatpush3.bf16.msra.mxu1 %v1444_v41  ;;  %1306 = vmatprep.subr.bf16.mxu0 %v1445_v42  ;;  %v1506_v41 = vld [vmem:[%s1859_s1 + $0x2c0] sm:$0xff]  }
  0x26   :  { %1328 = vmatprep.subr.bf16.mxu1 %v1446_v43  ;;  %974 = vmatprep.mubr.bf16.mxu0 %v1153_v8  ;;  %v1507_v42 = vld [vmem:[%s1859_s1 + $0x200] sm:$0xff]  }
  0x27   :  { %1014 = vmatprep.mubr.bf16.mxu1 %v1155_v11  ;;  %v1508_v43 = vld [vmem:[%s1859_s1 + $0x280] sm:$0xff]  }
  0x28   :  { %1307 = vmatpush3.bf16.msra.mxu0 %v1447_v44  ;;  %v19_v44 = vld [vmem:[%s1860_s0 + $0x20] sm:$0xff] }
  0x29   :  { %1329 = vmatpush3.bf16.msra.mxu1 %v1448_v45  ;;  %1308 = vmatprep.subr.bf16.mxu0 %v1449_v46  ;;  %v20_v45 = vld [vmem:[%s1860_s0 + $0x28] sm:$0xff]  ;;  %v1156_v46 = vcombine.low %v19_v44, %v19_v44 }
  0x2a   :  { %1330 = vmatprep.subr.bf16.mxu1 %v1450_v47  ;;  %v1157_v47 = vcombine.high %v19_v44, %v19_v44 }
  0x2c   :  { %1309 = vmatpush3.bf16.msra.mxu0 %v1451_v48  ;;  %v1158_v48 = vcombine.low %v20_v45, %v20_v45 }
  0x2d   :  { %1331 = vmatpush3.bf16.msra.mxu1 %v1452_v49  ;;  %1310 = vmatprep.subr.bf16.mxu0 %v1453_v50  ;;  %v1159_v49 = vcombine.high %v20_v45, %v20_v45  ;;  %v1513_v50 = vld [vmem:[%s1859_s1 + $0x308] sm:$0xff]  }
  0x2e   :  { %1332 = vmatprep.subr.bf16.mxu1 %v1454_v51  ;;  %v1516_v51 = vmov 0.0  }
  0x30   :  { %1311 = vmatpush3.bf16.msra.mxu0 %v1455_v52  ;;  %v1514_v52 = vld [vmem:[%s1859_s1 + $0x300] sm:$0xff]  }
  0x31   :  { %1333 = vmatpush3.bf16.msra.mxu1 %v1456_v53  ;;  %1312 = vmatprep.subr.bf16.mxu0 %v1457_v54  ;;  %v1515_v53 = vld [vmem:[%s1860_s0 + $0x30] ss:$0 sps:$4 sm:$0xff]  }
  0x32   :  { %1334 = vmatprep.subr.bf16.mxu1 %v1458_v55 }
  0x34   :  { %1313 = vmatpush3.bf16.msra.mxu0 %v1459_v56 }
  0x35   :  { %1335 = vmatpush3.bf16.msra.mxu1 %v1460_v57  ;;  %1314 = vmatprep.subr.bf16.mxu0 %v1461_v58 }
  0x36   :  { %1336 = vmatprep.subr.bf16.mxu1 %v1462_v59 }
  0x38   :  { %1315 = vmatpush3.bf16.msra.mxu0 %v1463_v60 }
  0x39   :  { %1337 = vmatpush3.bf16.msra.mxu1 %v1464_v61  ;;  %1316 = vmatprep.subr.bf16.mxu0 %v1465_v62 }
  0x3a   :  { %1338 = vmatprep.subr.bf16.mxu1 %v1466_v63 }
  0x3c   :  { %1317 = vmatpush3.bf16.msra.mxu0 %v1467_v0 }
  0x3d   :  { %1339 = vmatpush3.bf16.msra.mxu1 %v1468_v1  ;;  %1318 = vmatprep.subr.bf16.mxu0 %v1469_v2 }
  0x3e   :  { %1340 = vmatprep.subr.bf16.mxu1 %v1470_v3 }
  0x40   :  { %1319 = vmatpush3.bf16.msra.mxu0 %v1471_v4 }
  0x41   :  { %1341 = vmatpush3.bf16.msra.mxu1 %v1472_v5  ;;  %1348 = vmatprep.subr.bf16.mxu0 %v1477_v12 }
  0x42   :  { %1370 = vmatprep.subr.bf16.mxu1 %v1478_v13 }
  0x43   :  { %975 = vmatmul.mubr.bf16.vlgmr.msra.gmra.mxu0 %v1152_v7  ;;  %v1147_v7 = vld [vmem:[%s1861_s2] ss:$0 sm:$0xff] }
  0x44   :  { %1015 = vmatmul.mubr.bf16.vlgmr.msra.gmra.mxu1 %v1154_v10  ;;  %1349 = vmatpush3.bf16.msra.mxu0 %v1479_v14 }
  0x45   :  { %1371 = vmatpush3.bf16.msra.mxu1 %v1480_v15  ;;  %1350 = vmatprep.subr.bf16.mxu0 %v1481_v16 }
  0x46   :  { %1372 = vmatprep.subr.bf16.mxu1 %v1482_v17  ;;  %1054 = vmatprep.mubr.bf16.mxu0 %v1157_v47 }
  0x47   :  { %1094 = vmatprep.mubr.bf16.mxu1 %v1159_v49 }
  0x48   :  { %1351 = vmatpush3.bf16.msra.mxu0 %v1483_v18 }
  0x49   :  { %1373 = vmatpush3.bf16.msra.mxu1 %v1484_v19  ;;  %1352 = vmatprep.subr.bf16.mxu0 %v1485_v20 }
  0x4a   :  { %1374 = vmatprep.subr.bf16.mxu1 %v1486_v21 }
  0x4c   :  { %1353 = vmatpush3.bf16.msra.mxu0 %v1487_v22 }
  0x4d   :  { %1375 = vmatpush3.bf16.msra.mxu1 %v1488_v23  ;;  %1354 = vmatprep.subr.bf16.mxu0 %v1489_v24 }
  0x4e   :  { %1376 = vmatprep.subr.bf16.mxu1 %v1490_v25 }
  0x50   :  { %1355 = vmatpush3.bf16.msra.mxu0 %v1491_v26 }
  0x51   :  { %1377 = vmatpush3.bf16.msra.mxu1 %v1492_v27  ;;  %1356 = vmatprep.subr.bf16.mxu0 %v1493_v28 }
  0x52   :  { %1378 = vmatprep.subr.bf16.mxu1 %v1494_v29 }
  0x54   :  { %1357 = vmatpush3.bf16.msra.mxu0 %v1495_v30 }
  0x55   :  { %1379 = vmatpush3.bf16.msra.mxu1 %v1496_v31  ;;  %1358 = vmatprep.subr.bf16.mxu0 %v1497_v32 }
  0x56   :  { %1380 = vmatprep.subr.bf16.mxu1 %v1498_v33 }
  0x58   :  { %1359 = vmatpush3.bf16.msra.mxu0 %v1499_v34 }
  0x59   :  { %1381 = vmatpush3.bf16.msra.mxu1 %v1500_v35  ;;  %1360 = vmatprep.subr.bf16.mxu0 %v1501_v36 }
  0x5a   :  { %1382 = vmatprep.subr.bf16.mxu1 %v1502_v37 }
  0x5c   :  { %1361 = vmatpush3.bf16.msra.mxu0 %v1503_v38 }
  0x5d   :  { %1383 = vmatpush3.bf16.msra.mxu1 %v1504_v39  ;;  %1362 = vmatprep.subr.bf16.mxu0 %v1505_v40 }
  0x5e   :  { %1384 = vmatprep.subr.bf16.mxu1 %v1506_v41 }
  0x60   :  { %1363 = vmatpush3.bf16.msra.mxu0 %v1507_v42 }
  0x61   :  { %1385 = vmatpush3.bf16.msra.mxu1 %v1508_v43  ;;  %1395 = vmatprep.subr.bf16.mxu0 %v1516_v51 }
  0x63   :  { %1055 = vmatmul.mubr.bf16.vlgmr.msra.gmra.mxu0 %v1156_v46 }
  0x64   :  { %1095 = vmatmul.mubr.bf16.vlgmr.msra.gmra.mxu1 %v1158_v48  ;;  %1396 = vmatpush3.bf16.msra.mxu0 %v1513_v50 }
  0x65   :  { %1397 = vmatprep.subr.bf16.mxu0 %v1516_v51  ;;  %1399 = vmatprep.mubr.msk.bf16.mxu0 %vm1517_vm0, %v1516_v51 }
  0x68   :  { %1398 = vmatpush3.bf16.msra.mxu0 %v1514_v52 }
  0x6b   :  { %1400 = vmatmul.mubr.msk.bf16.vlgmr.msra.gmra.mxu0 %vm858_vm1, %v1515_v53 }
  0xe3   :  { %v1276_v54 = vpop.f32.mrf.mxu0 }
  0xe4   :  { %v1298_v55 = vpop.f32.mrf.mxu1 }
  0xe5   :  { %v1277_v56 = vpop.f32.mrf.mxu0 }
  0xe6   :  { %v1299_v57 = vpop.f32.mrf.mxu1  ;;  %v1278_v6 = vadd.f32 %v1277_v56, %v1276_v54 }
  0xe7   :  { %v1279_v58 = vpop.f32.mrf.mxu0  ;;  %v1300_v9 = vadd.f32 %v1299_v57, %v1298_v55 }
  0xe8   :  { %v1301_v59 = vpop.f32.mrf.mxu1  ;;  %v897_v8 = vadd.f32 %v1278_v6, %v1147_v7 }
  0xe9   :  { %v1280_v60 = vpop.f32.mrf.mxu0 }
  0xea   :  { %v1302_v61 = vpop.f32.mrf.mxu1  ;;  %v937_v11 = vadd.f32 %v1300_v9, %v897_v8 }
 0x103   :  { %v1320_v62 = vpop.f32.mrf.mxu0 }
 0x104   :  { %v1342_v63 = vpop.f32.mrf.mxu1 }
 0x105   :  { %v1321_v0 = vpop.f32.mrf.mxu0 }
 0x106   :  { %v1343_v1 = vpop.f32.mrf.mxu1  ;;  %v1322_v10 = vadd.f32 %v1321_v0, %v1320_v62 }
 0x107   :  { %v1323_v2 = vpop.f32.mrf.mxu0  ;;  %v1344_v13 = vadd.f32 %v1343_v1, %v1342_v63 }
 0x108   :  { %v1345_v3 = vpop.f32.mrf.mxu1  ;;  %v977_v12 = vadd.f32 %v1322_v10, %v937_v11 }
 0x109   :  { %v1324_v4 = vpop.f32.mrf.mxu0 }
 0x10a   :  { %v1346_v5 = vpop.f32.mrf.mxu1  ;;  %v1017_v17 = vadd.f32 %v1344_v13, %v977_v12 }
 0x123   :  { %v1364_v14 = vpop.f32.mrf.mxu0 }
 0x124   :  { %v1386_v15 = vpop.f32.mrf.mxu1 }
 0x125   :  { %v1365_v16 = vpop.f32.mrf.mxu0 }
 0x126   :  { %v1366_v18 = vadd.f32 %v1365_v16, %v1364_v14  ;;  %v1387_v19 = vpop.f32.mrf.mxu1 }
 0x127   :  { %v1388_v20 = vadd.f32 %v1387_v19, %v1386_v15  ;;  %v1367_v21 = vpop.f32.mrf.mxu0 }
 0x128   :  { %v1057_v22 = vadd.f32 %v1366_v18, %v1017_v17  ;;  %v1389_v23 = vpop.f32.mrf.mxu1 }
 0x129   :  { %v1368_v24 = vpop.f32.mrf.mxu0 }
 0x12a   :  { %v1390_v25 = vpop.f32.mrf.mxu1  ;;  %v1097_v26 = vadd.f32 %v1388_v20, %v1057_v22 }
 0x12b   :  { %v1136_v27 = vpop.f32.mrf.mxu0 }
 0x12c   :  { %v1137_v28 = vadd.f32 %v1136_v27, %v1097_v26 }
 0x12d   :  { %v1401_v29 = vpop.f32.mrf.mxu0 }
 0x12e   :  { %1142 = vst [vmem:[%s1862_s3] sm:$0xff] %v1137_v28 }
 0x12f   :  { %v1139_v30 = vpop.f32.mrf.mxu0 }
 0x131   :  { %v1402_v31 = vpop.f32.mrf.mxu0 }

</bundles_post_ra>
